<compile_context>
chip_gen: v7x
topology: tpu7x:2x2x1
jax: 0.10.0
libtpu: 0.0.40
codegen_flags: <defaults>
</compile_context>

<pallas_src>
import functools
import math

import jax
import jax.numpy as jnp
from jax.experimental import pallas as pl
from jax.experimental.pallas import tpu as pltpu


# ---------------------------------------------------------------------------
# Positional encoding (plain JAX glue) — mirrors positional_encoding_2d
# ---------------------------------------------------------------------------
def positional_encoding_2d(d_model, height, width, dtype=jnp.float32):
    if d_model % 4 != 0:
        raise ValueError(f"d_model must be divisible by 4, got {d_model}")
    dm = d_model // 2
    div_term = jnp.exp(
        jnp.arange(0.0, dm, 2, dtype=dtype) * -(math.log(10000.0) / dm)
    )                                                      # (dm/2,)
    pos_w = jnp.arange(0.0, width, dtype=dtype)[:, None]   # (W, 1)
    pos_h = jnp.arange(0.0, height, dtype=dtype)[:, None]  # (H, 1)

    sin_w = jnp.sin(pos_w * div_term).T[:, None, :]  # (dm/2, 1, W)
    cos_w = jnp.cos(pos_w * div_term).T[:, None, :]  # (dm/2, 1, W)
    sin_h = jnp.sin(pos_h * div_term).T[:, :, None]  # (dm/2, H, 1)
    cos_h = jnp.cos(pos_h * div_term).T[:, :, None]  # (dm/2, H, 1)

    pe = jnp.zeros((d_model, height, width), dtype=dtype)
    pe = pe.at[0:dm:2].set(jnp.broadcast_to(sin_w, (dm // 2, height, width)))
    pe = pe.at[1:dm:2].set(jnp.broadcast_to(cos_w, (dm // 2, height, width)))
    pe = pe.at[dm::2].set(jnp.broadcast_to(sin_h, (dm // 2, height, width)))
    pe = pe.at[dm + 1::2].set(jnp.broadcast_to(cos_h, (dm // 2, height, width)))
    return pe


# ---------------------------------------------------------------------------
# Pallas kernel: one (batch, query-tile) step of MHSA in feature-major layout
# ---------------------------------------------------------------------------
def _mhsa_kernel(*refs, heads, d_k, d_model, tq, pos_enc, multi_tile):
    c = d_model
    it = iter(refs)
    x_ref = next(it)                                   # (1, C, S)
    pe_ref = next(it) if pos_enc else None             # (C, S) bf16
    wq_ref = next(it)                                  # (C, C)   bf16 (scaled)
    bq_ref = next(it)                                  # (1, C)   f32  (scaled)
    wkv_ref = next(it)                                 # (2C, C)  bf16
    bkv_ref = next(it)                                 # (2C, 1)  f32
    wo_ref = next(it)                                  # (C, C)   bf16
    bo_ref = next(it)                                  # (C, 1)   f32
    o_ref = next(it)                                   # (1, C, TQ)
    concat_ref = next(it)                              # (C, TQ)  f32 scratch
    if multi_tile:
        kv_ref = next(it)                              # (2C, S)  f32 scratch
        xbf_ref = next(it)                             # (C, S)   bf16 scratch

    def load_x_bf():
        # Fused positional-encoding add in f32, then one cast to bf16.
        xf = x_ref[0].astype(jnp.float32)              # (C, S)
        if pos_enc:
            xf = xf + pe_ref[...].astype(jnp.float32)
        return xf.astype(jnp.bfloat16)                 # (C, S)

    if multi_tile:
        j = pl.program_id(1)

        # Full-sequence activations + fused K|V projection only once per batch
        # (query-tile axis is "arbitrary" -> sequential, scratch persists).
        @pl.when(j == 0)
        def _():
            x_bf = load_x_bf()
            xbf_ref[...] = x_bf
            kv_ref[...] = jnp.dot(
                wkv_ref[...], x_bf,
                preferred_element_type=jnp.float32) + bkv_ref[...]   # (2C, S)

        q_start = j * tq
        if tq % 128 == 0:
            q_start = pl.multiple_of(q_start, 128)
        xq_bf = xbf_ref[:, pl.ds(q_start, tq)]         # (C, TQ) bf16

        def head_k(r0):
            return kv_ref[r0:r0 + d_k, :].astype(jnp.bfloat16)       # (d_k, S)

        def head_v(r0):
            return kv_ref[c + r0:c + r0 + d_k, :].astype(jnp.bfloat16)
    else:
        # Single query tile (TQ == S): everything stays in registers/values.
        x_bf = load_x_bf()
        kv = jnp.dot(wkv_ref[...], x_bf,
                     preferred_element_type=jnp.float32) + bkv_ref[...]
        xq_bf = x_bf                                   # (C, TQ == S)

        def head_k(r0):
            return kv[r0:r0 + d_k, :].astype(jnp.bfloat16)

        def head_v(r0):
            return kv[c + r0:c + r0 + d_k, :].astype(jnp.bfloat16)

    # Q projection directly in (TQ, C) orientation (no XLU transpose):
    # PyTorch y = x @ W^T  <=>  y[t, o] = sum_i x_bf[i, t] * wq[o, i].
    # 1/sqrt(d_k) is pre-folded into wq/bq at trace time.
    q = jax.lax.dot_general(
        xq_bf, wq_ref[...], (((0,), (1,)), ((), ())),
        preferred_element_type=jnp.float32) + bq_ref[...]            # (TQ, C)

    for hh in range(heads):  # static unroll (heads is small)
        r0 = hh * d_k
        qh = q[:, r0:r0 + d_k].astype(jnp.bfloat16)                  # (TQ, d_k)
        kh = head_k(r0)                                              # (d_k, S)
        vh = head_v(r0)                                              # (d_k, S)

        # scores[t, s] = sum_d q[t, d] k[d, s]   (scale already folded in)
        s_ = jax.lax.dot_general(qh, kh, (((1,), (0,)), ((), ())),
                                 preferred_element_type=jnp.float32)  # (TQ, S)
        m = jnp.max(s_, axis=-1, keepdims=True)
        p = jnp.exp(s_ - m)
        l = jnp.sum(p, axis=-1, keepdims=True)
        p = (p * pl.reciprocal(l, approx=True)).astype(jnp.bfloat16)

        # oh[d, t] = sum_s vh[d, s] p[t, s]      (transposed-RHS matmul)
        oh = jax.lax.dot_general(vh, p, (((1,), (1,)), ((), ())),
                                 preferred_element_type=jnp.float32)  # (d_k,TQ)
        concat_ref[r0:r0 + d_k, :] = oh       # head-concat via sublane offsets

    # Output projection, still feature-major -> lane-dense (C, TQ) store.
    out = jnp.dot(wo_ref[...], concat_ref[...].astype(jnp.bfloat16),
                  preferred_element_type=jnp.float32) + bo_ref[...]   # (C, TQ)
    o_ref[0] = out.astype(o_ref.dtype)


# ---------------------------------------------------------------------------
# VMEM accounting + query-tile selection
# ---------------------------------------------------------------------------
def _vmem_estimate(c, s, tq, pos_enc, multi_tile):
    est = 0
    est += 2 * c * s * 4                       # x block, f32, double-buffered
    if pos_enc:
        est += 2 * c * s * 2                   # pe block, bf16
    est += 2 * (4 * c * c * 2)                 # wq + wkv(2C,C) + wo, bf16
    est += 2 * (4 * c * 4 + 128)               # biases, f32 (padded)
    est += 2 * c * tq * 4                      # output block, f32
    est += c * tq * 4                          # concat scratch
    if multi_tile:
        est += 2 * c * s * 4 + c * s * 2       # kv (f32) + x_bf (bf16) scratch
    est += tq * c * 4                          # q temporary
    est += 3 * tq * s * 4                      # score/prob temporaries
    return est


def _choose_tq(c, s, pos_enc, budget=24 * 1024 * 1024):
    # Prefer TQ == S (no redundant per-tile work, fewest grid steps); fall back
    # to the largest multiple-of-128 divisor of S that fits the VMEM budget.
    cands = [s]
    t = (s // 128) * 128
    while t >= 128:
        if t < s and s % t == 0:
            cands.append(t)
        t -= 128
    for tq in cands:
        if _vmem_estimate(c, s, tq, pos_enc, multi_tile=(tq != s)) <= budget:
            return tq
    return cands[-1]


# ---------------------------------------------------------------------------
# Wrapper: MHSABlock.forward
# ---------------------------------------------------------------------------
def mhsa_block(x, params, heads, pos_enc=True):
    b, c, h, w = x.shape
    assert c % heads == 0, "d_model must be divisible by heads"
    s = h * w
    d_k = c // heads

    tq = _choose_tq(c, s, pos_enc)
    n_q = s // tq
    multi_tile = n_q > 1

    # --- parameter packing (PyTorch orientation: W (out, in), b (out,)) ----
    wq, bq, wk, bk, wv, bv, wo, bo = params
    scale = 1.0 / math.sqrt(d_k)                   # fold 1/sqrt(d_k) into Q
    wq_bf = (wq * scale).astype(jnp.bfloat16)                        # (C, C)
    bq_row = (bq * scale).astype(jnp.float32)[None, :]               # (1, C)
    wkv_bf = jnp.concatenate([wk, wv], axis=0).astype(jnp.bfloat16)  # (2C, C)
    bkv_c = jnp.concatenate([bk, bv], axis=0).astype(jnp.float32)[:, None]
    wo_bf = wo.astype(jnp.bfloat16)                                  # (C, C)
    bo_c = bo.astype(jnp.float32)[:, None]                           # (C, 1)

    # Feature-major activations: pure reshape, no transpose / no pe add here.
    x_cs = x.reshape(b, c, s)

    inputs = [x_cs]
    in_specs = [pl.BlockSpec((1, c, s), lambda i, j: (i, 0, 0))]     # x (C, S)
    if pos_enc:
        assert c % 4 == 0, "d_model must be divisible by 4 for 2-D pos. enc."
        pe_bf = positional_encoding_2d(c, h, w, jnp.float32)
        pe_bf = pe_bf.reshape(c, s).astype(jnp.bfloat16)
        inputs.append(pe_bf)
        in_specs.append(pl.BlockSpec((c, s), lambda i, j: (0, 0)))   # pos. enc
    inputs += [wq_bf, bq_row, wkv_bf, bkv_c, wo_bf, bo_c]
    in_specs += [
        pl.BlockSpec((c, c), lambda i, j: (0, 0)),                   # wq
        pl.BlockSpec((1, c), lambda i, j: (0, 0)),                   # bq
        pl.BlockSpec((2 * c, c), lambda i, j: (0, 0)),               # wk|wv
        pl.BlockSpec((2 * c, 1), lambda i, j: (0, 0)),               # bk|bv
        pl.BlockSpec((c, c), lambda i, j: (0, 0)),                   # wo
        pl.BlockSpec((c, 1), lambda i, j: (0, 0)),                   # bo
    ]

    scratch = [pltpu.VMEM((c, tq), jnp.float32)]                     # concat
    if multi_tile:
        scratch += [pltpu.VMEM((2 * c, s), jnp.float32),             # K|V cache
                    pltpu.VMEM((c, s), jnp.bfloat16)]                # x + pe

    est = _vmem_estimate(c, s, tq, pos_enc, multi_tile)
    vmem_limit = int(min(max(2 * est, 16 * 1024 * 1024), 40 * 1024 * 1024))

    kernel = functools.partial(_mhsa_kernel, heads=heads, d_k=d_k, d_model=c,
                               tq=tq, pos_enc=pos_enc, multi_tile=multi_tile)

    out = pl.pallas_call(
        kernel,
        out_shape=jax.ShapeDtypeStruct((b, c, s), x.dtype),
        grid_spec=pltpu.PrefetchScalarGridSpec(
            num_scalar_prefetch=0,
            grid=(b, n_q),
            in_specs=in_specs,
            out_specs=pl.BlockSpec((1, c, tq), lambda i, j: (i, 0, j)),
            scratch_shapes=scratch,
        ),
        compiler_params=pltpu.CompilerParams(
            # Batch axis parallel (megacore); query-tile axis must be
            # sequential so the per-batch K/V scratch can be reused.
            dimension_semantics=("parallel", "arbitrary"),
            vmem_limit_bytes=vmem_limit,
        ),
    )(*inputs)

    return out.reshape(b, c, h, w)


# ---------------------------------------------------------------------------
# Pure-JAX f32 reference (sanity check)
# ---------------------------------------------------------------------------
def mhsa_block_ref(x, params, heads, pos_enc=True):
    b, c, h, w = x.shape
    s = h * w
    d_k = c // heads
    wq, bq, wk, bk, wv, bv, wo, bo = params
    x2 = (x + positional_encoding_2d(c, h, w, x.dtype)[None]) if pos_enc else x
    x2 = x2.reshape(b, c, s).transpose(0, 2, 1)                   # (B, S, C)
    q = (x2 @ wq.T + bq).reshape(b, s, heads, d_k).transpose(0, 2, 1, 3)
    k = (x2 @ wk.T + bk).reshape(b, s, heads, d_k).transpose(0, 2, 1, 3)
    v = (x2 @ wv.T + bv).reshape(b, s, heads, d_k).transpose(0, 2, 1, 3)
    scores = jnp.einsum("bhqd,bhkd->bhqk", q, k) / math.sqrt(d_k)
    scores = jax.nn.softmax(scores, axis=-1)
    o = jnp.einsum("bhqk,bhkd->bhqd", scores, v)
    o = o.transpose(0, 2, 1, 3).reshape(b, s, c)
    o = o @ wo.T + bo
    return o.transpose(0, 2, 1).reshape(b, c, h, w)


# ---------------------------------------------------------------------------
# Deterministic parameter init (nn.Linear shapes: W (out, in), b (out,))
# ---------------------------------------------------------------------------
def init_params(key, d_model, dtype=jnp.float32):
    keys = jax.random.split(key, 8)
    bound = 1.0 / math.sqrt(d_model)

    def lin(kw, kb):
        w = jax.random.uniform(kw, (d_model, d_model), dtype,
                               minval=-bound, maxval=bound)   # (out, in)
        b = jax.random.uniform(kb, (d_model,), dtype,
                               minval=-bound, maxval=bound)
        return w, b

    wq, bq = lin(keys[0], keys[1])
    wk, bk = lin(keys[2], keys[3])
    wv, bv = lin(keys[4], keys[5])
    wo, bo = lin(keys[6], keys[7])
    return (wq, bq, wk, bk, wv, bv, wo, bo)


if __name__ == "__main__":
    # d_model = C = 32 (divisible by 4 and by heads), S = 16*16 = 256.
    # TQ is chosen == S, so grid = (B, 1): K/V projection + PE add run exactly
    # once per batch.
    B, C, H, W = 2, 32, 16, 16
    HEADS = 4

    key = jax.random.PRNGKey(0)
    kx, kp = jax.random.split(key)
    x = jax.random.normal(kx, (B, C, H, W), dtype=jnp.float32)
    params = init_params(kp, C)

    # TODO(synk): nn.Dropout (p=0.0 in this block) is identity at inference
    # and is omitted.
    fwd = jax.jit(functools.partial(mhsa_block, heads=HEADS, pos_enc=True))
    out = jax.block_until_ready(fwd(x, params))

    ref = jax.block_until_ready(mhsa_block_ref(x, params, HEADS, pos_enc=True))
    assert out.shape == (B, C, H, W)
    err = float(jnp.max(jnp.abs(out - ref)))
    # bf16 MXU inputs, bf16 positional encoding and approx EUP reciprocal vs a
    # pure-f32 reference -> allow a bf16-level tolerance.
    assert err < 3e-2, f"mismatch vs JAX reference (max abs err {err:.3e})"

    print("KERNEL_OK")
</pallas_src>

<mosaic_0001>
module attributes {stable_mosaic.version = 11 : i64} {
  func.func @_mhsa_kernel(%arg0: i32, %arg1: i32, %arg2: memref<1x32x256xf32, #tpu.memory_space<vmem>>, %arg3: memref<32x256xbf16, #tpu.memory_space<vmem>>, %arg4: memref<32x32xbf16, #tpu.memory_space<vmem>>, %arg5: memref<1x32xf32, #tpu.memory_space<vmem>>, %arg6: memref<64x32xbf16, #tpu.memory_space<vmem>>, %arg7: memref<64x1xf32, #tpu.memory_space<vmem>>, %arg8: memref<32x32xbf16, #tpu.memory_space<vmem>>, %arg9: memref<32x1xf32, #tpu.memory_space<vmem>>, %arg10: memref<1x32x256xf32, #tpu.memory_space<vmem>>, %arg11: memref<32x256xf32, #tpu.memory_space<vmem>>) attributes {dimension_semantics = [#tpu.dimension_semantics<parallel>, #tpu.dimension_semantics<arbitrary>], iteration_bounds = array<i64: 2, 1>, scalar_prefetch = 0 : i64, scratch_operands = 1 : i64, tpu.core_type = #tpu.core_type<tc>, window_params = [{transform_indices = @transform_0, window_bounds = array<i64: 1, 32, 256>}, {pipeline_mode = #tpu.pipeline_mode<synchronous>, transform_indices = @transform_1, window_bounds = array<i64: 32, 256>}, {pipeline_mode = #tpu.pipeline_mode<synchronous>, transform_indices = @transform_2, window_bounds = array<i64: 32, 32>}, {pipeline_mode = #tpu.pipeline_mode<synchronous>, transform_indices = @transform_3, window_bounds = array<i64: 1, 32>}, {pipeline_mode = #tpu.pipeline_mode<synchronous>, transform_indices = @transform_4, window_bounds = array<i64: 64, 32>}, {pipeline_mode = #tpu.pipeline_mode<synchronous>, transform_indices = @transform_5, window_bounds = array<i64: 64, 1>}, {pipeline_mode = #tpu.pipeline_mode<synchronous>, transform_indices = @transform_6, window_bounds = array<i64: 32, 32>}, {pipeline_mode = #tpu.pipeline_mode<synchronous>, transform_indices = @transform_7, window_bounds = array<i64: 32, 1>}, {transform_indices = @transform_8, window_bounds = array<i64: 1, 32, 256>}]} {
    %c0 = arith.constant 0 : index
    %c0_0 = arith.constant 0 : index
    %c0_1 = arith.constant 0 : index
    %0 = vector.load %arg2[%c0, %c0_0, %c0_1] : memref<1x32x256xf32, #tpu.memory_space<vmem>>, vector<1x32x256xf32>
    %1 = vector.shape_cast %0 : vector<1x32x256xf32> to vector<32x256xf32>
    %c0_2 = arith.constant 0 : index
    %c0_3 = arith.constant 0 : index
    %2 = vector.load %arg3[%c0_2, %c0_3] : memref<32x256xbf16, #tpu.memory_space<vmem>>, vector<32x256xbf16>
    %3 = arith.extf %2 : vector<32x256xbf16> to vector<32x256xf32>
    %4 = arith.addf %1, %3 : vector<32x256xf32>
    %5 = arith.truncf %4 : vector<32x256xf32> to vector<32x256xbf16>
    %c0_4 = arith.constant 0 : index
    %c0_5 = arith.constant 0 : index
    %6 = vector.load %arg6[%c0_4, %c0_5] : memref<64x32xbf16, #tpu.memory_space<vmem>>, vector<64x32xbf16>
    %cst = arith.constant dense<0.000000e+00> : vector<64x256xf32>
    %7 = tpu.matmul %6, %5, %cst {dimension_numbers = #tpu.dot_dimension_numbers<[1], [0], [0], [1], [0, 0, 1, 1], [], []>} : vector<64x32xbf16>, vector<32x256xbf16>, vector<64x256xf32> -> vector<64x256xf32>
    %c0_6 = arith.constant 0 : index
    %c0_7 = arith.constant 0 : index
    %8 = vector.load %arg7[%c0_6, %c0_7] : memref<64x1xf32, #tpu.memory_space<vmem>>, vector<64x1xf32>
    %9 = vector.broadcast %8 : vector<64x1xf32> to vector<64x256xf32>
    %10 = arith.addf %7, %9 : vector<64x256xf32>
    %c0_8 = arith.constant 0 : index
    %c0_9 = arith.constant 0 : index
    %11 = vector.load %arg4[%c0_8, %c0_9] : memref<32x32xbf16, #tpu.memory_space<vmem>>, vector<32x32xbf16>
    %cst_10 = arith.constant dense<0.000000e+00> : vector<256x32xf32>
    %12 = tpu.matmul %5, %11, %cst_10 {dimension_numbers = #tpu.dot_dimension_numbers<[0], [1], [1], [0], [0, 1, 1, 0], [], []>} : vector<32x256xbf16>, vector<32x32xbf16>, vector<256x32xf32> -> vector<256x32xf32>
    %c0_11 = arith.constant 0 : index
    %c0_12 = arith.constant 0 : index
    %13 = vector.load %arg5[%c0_11, %c0_12] : memref<1x32xf32, #tpu.memory_space<vmem>>, vector<1x32xf32>
    %14 = vector.broadcast %13 : vector<1x32xf32> to vector<256x32xf32>
    %15 = arith.addf %12, %14 : vector<256x32xf32>
    %16 = vector.extract_strided_slice %15 {offsets = [0, 0], sizes = [256, 8], strides = [1, 1]} : vector<256x32xf32> to vector<256x8xf32>
    %17 = arith.truncf %16 : vector<256x8xf32> to vector<256x8xbf16>
    %18 = vector.extract_strided_slice %10 {offsets = [0, 0], sizes = [8, 256], strides = [1, 1]} : vector<64x256xf32> to vector<8x256xf32>
    %19 = arith.truncf %18 : vector<8x256xf32> to vector<8x256xbf16>
    %20 = vector.extract_strided_slice %10 {offsets = [32, 0], sizes = [8, 256], strides = [1, 1]} : vector<64x256xf32> to vector<8x256xf32>
    %21 = arith.truncf %20 : vector<8x256xf32> to vector<8x256xbf16>
    %cst_13 = arith.constant dense<0.000000e+00> : vector<256x256xf32>
    %22 = tpu.matmul %17, %19, %cst_13 {dimension_numbers = #tpu.dot_dimension_numbers<[1], [0], [0], [1], [0, 0, 1, 1], [], []>} : vector<256x8xbf16>, vector<8x256xbf16>, vector<256x256xf32> -> vector<256x256xf32>
    %cst_14 = arith.constant dense<0xFF800000> : vector<256xf32>
    %23 = vector.multi_reduction <maximumf>, %22, %cst_14 [1] : vector<256x256xf32> to vector<256xf32>
    %24 = vector.shape_cast %23 : vector<256xf32> to vector<256x1xf32>
    %25 = vector.broadcast %24 : vector<256x1xf32> to vector<256x256xf32>
    %26 = arith.subf %22, %25 : vector<256x256xf32>
    %27 = math.exp %26 : vector<256x256xf32>
    %cst_15 = arith.constant dense<0.000000e+00> : vector<256xf32>
    %28 = vector.multi_reduction <add>, %27, %cst_15 [1] : vector<256x256xf32> to vector<256xf32>
    %29 = vector.shape_cast %28 : vector<256xf32> to vector<256x1xf32>
    %30 = tpu.reciprocal %29 {approx = true} : vector<256x1xf32> -> vector<256x1xf32>
    %31 = vector.broadcast %30 : vector<256x1xf32> to vector<256x256xf32>
    %32 = arith.mulf %27, %31 : vector<256x256xf32>
    %33 = arith.truncf %32 : vector<256x256xf32> to vector<256x256xbf16>
    %cst_16 = arith.constant dense<0.000000e+00> : vector<8x256xf32>
    %34 = tpu.matmul %21, %33, %cst_16 {dimension_numbers = #tpu.dot_dimension_numbers<[1], [1], [0], [0], [0, 0, 1, 0], [], []>} : vector<8x256xbf16>, vector<256x256xbf16>, vector<8x256xf32> -> vector<8x256xf32>
    %c0_17 = arith.constant 0 : index
    %c0_18 = arith.constant 0 : index
    %35 = vector.load %arg11[%c0_17, %c0_18] : memref<32x256xf32, #tpu.memory_space<vmem>>, vector<8x256xf32>
    tpu.vector_store %arg11[%c0_17, %c0_18], %34 {strides = array<i32>} : memref<32x256xf32, #tpu.memory_space<vmem>>, vector<8x256xf32>,
    %36 = vector.extract_strided_slice %15 {offsets = [0, 8], sizes = [256, 8], strides = [1, 1]} : vector<256x32xf32> to vector<256x8xf32>
    %37 = arith.truncf %36 : vector<256x8xf32> to vector<256x8xbf16>
    %38 = vector.extract_strided_slice %10 {offsets = [8, 0], sizes = [8, 256], strides = [1, 1]} : vector<64x256xf32> to vector<8x256xf32>
    %39 = arith.truncf %38 : vector<8x256xf32> to vector<8x256xbf16>
    %40 = vector.extract_strided_slice %10 {offsets = [40, 0], sizes = [8, 256], strides = [1, 1]} : vector<64x256xf32> to vector<8x256xf32>
    %41 = arith.truncf %40 : vector<8x256xf32> to vector<8x256xbf16>
    %cst_19 = arith.constant dense<0.000000e+00> : vector<256x256xf32>
    %42 = tpu.matmul %37, %39, %cst_19 {dimension_numbers = #tpu.dot_dimension_numbers<[1], [0], [0], [1], [0, 0, 1, 1], [], []>} : vector<256x8xbf16>, vector<8x256xbf16>, vector<256x256xf32> -> vector<256x256xf32>
    %cst_20 = arith.constant dense<0xFF800000> : vector<256xf32>
    %43 = vector.multi_reduction <maximumf>, %42, %cst_20 [1] : vector<256x256xf32> to vector<256xf32>
    %44 = vector.shape_cast %43 : vector<256xf32> to vector<256x1xf32>
    %45 = vector.broadcast %44 : vector<256x1xf32> to vector<256x256xf32>
    %46 = arith.subf %42, %45 : vector<256x256xf32>
    %47 = math.exp %46 : vector<256x256xf32>
    %cst_21 = arith.constant dense<0.000000e+00> : vector<256xf32>
    %48 = vector.multi_reduction <add>, %47, %cst_21 [1] : vector<256x256xf32> to vector<256xf32>
    %49 = vector.shape_cast %48 : vector<256xf32> to vector<256x1xf32>
    %50 = tpu.reciprocal %49 {approx = true} : vector<256x1xf32> -> vector<256x1xf32>
    %51 = vector.broadcast %50 : vector<256x1xf32> to vector<256x256xf32>
    %52 = arith.mulf %47, %51 : vector<256x256xf32>
    %53 = arith.truncf %52 : vector<256x256xf32> to vector<256x256xbf16>
    %cst_22 = arith.constant dense<0.000000e+00> : vector<8x256xf32>
    %54 = tpu.matmul %41, %53, %cst_22 {dimension_numbers = #tpu.dot_dimension_numbers<[1], [1], [0], [0], [0, 0, 1, 0], [], []>} : vector<8x256xbf16>, vector<256x256xbf16>, vector<8x256xf32> -> vector<8x256xf32>
    %c8 = arith.constant 8 : index
    %c0_23 = arith.constant 0 : index
    %55 = vector.load %arg11[%c8, %c0_23] : memref<32x256xf32, #tpu.memory_space<vmem>>, vector<8x256xf32>
    tpu.vector_store %arg11[%c8, %c0_23], %54 {strides = array<i32>} : memref<32x256xf32, #tpu.memory_space<vmem>>, vector<8x256xf32>,
    %56 = vector.extract_strided_slice %15 {offsets = [0, 16], sizes = [256, 8], strides = [1, 1]} : vector<256x32xf32> to vector<256x8xf32>
    %57 = arith.truncf %56 : vector<256x8xf32> to vector<256x8xbf16>
    %58 = vector.extract_strided_slice %10 {offsets = [16, 0], sizes = [8, 256], strides = [1, 1]} : vector<64x256xf32> to vector<8x256xf32>
    %59 = arith.truncf %58 : vector<8x256xf32> to vector<8x256xbf16>
    %60 = vector.extract_strided_slice %10 {offsets = [48, 0], sizes = [8, 256], strides = [1, 1]} : vector<64x256xf32> to vector<8x256xf32>
    %61 = arith.truncf %60 : vector<8x256xf32> to vector<8x256xbf16>
    %cst_24 = arith.constant dense<0.000000e+00> : vector<256x256xf32>
    %62 = tpu.matmul %57, %59, %cst_24 {dimension_numbers = #tpu.dot_dimension_numbers<[1], [0], [0], [1], [0, 0, 1, 1], [], []>} : vector<256x8xbf16>, vector<8x256xbf16>, vector<256x256xf32> -> vector<256x256xf32>
    %cst_25 = arith.constant dense<0xFF800000> : vector<256xf32>
    %63 = vector.multi_reduction <maximumf>, %62, %cst_25 [1] : vector<256x256xf32> to vector<256xf32>
    %64 = vector.shape_cast %63 : vector<256xf32> to vector<256x1xf32>
    %65 = vector.broadcast %64 : vector<256x1xf32> to vector<256x256xf32>
    %66 = arith.subf %62, %65 : vector<256x256xf32>
    %67 = math.exp %66 : vector<256x256xf32>
    %cst_26 = arith.constant dense<0.000000e+00> : vector<256xf32>
    %68 = vector.multi_reduction <add>, %67, %cst_26 [1] : vector<256x256xf32> to vector<256xf32>
    %69 = vector.shape_cast %68 : vector<256xf32> to vector<256x1xf32>
    %70 = tpu.reciprocal %69 {approx = true} : vector<256x1xf32> -> vector<256x1xf32>
    %71 = vector.broadcast %70 : vector<256x1xf32> to vector<256x256xf32>
    %72 = arith.mulf %67, %71 : vector<256x256xf32>
    %73 = arith.truncf %72 : vector<256x256xf32> to vector<256x256xbf16>
    %cst_27 = arith.constant dense<0.000000e+00> : vector<8x256xf32>
    %74 = tpu.matmul %61, %73, %cst_27 {dimension_numbers = #tpu.dot_dimension_numbers<[1], [1], [0], [0], [0, 0, 1, 0], [], []>} : vector<8x256xbf16>, vector<256x256xbf16>, vector<8x256xf32> -> vector<8x256xf32>
    %c16 = arith.constant 16 : index
    %c0_28 = arith.constant 0 : index
    %75 = vector.load %arg11[%c16, %c0_28] : memref<32x256xf32, #tpu.memory_space<vmem>>, vector<8x256xf32>
    tpu.vector_store %arg11[%c16, %c0_28], %74 {strides = array<i32>} : memref<32x256xf32, #tpu.memory_space<vmem>>, vector<8x256xf32>,
    %76 = vector.extract_strided_slice %15 {offsets = [0, 24], sizes = [256, 8], strides = [1, 1]} : vector<256x32xf32> to vector<256x8xf32>
    %77 = arith.truncf %76 : vector<256x8xf32> to vector<256x8xbf16>
    %78 = vector.extract_strided_slice %10 {offsets = [24, 0], sizes = [8, 256], strides = [1, 1]} : vector<64x256xf32> to vector<8x256xf32>
    %79 = arith.truncf %78 : vector<8x256xf32> to vector<8x256xbf16>
    %80 = vector.extract_strided_slice %10 {offsets = [56, 0], sizes = [8, 256], strides = [1, 1]} : vector<64x256xf32> to vector<8x256xf32>
    %81 = arith.truncf %80 : vector<8x256xf32> to vector<8x256xbf16>
    %cst_29 = arith.constant dense<0.000000e+00> : vector<256x256xf32>
    %82 = tpu.matmul %77, %79, %cst_29 {dimension_numbers = #tpu.dot_dimension_numbers<[1], [0], [0], [1], [0, 0, 1, 1], [], []>} : vector<256x8xbf16>, vector<8x256xbf16>, vector<256x256xf32> -> vector<256x256xf32>
    %cst_30 = arith.constant dense<0xFF800000> : vector<256xf32>
    %83 = vector.multi_reduction <maximumf>, %82, %cst_30 [1] : vector<256x256xf32> to vector<256xf32>
    %84 = vector.shape_cast %83 : vector<256xf32> to vector<256x1xf32>
    %85 = vector.broadcast %84 : vector<256x1xf32> to vector<256x256xf32>
    %86 = arith.subf %82, %85 : vector<256x256xf32>
    %87 = math.exp %86 : vector<256x256xf32>
    %cst_31 = arith.constant dense<0.000000e+00> : vector<256xf32>
    %88 = vector.multi_reduction <add>, %87, %cst_31 [1] : vector<256x256xf32> to vector<256xf32>
    %89 = vector.shape_cast %88 : vector<256xf32> to vector<256x1xf32>
    %90 = tpu.reciprocal %89 {approx = true} : vector<256x1xf32> -> vector<256x1xf32>
    %91 = vector.broadcast %90 : vector<256x1xf32> to vector<256x256xf32>
    %92 = arith.mulf %87, %91 : vector<256x256xf32>
    %93 = arith.truncf %92 : vector<256x256xf32> to vector<256x256xbf16>
    %cst_32 = arith.constant dense<0.000000e+00> : vector<8x256xf32>
    %94 = tpu.matmul %81, %93, %cst_32 {dimension_numbers = #tpu.dot_dimension_numbers<[1], [1], [0], [0], [0, 0, 1, 0], [], []>} : vector<8x256xbf16>, vector<256x256xbf16>, vector<8x256xf32> -> vector<8x256xf32>
    %c24 = arith.constant 24 : index
    %c0_33 = arith.constant 0 : index
    %95 = vector.load %arg11[%c24, %c0_33] : memref<32x256xf32, #tpu.memory_space<vmem>>, vector<8x256xf32>
    tpu.vector_store %arg11[%c24, %c0_33], %94 {strides = array<i32>} : memref<32x256xf32, #tpu.memory_space<vmem>>, vector<8x256xf32>,
    %c0_34 = arith.constant 0 : index
    %c0_35 = arith.constant 0 : index
    %96 = vector.load %arg8[%c0_34, %c0_35] : memref<32x32xbf16, #tpu.memory_space<vmem>>, vector<32x32xbf16>
    %c0_36 = arith.constant 0 : index
    %c0_37 = arith.constant 0 : index
    %97 = vector.load %arg11[%c0_36, %c0_37] : memref<32x256xf32, #tpu.memory_space<vmem>>, vector<32x256xf32>
    %98 = arith.truncf %97 : vector<32x256xf32> to vector<32x256xbf16>
    %cst_38 = arith.constant dense<0.000000e+00> : vector<32x256xf32>
    %99 = tpu.matmul %96, %98, %cst_38 {dimension_numbers = #tpu.dot_dimension_numbers<[1], [0], [0], [1], [0, 0, 1, 1], [], []>} : vector<32x32xbf16>, vector<32x256xbf16>, vector<32x256xf32> -> vector<32x256xf32>
    %c0_39 = arith.constant 0 : index
    %c0_40 = arith.constant 0 : index
    %100 = vector.load %arg9[%c0_39, %c0_40] : memref<32x1xf32, #tpu.memory_space<vmem>>, vector<32x1xf32>
    %101 = vector.broadcast %100 : vector<32x1xf32> to vector<32x256xf32>
    %102 = arith.addf %99, %101 : vector<32x256xf32>
    %c0_41 = arith.constant 0 : index
    %c0_42 = arith.constant 0 : index
    %c0_43 = arith.constant 0 : index
    %103 = vector.load %arg10[%c0_41, %c0_42, %c0_43] : memref<1x32x256xf32, #tpu.memory_space<vmem>>, vector<1x32x256xf32>
    %104 = vector.shape_cast %103 : vector<1x32x256xf32> to vector<32x256xf32>
    %105 = vector.shape_cast %102 : vector<32x256xf32> to vector<1x32x256xf32>
    tpu.vector_store %arg10[%c0_41, %c0_42, %c0_43], %105 {strides = array<i32>} : memref<1x32x256xf32, #tpu.memory_space<vmem>>, vector<1x32x256xf32>,
    return
  }
  func.func @transform_0(%arg0: i32, %arg1: i32) -> (i32, i32, i32) {
    %c0_i32 = arith.constant 0 : i32
    %c0_i32_0 = arith.constant 0 : i32
    %c0_i32_1 = arith.constant 0 : i32
    return %arg0, %c0_i32, %c0_i32_0 : i32, i32, i32
  }
  func.func @transform_1(%arg0: i32, %arg1: i32) -> (i32, i32) {
    %c0_i32 = arith.constant 0 : i32
    %c0_i32_0 = arith.constant 0 : i32
    %c0_i32_1 = arith.constant 0 : i32
    return %c0_i32, %c0_i32_0 : i32, i32
  }
  func.func @transform_2(%arg0: i32, %arg1: i32) -> (i32, i32) {
    %c0_i32 = arith.constant 0 : i32
    %c0_i32_0 = arith.constant 0 : i32
    %c0_i32_1 = arith.constant 0 : i32
    return %c0_i32, %c0_i32_0 : i32, i32
  }
  func.func @transform_3(%arg0: i32, %arg1: i32) -> (i32, i32) {
    %c0_i32 = arith.constant 0 : i32
    %c0_i32_0 = arith.constant 0 : i32
    %c0_i32_1 = arith.constant 0 : i32
    return %c0_i32, %c0_i32_0 : i32, i32
  }
  func.func @transform_4(%arg0: i32, %arg1: i32) -> (i32, i32) {
    %c0_i32 = arith.constant 0 : i32
    %c0_i32_0 = arith.constant 0 : i32
    %c0_i32_1 = arith.constant 0 : i32
    return %c0_i32, %c0_i32_0 : i32, i32
  }
  func.func @transform_5(%arg0: i32, %arg1: i32) -> (i32, i32) {
    %c0_i32 = arith.constant 0 : i32
    %c0_i32_0 = arith.constant 0 : i32
    %c0_i32_1 = arith.constant 0 : i32
    return %c0_i32, %c0_i32_0 : i32, i32
  }
  func.func @transform_6(%arg0: i32, %arg1: i32) -> (i32, i32) {
    %c0_i32 = arith.constant 0 : i32
    %c0_i32_0 = arith.constant 0 : i32
    %c0_i32_1 = arith.constant 0 : i32
    return %c0_i32, %c0_i32_0 : i32, i32
  }
  func.func @transform_7(%arg0: i32, %arg1: i32) -> (i32, i32) {
    %c0_i32 = arith.constant 0 : i32
    %c0_i32_0 = arith.constant 0 : i32
    %c0_i32_1 = arith.constant 0 : i32
    return %c0_i32, %c0_i32_0 : i32, i32
  }
  func.func @transform_8(%arg0: i32, %arg1: i32) -> (i32, i32, i32) {
    %c0_i32 = arith.constant 0 : i32
    %c0_i32_0 = arith.constant 0 : i32
    return %arg0, %c0_i32, %arg1 : i32, i32, i32
  }
}

</mosaic_0001>

<bundles_post_ra>
// kernel: mhsa_block.1
= control target key start
LH: loop header
LB: loop body
LE: loop exit
PB: predicated region body
PF: predicated region fallthrough
CT: control target
= control target key end

     0   :  { %s5391_s27 = smov 0   ;;  %s5393_s28 = smov 0   ;;  %s8064_s0 = inlined_call_operand.vmem [shape: f32[2,32,256], index: 0, kind: input, shape index: {}]   ;;  %s8065_s1 = inlined_call_operand.vmem [shape: bf16[32,256], index: 1, kind: input, shape index: {}]   ;;  %s8066_s2 = inlined_call_operand.vmem [shape: bf16[32,32], index: 2, kind: input, shape index: {}]   ;;  %s8067_s3 = inlined_call_operand.vmem [shape: f32[1,32], index: 3, kind: input, shape index: {}]   ;;  %s8068_s4 = inlined_call_operand.vmem [shape: bf16[64,32], index: 4, kind: input, shape index: {}]   ;;  %s8069_s5 = inlined_call_operand.vmem [shape: f32[64,1], index: 5, kind: input, shape index: {}]   ;;  %s8070_s6 = inlined_call_operand.vmem [shape: bf16[32,32], index: 6, kind: input, shape index: {}]   ;;  %s8071_s7 = inlined_call_operand.vmem [shape: f32[32,1], index: 7, kind: input, shape index: {}]   ;;  %s8072_s8 = inlined_call_operand.vmem [shape: f32[2,32,256], index: 8, kind: output, shape index: {}]  }
   0x1   :  { %s5395_s29 = smov 0  }
   0x2 LB: > { %s30_s30 = sadd.s32 1, %s5336_s28  ;;  %p4348_p0 = scmp.ge.s32.totalorder %s5340_s29, 1  ;;  %s5340_s29 = sphi %s5395_s29, %s18_s29   ;;  %s5336_s28 = sphi %s5393_s28, %s8583_s28   ;;  %s5332_s27 = sphi %s5391_s27, %s8582_s27  }
   0x3   : > { %p32_p1 = scmp.ge.s32.totalorder %s30_s30, 2  ;;  %p276_p2 = scmp.lt.s32.totalorder %s5340_s29, 3 }
   0x5   : > { %s8585_s30 = smov (%p32_p1, %s30_s30), 0  ;;  %p277_p3 = pnand %p4348_p0, %p276_p2 }
   0x7   : > { %280 = sbr.rel (%p277_p3) target bundleno = 3750 (0xea6), region = 52 }
   0xe   : > { %p314_p4 = scmp.lt.s32.totalorder %s5332_s27, 1  ;;  %v338_v0 = vld [vmem:[%s8065_s1] sm:$0xff]  ;;  %v339_v1 = vld [vmem:[%s8065_s1 + $0x8] sm:$0xff]  ;;  %v340_v2 = vld [vmem:[%s8065_s1 + $0x10] sm:$0xff]  ;;  %v8073_v4 = vmov 0   ;;  %vm438_vm0 = vcmask 261120  }
   0xf   : > { %v341_v3 = vld [vmem:[%s8065_s1 + $0x18] sm:$0xff]  ;;  %483 = vmatprep.mubr.bf16.mxu0 %v8073_v4  ;;  %v342_v5 = vunpack.c.l.bf16 %v338_v0  ;;  %v344_v6 = vunpack.c.l.bf16 %v339_v1  ;;  %v346_v7 = vunpack.c.l.bf16 %v340_v2  ;;  %v343_v9 = vunpack.c.h.bf16 %v338_v0  ;;  %v4543_v33 = vld [vmem:[%s8066_s2] sm:$0xff]   ;;  %v4546_v36 = vld [vmem:[%s8066_s2 + $0x8] sm:$0xff]   ;;  %s5343_s22 = smov 120   ;;  %s5344_s9 = smov 112  }
  0x10   : > { %s8587_s27 = smov (!%p314_p4, %s5332_s27), 1  ;;  %v348_v8 = vunpack.c.l.bf16 %v341_v3  ;;  %v345_v10 = vunpack.c.h.bf16 %v339_v1  ;;  %v347_v11 = vunpack.c.h.bf16 %v340_v2  ;;  %v349_v12 = vunpack.c.h.bf16 %v341_v3  ;;  %v4542_v34 = vld [vmem:[%s8068_s4] sm:$0xff]   ;;  %v4544_v37 = vld [vmem:[%s8068_s4 + $0x8] sm:$0xff]   ;;  %v4545_v39 = vld [vmem:[%s8068_s4 + $0x10] sm:$0xff]   ;;  %s5345_s14 = smov 104  }
  0x11   : > { %s4454_s17 = sshll.u32 %s8587_s27, 6  ;;  %v626_v35 = vsel %vm438_vm0, %v4543_v33, 0  ;;  %v629_v38 = vsel %vm438_vm0, %v4546_v36, 0  ;;  %v4547_v40 = vld [vmem:[%s8068_s4 + $0x18] sm:$0xff]   ;;  %v370_v41 = vld [vmem:[%s8069_s5] sm:$0xff]  ;;  %vm861_vm1 = vcmask 1043456  }
  0x12   : > { %s318_s20 = scalar_lea.vmem %s8064_s0, %s4454_s17  ;;  %vm812_vm2 = vcmask 64512   ;;  %s327_s16 = scalar_lea.vmem %s8072_s8, %s4454_s17 }
  0x13   : > { %v330_v13 = vld [vmem:[%s318_s20] sm:$0xff]  ;;  %v332_v14 = vld [vmem:[%s318_s20 + $0x10] sm:$0xff]  ;;  %v331_v20 = vld [vmem:[%s318_s20 + $0x8] sm:$0xff] }
  0x14   : > { %v334_v15 = vld [vmem:[%s318_s20 + $0x20] sm:$0xff]  ;;  %v350_v16 = vadd.f32 %v342_v5, %v330_v13  ;;  %v352_v17 = vadd.f32 %v344_v6, %v332_v14  ;;  %v336_v18 = vld [vmem:[%s318_s20 + $0x30] sm:$0xff]  ;;  %v333_v21 = vld [vmem:[%s318_s20 + $0x18] sm:$0xff]  ;;  %v351_v23 = vadd.f32 %v343_v9, %v331_v20 }
  0x15   : > { %v354_v19 = vadd.f32 %v346_v7, %v334_v15  ;;  %v356_v22 = vadd.f32 %v348_v8, %v336_v18  ;;  %v353_v24 = vadd.f32 %v345_v10, %v333_v21  ;;  %v335_v25 = vld [vmem:[%s318_s20 + $0x28] sm:$0xff]  ;;  %v337_v26 = vld [vmem:[%s318_s20 + $0x38] sm:$0xff]  ;;  %v5514_v18 = vld [vmem:[%s8067_s3] ss:$0 sm:$0xff] }
  0x16   : > { %v358_v27 = vpack.c.bf16 %v352_v17, %v350_v16  ;;  %v355_v28 = vadd.f32 %v347_v11, %v335_v25  ;;  %v357_v29 = vadd.f32 %v349_v12, %v337_v26 }
  0x17   : > { %v359_v30 = vpack.c.bf16 %v353_v24, %v351_v23  ;;  %v360_v31 = vpack.c.bf16 %v356_v22, %v354_v19 }
  0x18   : > { %535 = vxpose.xlu0.c.b16.start [1/2] (short) %v358_v27, 128  ;;  %v361_v32 = vpack.c.bf16 %v357_v29, %v355_v28 }
  0x19   : > { %451 = vmatprep.subr.bf16.mxu0 %v359_v30  ;;  %551 = vxpose.xlu1.c.b16.start [1/2] (short) %v359_v30, 128 }
  0x1a   : > { %452 = vmatpush1.bf16.msra.mxu0 %v358_v27 }
  0x1b   : > { %453 = vmatprep.subr.bf16.mxu0 %v361_v32 }
  0x1c   : > { %536 = vxpose.xlu0.c.b16.end [2/2] (short) %v360_v31, 128 }
  0x1d   : > { %552 = vxpose.xlu1.c.b16.end [2/2] (short) %v361_v32, 128 }
  0x1e   : > { %454 = vmatpush1.bf16.msra.mxu0 %v360_v31 }
  0x1f   : > { %4510 = vmatprep.subr.msk.bf16.mxu0 %vm438_vm0, %v4543_v33 }
  0x21   : > { %4357 = vmatmul.mubr.msk.bf16.vlgmr.msra.gmra.mrb[0].mxu0 %vm438_vm0, %v4542_v34  ;;  %4541 = vset.pattern.permute.xlu1 %v8073_v4 }
  0x22   : > { %493 = vmatprep.mubr.bf16.mxu0 %v8073_v4 }
  0x25   : > { %4540 = vset.pattern.permute.xlu0 %v8073_v4 }
  0x27   : > { %4475 = vmatpush3.bf16.xpose.msra.mxu0 %v626_v35 }
  0x28   : > { %4511 = vmatprep.subr.msk.bf16.mxu0 %vm438_vm0, %v4546_v36 }
  0x29   : > { %4358 = vmatmul.mubr.msk.bf16.gmra.mrb[4].mxu0 %vm438_vm0, %v4544_v37 }
  0x2a   : > { %503 = vmatprep.mubr.bf16.mxu0 %v8073_v4 }
  0x2f   : > { %4477 = vmatpush3.bf16.xpose.msra.mxu0 %v629_v38 }
  0x31   : > { %4359 = vmatmul.mubr.msk.bf16.gmra.mrb[8].mxu0 %vm438_vm0, %v4545_v39 }
  0x32   : > { %513 = vmatprep.mubr.bf16.mxu0 %v8073_v4 }
  0x39   : > { %4360 = vmatmul.mubr.msk.bf16.gmra.mrb[12].mxu0 %vm438_vm0, %v4547_v40 }
  0x3d   : > { %380 = vperm.xlu0 %4540, %v370_v41  }
  0x7e   : > { %v543_v42 = vpop.trf.xlu0 }
  0x7f   : > { %4478 = vmatprep.mubr.msk.bf16.mxu0 %vm438_vm0, %v543_v42  ;;  %v559_v48 = vpop.trf.xlu1 }
  0x82   : > { %v544_v43 = vpop.trf.xlu0 }
  0x83   : > { %4479 = vmatmul.mubr.msk.bf16.vlgmr.msra.gmra.mrb[16].mxu0 %vm438_vm0, %v544_v43  ;;  %v560_v51 = vpop.trf.xlu1 }
  0x86   : > { %v545_v44 = vpop.trf.xlu0 }
  0x87   : > { %4482 = vmatprep.mubr.msk.bf16.mxu0 %vm438_vm0, %v545_v44  ;;  %v561_v52 = vpop.trf.xlu1 }
  0x8a   : > { %v546_v45 = vpop.trf.xlu0 }
  0x8b   : > { %4483 = vmatmul.mubr.msk.bf16.gmra.mrb[20].mxu0 %vm438_vm0, %v546_v45  ;;  %v562_v53 = vpop.trf.xlu1 }
  0x8e   : > { %v547_v46 = vpop.trf.xlu0 }
  0x8f   : > { %4486 = vmatprep.mubr.msk.bf16.mxu0 %vm438_vm0, %v547_v46  ;;  %v563_v54 = vpop.trf.xlu1 }
  0x92   : > { %v548_v47 = vpop.trf.xlu0 }
  0x93   : > { %4487 = vmatmul.mubr.msk.bf16.gmra.mrb[24].mxu0 %vm438_vm0, %v548_v47  ;;  %v564_v55 = vpop.trf.xlu1 }
  0x96   : > { %v549_v49 = vpop.trf.xlu0 }
  0x97   : > { %4490 = vmatprep.mubr.msk.bf16.mxu0 %vm438_vm0, %v549_v49  ;;  %v565_v56 = vpop.trf.xlu1 }
  0x9a   : > { %v550_v50 = vpop.trf.xlu0 }
  0x9b   : > { %4491 = vmatmul.mubr.msk.bf16.gmra.mrb[28].mxu0 %vm438_vm0, %v550_v50  ;;  %v566_v57 = vpop.trf.xlu1 }
  0x9c   : > { %4494 = vmatprep.mubr.msk.bf16.mxu0 %vm438_vm0, %v559_v48 }
  0xa3   : > { %4495 = vmatmul.mubr.msk.bf16.gmra.mrb[32].mxu0 %vm438_vm0, %v560_v51 }
  0xa4   : > { %4498 = vmatprep.mubr.msk.bf16.mxu0 %vm438_vm0, %v561_v52 }
  0xab   : > { %4499 = vmatmul.mubr.msk.bf16.gmra.mrb[36].mxu0 %vm438_vm0, %v562_v53 }
  0xac   : > { %4502 = vmatprep.mubr.msk.bf16.mxu0 %vm438_vm0, %v563_v54 }
  0xb3   : > { %4503 = vmatmul.mubr.msk.bf16.gmra.mrb[40].mxu0 %vm438_vm0, %v564_v55 }
  0xb4   : > { %4506 = vmatprep.mubr.msk.bf16.mxu0 %vm438_vm0, %v565_v56 }
  0xbb   : > { %4507 = vmatmul.mubr.msk.bf16.gmra.mrb[44].mxu0 %vm438_vm0, %v566_v57 }
  0xbc   : > { %900 = vmatprep.mubr.bf16.mxu0 %v8073_v4  ;;  %v381_v58 = vpop.permute.xlu0 %380 }
  0xf4   : > { %v485_v59 = vpop.f32.mrb[0].mxu0 }
  0xf5   : > { %v487_v60 = vpop.f32.mrb[1].mxu0  ;;  %v486_v61 = vadd.f32 %v485_v59, %v381_v58 }
  0xf6   : > { %v5481_v62 = vpop.f32.mrb[2].mxu0  ;;  %v488_v63 = vadd.f32 %v487_v60, %v381_v58 }
  0xf7   : > { %8222 = vst [vmem:[#allocation3_spill] sm:$0xff] %v5481_v62  ;;  %v808_v0 = vpack.c.bf16 %v486_v61, %v486_v61  ;;  %v5483_v1 = vpop.f32.mrb[3].mxu0 }
  0xf8   : > { %8223 = vst [vmem:[#allocation4_spill] sm:$0xff] %v5483_v1  ;;  %v809_v2 = vpack.c.bf16 %v488_v63, %v488_v63 }
  0xf9   : > { %v863_v3 = vsel %vm861_vm1, %v808_v0, 0 }
  0xfa   : > { %4380 = vmatprep.subr.msk.bf16.mxu0 %vm861_vm1, %v809_v2 }
  0xfb   : > { %869 = vmatpush1.bf16.msra.mxu0 %v863_v3 }
  0xfc   : > { %v5487_v5 = vpop.f32.mrb[4].mxu0 }
  0xfd   : > { %8224 = vst [vmem:[#allocation5_spill] sm:$0xff] %v5487_v5  ;;  %v5489_v6 = vpop.f32.mrb[5].mxu0 }
  0xfe   : > { %8225 = vst [vmem:[#allocation6_spill] sm:$0xff] %v5489_v6  ;;  %v5491_v7 = vpop.f32.mrb[6].mxu0 }
  0xff   : > { %8226 = vst [vmem:[#allocation7_spill] sm:$0xff] %v5491_v7  ;;  %v5493_v8 = vpop.f32.mrb[7].mxu0 }
 0x100   : > { %8227 = vst [vmem:[#allocation8_spill] sm:$0xff] %v5493_v8 }
 0x104   : > { %v5495_v9 = vpop.f32.mrb[8].mxu0 }
 0x105   : > { %8228 = vst [vmem:[#allocation9_spill] sm:$0xff] %v5495_v9  ;;  %v5497_v10 = vpop.f32.mrb[9].mxu0 }
 0x106   : > { %8229 = vst [vmem:[#allocation10_spill] sm:$0xff] %v5497_v10  ;;  %v5499_v11 = vpop.f32.mrb[10].mxu0 }
 0x107   : > { %8230 = vst [vmem:[#allocation11_spill] sm:$0xff] %v5499_v11  ;;  %v5501_v12 = vpop.f32.mrb[11].mxu0 }
 0x108   : > { %8231 = vst [vmem:[#allocation12_spill] sm:$0xff] %v5501_v12 }
 0x10c   : > { %v5503_v13 = vpop.f32.mrb[12].mxu0 }
 0x10d   : > { %8232 = vst [vmem:[#allocation13_spill] sm:$0xff] %v5503_v13  ;;  %v5505_v14 = vpop.f32.mrb[13].mxu0 }
 0x10e   : > { %8233 = vst [vmem:[#allocation14_spill] sm:$0xff] %v5505_v14  ;;  %v5507_v15 = vpop.f32.mrb[14].mxu0 }
 0x10f   : > { %8234 = vst [vmem:[#allocation15_spill] sm:$0xff] %v5507_v15  ;;  %v5509_v16 = vpop.f32.mrb[15].mxu0 }
 0x110   : > { %8235 = vst [vmem:[#allocation16_spill] sm:$0xff] %v5509_v16 }
 0x156   : > { %v4480_v17 = vpop.f32.mrb[16].mxu0 }
 0x157   : > { %v665_v19 = vpop.f32.mrb[17].mxu0  ;;  %v674_v21 = vadd.f32 %v4480_v17, %v5514_v18 }
 0x158   : > { %v4481_v20 = vpop.f32.mrb[18].mxu0  ;;  %v666_v24 = vadd.f32 %v5514_v18, %v665_v19 }
 0x159   : > { %v677_v22 = vadd.f32 %v4481_v20, %v5514_v18  ;;  %v668_v23 = vpop.f32.mrb[19].mxu0 }
 0x15a   : > { %v669_v25 = vadd.f32 %v5514_v18, %v668_v23 }
 0x15b   : > { %v5520_v26 = vpack.c.bf16 %v677_v22, %v674_v21 }
 0x15c   : > { %v5522_v27 = vpack.c.bf16 %v669_v25, %v666_v24 }
 0x15d   : > { %8236 = vst [vmem:[#allocation17_spill] sm:$0xff] %v5520_v26 }
 0x15e   : > { %8237 = vst [vmem:[#allocation18_spill] sm:$0xff] %v5522_v27  ;;  %4381 = vmatmul.mubr.msk.bf16.vlgmr.msra.gmra.mrb[48].mxu0 %vm812_vm2, %v5522_v27  ;;  %v4484_v28 = vpop.f32.mrb[20].mxu0 }
 0x15f   : > { %v690_v29 = vadd.f32 %v4484_v28, %v5514_v18  ;;  %v681_v30 = vpop.f32.mrb[21].mxu0  ;;  %910 = vmatprep.mubr.bf16.mxu0 %v8073_v4 }
 0x160   : > { %v682_v31 = vadd.f32 %v5514_v18, %v681_v30  ;;  %v4485_v32 = vpop.f32.mrb[22].mxu0 }
 0x161   : > { %v693_v33 = vadd.f32 %v4485_v32, %v5514_v18  ;;  %v684_v34 = vpop.f32.mrb[23].mxu0 }
 0x162   : > { %v685_v35 = vadd.f32 %v5514_v18, %v684_v34 }
 0x163   : > { %v5531_v36 = vpack.c.bf16 %v693_v33, %v690_v29 }
 0x164   : > { %v5533_v37 = vpack.c.bf16 %v685_v35, %v682_v31 }
 0x165   : > { %8238 = vst [vmem:[#allocation19_spill] sm:$0xff] %v5531_v36 }
 0x166   : > { %8239 = vst [vmem:[#allocation20_spill] sm:$0xff] %v5533_v37  ;;  %4382 = vmatmul.mubr.msk.bf16.gmra.mrb[52].mxu0 %vm812_vm2, %v5520_v26  ;;  %v4488_v38 = vpop.f32.mrb[24].mxu0 }
 0x167   : > { %920 = vmatprep.mubr.bf16.mxu0 %v8073_v4  ;;  %v706_v39 = vadd.f32 %v4488_v38, %v5514_v18  ;;  %v697_v40 = vpop.f32.mrb[25].mxu0 }
 0x168   : > { %v698_v41 = vadd.f32 %v5514_v18, %v697_v40  ;;  %v4489_v42 = vpop.f32.mrb[26].mxu0 }
 0x169   : > { %v709_v43 = vadd.f32 %v4489_v42, %v5514_v18  ;;  %v700_v44 = vpop.f32.mrb[27].mxu0 }
 0x16a   : > { %v701_v45 = vadd.f32 %v5514_v18, %v700_v44 }
 0x16b   : > { %v5542_v46 = vpack.c.bf16 %v709_v43, %v706_v39 }
 0x16c   : > { %v5544_v47 = vpack.c.bf16 %v701_v45, %v698_v41 }
 0x16d   : > { %8240 = vst [vmem:[#allocation21_spill] sm:$0xff] %v5542_v46 }
 0x16e   : > { %8241 = vst [vmem:[#allocation22_spill] sm:$0xff] %v5544_v47  ;;  %4383 = vmatmul.mubr.msk.bf16.gmra.mrb[56].mxu0 %vm812_vm2, %v5533_v37  ;;  %v4492_v48 = vpop.f32.mrb[28].mxu0 }
 0x16f   : > { %930 = vmatprep.mubr.bf16.mxu0 %v8073_v4  ;;  %v722_v49 = vadd.f32 %v4492_v48, %v5514_v18  ;;  %v713_v50 = vpop.f32.mrb[29].mxu0 }
 0x170   : > { %v714_v51 = vadd.f32 %v5514_v18, %v713_v50  ;;  %v4493_v52 = vpop.f32.mrb[30].mxu0 }
 0x171   : > { %v725_v53 = vadd.f32 %v4493_v52, %v5514_v18  ;;  %v716_v54 = vpop.f32.mrb[31].mxu0 }
 0x172   : > { %v717_v55 = vadd.f32 %v5514_v18, %v716_v54 }
 0x173   : > { %v5553_v56 = vpack.c.bf16 %v725_v53, %v722_v49 }
 0x174   : > { %v5555_v57 = vpack.c.bf16 %v717_v55, %v714_v51 }
 0x175   : > { %8242 = vst [vmem:[#allocation23_spill] sm:$0xff] %v5553_v56 }
 0x176   : > { %8243 = vst [vmem:[#allocation24_spill] sm:$0xff] %v5555_v57  ;;  %4384 = vmatmul.mubr.msk.bf16.gmra.mrb[60].mxu0 %vm812_vm2, %v5531_v36  ;;  %v4496_v58 = vpop.f32.mrb[32].mxu0 }
 0x177   : > { %940 = vmatprep.mubr.bf16.mxu0 %v8073_v4  ;;  %v738_v59 = vadd.f32 %v4496_v58, %v5514_v18  ;;  %v729_v60 = vpop.f32.mrb[33].mxu0 }
 0x178   : > { %v730_v61 = vadd.f32 %v5514_v18, %v729_v60  ;;  %v4497_v63 = vpop.f32.mrb[34].mxu0 }
 0x179   : > { %v741_v0 = vadd.f32 %v4497_v63, %v5514_v18  ;;  %v732_v2 = vpop.f32.mrb[35].mxu0 }
 0x17a   : > { %v733_v3 = vadd.f32 %v5514_v18, %v732_v2 }
 0x17b   : > { %v5564_v17 = vpack.c.bf16 %v741_v0, %v738_v59 }
 0x17c   : > { %v5566_v19 = vpack.c.bf16 %v733_v3, %v730_v61 }
 0x17d   : > { %8244 = vst [vmem:[#allocation25_spill] sm:$0xff] %v5564_v17 }
 0x17e   : > { %8245 = vst [vmem:[#allocation26_spill] sm:$0xff] %v5566_v19  ;;  %4385 = vmatmul.mubr.msk.bf16.gmra.mrb[64].mxu0 %vm812_vm2, %v5544_v47  ;;  %v4500_v20 = vpop.f32.mrb[36].mxu0 }
 0x17f   : > { %950 = vmatprep.mubr.bf16.mxu0 %v8073_v4  ;;  %v754_v21 = vadd.f32 %v4500_v20, %v5514_v18  ;;  %v745_v22 = vpop.f32.mrb[37].mxu0 }
 0x180   : > { %v746_v23 = vadd.f32 %v5514_v18, %v745_v22  ;;  %v4501_v24 = vpop.f32.mrb[38].mxu0 }
 0x181   : > { %v757_v25 = vadd.f32 %v4501_v24, %v5514_v18  ;;  %v748_v28 = vpop.f32.mrb[39].mxu0 }
 0x182   : > { %v749_v29 = vadd.f32 %v5514_v18, %v748_v28 }
 0x183   : > { %v5575_v30 = vpack.c.bf16 %v757_v25, %v754_v21 }
 0x184   : > { %v5577_v31 = vpack.c.bf16 %v749_v29, %v746_v23 }
 0x185   : > { %8246 = vst [vmem:[#allocation27_spill] sm:$0xff] %v5575_v30 }
 0x186   : > { %8247 = vst [vmem:[#allocation28_spill] sm:$0xff] %v5577_v31  ;;  %4386 = vmatmul.mubr.msk.bf16.gmra.mrb[68].mxu0 %vm812_vm2, %v5542_v46  ;;  %v4504_v32 = vpop.f32.mrb[40].mxu0 }
 0x187   : > { %960 = vmatprep.mubr.bf16.mxu0 %v8073_v4  ;;  %v770_v33 = vadd.f32 %v4504_v32, %v5514_v18  ;;  %v761_v34 = vpop.f32.mrb[41].mxu0 }
 0x188   : > { %v762_v35 = vadd.f32 %v5514_v18, %v761_v34  ;;  %v4505_v38 = vpop.f32.mrb[42].mxu0 }
 0x189   : > { %v773_v39 = vadd.f32 %v4505_v38, %v5514_v18  ;;  %v764_v40 = vpop.f32.mrb[43].mxu0 }
 0x18a   : > { %v765_v41 = vadd.f32 %v5514_v18, %v764_v40 }
 0x18b   : > { %v5586_v42 = vpack.c.bf16 %v773_v39, %v770_v33 }
 0x18c   : > { %v5588_v43 = vpack.c.bf16 %v765_v41, %v762_v35 }
 0x18d   : > { %8248 = vst [vmem:[#allocation29_spill] sm:$0xff] %v5586_v42 }
 0x18e   : > { %8249 = vst [vmem:[#allocation30_spill] sm:$0xff] %v5588_v43  ;;  %4387 = vmatmul.mubr.msk.bf16.gmra.mrb[72].mxu0 %vm812_vm2, %v5555_v57  ;;  %v4508_v44 = vpop.f32.mrb[44].mxu0 }
 0x18f   : > { %970 = vmatprep.mubr.bf16.mxu0 %v8073_v4  ;;  %v786_v45 = vadd.f32 %v4508_v44, %v5514_v18  ;;  %v777_v48 = vpop.f32.mrb[45].mxu0 }
 0x190   : > { %v778_v49 = vadd.f32 %v5514_v18, %v777_v48  ;;  %v4509_v50 = vpop.f32.mrb[46].mxu0 }
 0x191   : > { %v789_v51 = vadd.f32 %v4509_v50, %v5514_v18  ;;  %v780_v52 = vpop.f32.mrb[47].mxu0 }
 0x192   : > { %v781_v53 = vadd.f32 %v5514_v18, %v780_v52 }
 0x193   : > { %v5597_v54 = vpack.c.bf16 %v789_v51, %v786_v45 }
 0x194   : > { %v5599_v55 = vpack.c.bf16 %v781_v53, %v778_v49 }
 0x195   : > { %8250 = vst [vmem:[#allocation31_spill] sm:$0xff] %v5597_v54 }
 0x196   : > { %8251 = vst [vmem:[#allocation32_spill] sm:$0xff] %v5599_v55  ;;  %4388 = vmatmul.mubr.msk.bf16.gmra.mrb[76].mxu0 %vm812_vm2, %v5553_v56 }
 0x197   : > { %980 = vmatprep.mubr.bf16.mxu0 %v8073_v4 }
 0x19e   : > { %4389 = vmatmul.mubr.msk.bf16.gmra.mrb[80].mxu0 %vm812_vm2, %v5566_v19 }
 0x19f   : > { %990 = vmatprep.mubr.bf16.mxu0 %v8073_v4 }
 0x1a6   : > { %4390 = vmatmul.mubr.msk.bf16.gmra.mrb[84].mxu0 %vm812_vm2, %v5564_v17 }
 0x1a7   : > { %1000 = vmatprep.mubr.bf16.mxu0 %v8073_v4 }
 0x1ae   : > { %4391 = vmatmul.mubr.msk.bf16.gmra.mrb[88].mxu0 %vm812_vm2, %v5577_v31 }
 0x1af   : > { %1010 = vmatprep.mubr.bf16.mxu0 %v8073_v4 }
 0x1b6   : > { %4392 = vmatmul.mubr.msk.bf16.gmra.mrb[92].mxu0 %vm812_vm2, %v5575_v30 }
 0x1b7   : > { %1020 = vmatprep.mubr.bf16.mxu0 %v8073_v4 }
 0x1be   : > { %4393 = vmatmul.mubr.msk.bf16.gmra.mrb[96].mxu0 %vm812_vm2, %v5588_v43 }
 0x1bf   : > { %1030 = vmatprep.mubr.bf16.mxu0 %v8073_v4 }
 0x1c6   : > { %4394 = vmatmul.mubr.msk.bf16.gmra.mrb[100].mxu0 %vm812_vm2, %v5586_v42 }
 0x1c7   : > { %1040 = vmatprep.mubr.bf16.mxu0 %v8073_v4 }
 0x1ce   : > { %4395 = vmatmul.mubr.msk.bf16.gmra.mrb[104].mxu0 %vm812_vm2, %v5599_v55 }
 0x1cf   : > { %1050 = vmatprep.mubr.bf16.mxu0 %v8073_v4 }
 0x1d6   : > { %4396 = vmatmul.mubr.msk.bf16.gmra.mrb[108].mxu0 %vm812_vm2, %v5597_v54 }
 0x231   : > { %v5627_v18 = vpop.f32.mrb[48].mxu0 }
 0x232   : > { %v5629_v58 = vpop.f32.mrb[49].mxu0 }
 0x233   : > { %v5631_v59 = vpop.f32.mrb[50].mxu0  ;;  %v1061_v60 = vmax.f32 %v5627_v18, %v5629_v58 }
 0x234   : > { %v5635_v61 = vpop.f32.mrb[51].mxu0 }
 0x235   : > { %1062 = vmax.xlane.f32.xlu1 %v1061_v60  ;;  %v1064_v63 = vmax.f32 %v5631_v59, %v5635_v61 }
 0x237   : > { %1065 = vmax.xlane.f32.xlu0 %v1064_v63 }
 0x239   : > { %v5639_v0 = vpop.f32.mrb[52].mxu0 }
 0x23a   : > { %v5641_v2 = vpop.f32.mrb[53].mxu0 }
 0x23b   : > { %v5643_v3 = vpop.f32.mrb[54].mxu0  ;;  %v1067_v20 = vmax.f32 %v5639_v0, %v5641_v2 }
 0x23c   : > { %v5647_v21 = vpop.f32.mrb[55].mxu0 }
 0x23d   : > { %1068 = vmax.xlane.f32.xlu1 %v1067_v20  ;;  %v1070_v22 = vmax.f32 %v5643_v3, %v5647_v21 }
 0x241   : > { %1071 = vmax.xlane.f32.xlu1 %v1070_v22  ;;  %v5651_v23 = vpop.f32.mrb[56].mxu0 }
 0x242   : > { %v5653_v24 = vpop.f32.mrb[57].mxu0 }
 0x243   : > { %v5655_v25 = vpop.f32.mrb[58].mxu0  ;;  %v1073_v28 = vmax.f32 %v5651_v23, %v5653_v24 }
 0x244   : > { %v5659_v29 = vpop.f32.mrb[59].mxu0 }
 0x245   : > { %1074 = vmax.xlane.f32.xlu1 %v1073_v28  ;;  %v1076_v32 = vmax.f32 %v5655_v25, %v5659_v29 }
 0x249   : > { %1077 = vmax.xlane.f32.xlu1 %v1076_v32  ;;  %v5663_v33 = vpop.f32.mrb[60].mxu0 }
 0x24a   : > { %v5665_v34 = vpop.f32.mrb[61].mxu0 }
 0x24b   : > { %v5667_v35 = vpop.f32.mrb[62].mxu0  ;;  %v1079_v38 = vmax.f32 %v5663_v33, %v5665_v34 }
 0x24c   : > { %v5671_v39 = vpop.f32.mrb[63].mxu0 }
 0x24d   : > { %1080 = vmax.xlane.f32.xlu1 %v1079_v38  ;;  %v1082_v40 = vmax.f32 %v5667_v35, %v5671_v39 }
 0x251   : > { %1083 = vmax.xlane.f32.xlu1 %v1082_v40  ;;  %v5675_v41 = vpop.f32.mrb[64].mxu0 }
 0x252   : > { %v5677_v44 = vpop.f32.mrb[65].mxu0 }
 0x253   : > { %v5679_v45 = vpop.f32.mrb[66].mxu0  ;;  %v1085_v48 = vmax.f32 %v5675_v41, %v5677_v44 }
 0x254   : > { %v5683_v49 = vpop.f32.mrb[67].mxu0 }
 0x255   : > { %1086 = vmax.xlane.f32.xlu1 %v1085_v48  ;;  %v1088_v50 = vmax.f32 %v5679_v45, %v5683_v49 }
 0x257   : > { %1089 = vmax.xlane.f32.xlu0 %v1088_v50 }
 0x259   : > { %v5687_v51 = vpop.f32.mrb[68].mxu0 }
 0x25a   : > { %v5689_v52 = vpop.f32.mrb[69].mxu0 }
 0x25b   : > { %v5691_v53 = vpop.f32.mrb[70].mxu0  ;;  %v1091_v60 = vmax.f32 %v5687_v51, %v5689_v52 }
 0x25c   : > { %v5695_v63 = vpop.f32.mrb[71].mxu0 }
 0x25d   : > { %1092 = vmax.xlane.f32.xlu1 %v1091_v60  ;;  %v1094_v20 = vmax.f32 %v5691_v53, %v5695_v63 }
 0x25f   : > { %1095 = vmax.xlane.f32.xlu0 %v1094_v20 }
 0x261   : > { %v5699_v22 = vpop.f32.mrb[72].mxu0 }
 0x262   : > { %v5701_v28 = vpop.f32.mrb[73].mxu0 }
 0x263   : > { %v5703_v32 = vpop.f32.mrb[74].mxu0  ;;  %v1097_v38 = vmax.f32 %v5699_v22, %v5701_v28 }
 0x264   : > { %v5707_v40 = vpop.f32.mrb[75].mxu0 }
 0x265   : > { %1098 = vmax.xlane.f32.xlu1 %v1097_v38  ;;  %v1100_v48 = vmax.f32 %v5703_v32, %v5707_v40 }
 0x267   : > { %1101 = vmax.xlane.f32.xlu0 %v1100_v48 }
 0x269   : > { %v5711_v50 = vpop.f32.mrb[76].mxu0 }
 0x26a   : > { %v5713_v60 = vpop.f32.mrb[77].mxu0 }
 0x26b   : > { %v5715_v20 = vpop.f32.mrb[78].mxu0  ;;  %v1103_v4 = vmax.f32 %v5711_v50, %v5713_v60 }
 0x26c   : > { %v5719_v15 = vpop.f32.mrb[79].mxu0 }
 0x26d   : > { %1104 = vmax.xlane.f32.xlu1 %v1103_v4  ;;  %v1106_v16 = vmax.f32 %v5715_v20, %v5719_v15 }
 0x26f   : > { %1107 = vmax.xlane.f32.xlu0 %v1106_v16 }
 0x271   : > { %v5723_v38 = vpop.f32.mrb[80].mxu0 }
 0x272   : > { %v5725_v13 = vpop.f32.mrb[81].mxu0 }
 0x273   : > { %v5727_v48 = vpop.f32.mrb[82].mxu0  ;;  %v1109_v7 = vmax.f32 %v5723_v38, %v5725_v13 }
 0x274   : > { %v5731_v8 = vpop.f32.mrb[83].mxu0 }
 0x275   : > { %8252 = vst [vmem:[#allocation33_spill] sm:$0xff] %v5731_v8  ;;  %1110 = vmax.xlane.f32.xlu1 %v1109_v7  ;;  %v1112_v14 = vmax.f32 %v5727_v48, %v5731_v8 }
 0x277   : > { %1113 = vmax.xlane.f32.xlu0 %v1112_v14 }
 0x279   : > { %v5735_v4 = vpop.f32.mrb[84].mxu0 }
 0x27a   : > { %8253 = vst [vmem:[#allocation34_spill] sm:$0xff] %v5735_v4  ;;  %v5737_v11 = vpop.f32.mrb[85].mxu0 }
 0x27b   : > { %8254 = vst [vmem:[#allocation35_spill] sm:$0xff] %v5737_v11  ;;  %v5739_v16 = vpop.f32.mrb[86].mxu0  ;;  %v1115_v5 = vmax.f32 %v5735_v4, %v5737_v11 }
 0x27c   : > { %8255 = vst [vmem:[#allocation36_spill] sm:$0xff] %v5739_v16  ;;  %v5743_v6 = vpop.f32.mrb[87].mxu0 }
 0x27d   : > { %8256 = vst [vmem:[#allocation37_spill] sm:$0xff] %v5743_v6  ;;  %1116 = vmax.xlane.f32.xlu1 %v1115_v5  ;;  %v1118_v12 = vmax.f32 %v5739_v16, %v5743_v6 }
 0x27f   : > { %1119 = vmax.xlane.f32.xlu0 %v1118_v12 }
 0x281   : > { %v5747_v7 = vpop.f32.mrb[88].mxu0 }
 0x282   : > { %8257 = vst [vmem:[#allocation38_spill] sm:$0xff] %v5747_v7  ;;  %v5749_v9 = vpop.f32.mrb[89].mxu0 }
 0x283   : > { %8258 = vst [vmem:[#allocation39_spill] sm:$0xff] %v5749_v9  ;;  %v5751_v14 = vpop.f32.mrb[90].mxu0  ;;  %v1121_v62 = vmax.f32 %v5747_v7, %v5749_v9 }
 0x284   : > { %8259 = vst [vmem:[#allocation40_spill] sm:$0xff] %v5751_v14  ;;  %v5755_v1 = vpop.f32.mrb[91].mxu0 }
 0x285   : > { %8260 = vst [vmem:[#allocation41_spill] sm:$0xff] %v5755_v1  ;;  %1122 = vmax.xlane.f32.xlu1 %v1121_v62  ;;  %v1124_v10 = vmax.f32 %v5751_v14, %v5755_v1 }
 0x287   : > { %1125 = vmax.xlane.f32.xlu0 %v1124_v10 }
 0x289   : > { %v5759_v5 = vpop.f32.mrb[92].mxu0 }
 0x28a   : > { %8261 = vst [vmem:[#allocation42_spill] sm:$0xff] %v5759_v5  ;;  %v5761_v55 = vpop.f32.mrb[93].mxu0 }
 0x28b   : > { %8262 = vst [vmem:[#allocation43_spill] sm:$0xff] %v5761_v55  ;;  %v5763_v12 = vpop.f32.mrb[94].mxu0  ;;  %v1127_v54 = vmax.f32 %v5759_v5, %v5761_v55 }
 0x28c   : > { %8263 = vst [vmem:[#allocation44_spill] sm:$0xff] %v5763_v12  ;;  %v5767_v43 = vpop.f32.mrb[95].mxu0 }
 0x28d   : > { %8264 = vst [vmem:[#allocation45_spill] sm:$0xff] %v5767_v43  ;;  %1128 = vmax.xlane.f32.xlu1 %v1127_v54  ;;  %v1130_v42 = vmax.f32 %v5763_v12, %v5767_v43 }
 0x28f   : > { %1131 = vmax.xlane.f32.xlu0 %v1130_v42 }
 0x291   : > { %v5771_v62 = vpop.f32.mrb[96].mxu0 }
 0x292   : > { %v5773_v31 = vpop.f32.mrb[97].mxu0 }
 0x293   : > { %v5775_v10 = vpop.f32.mrb[98].mxu0 }
 0x294   : > { %v5779_v19 = vpop.f32.mrb[99].mxu0 }
 0x299   : > { %v5783_v57 = vpop.f32.mrb[100].mxu0 }
 0x29a   : > { %v5785_v54 = vpop.f32.mrb[101].mxu0 }
 0x29b   : > { %v5787_v56 = vpop.f32.mrb[102].mxu0 }
 0x29c   : > { %v5791_v47 = vpop.f32.mrb[103].mxu0 }
 0x2a1   : > { %v5795_v30 = vpop.f32.mrb[104].mxu0 }
 0x2a2   : > { %v5797_v37 = vpop.f32.mrb[105].mxu0 }
 0x2a3   : > { %v5799_v36 = vpop.f32.mrb[106].mxu0 }
 0x2a4   : > { %v5803_v26 = vpop.f32.mrb[107].mxu0 }
 0x2a9   : > { %v5807_v42 = vpop.f32.mrb[108].mxu0 }
 0x2aa   : > { %v5809_v43 = vpop.f32.mrb[109].mxu0 }
 0x2ab   : > { %v5811_v12 = vpop.f32.mrb[110].mxu0 }
 0x2ac   : > { %v5815_v55 = vpop.f32.mrb[111].mxu0 }
 0x2c2   : > { %v1063_v17 = vpop.xlane.xlu1 %1062 }
 0x2c3   : > { %v1157_v1 = vsub.f32 %v5627_v18, %v1063_v17  ;;  %v1158_v14 = vsub.f32 %v5629_v58, %v1063_v17 }
 0x2c4   : > { %v1066_v27 = vpop.xlane.xlu0 %1065 }
 0x2c5   : > { %v1221_v9 = vmul.f32 1.442695, %v1157_v1  ;;  %v1223_v7 = vmul.f32 1.442695, %v1158_v14  ;;  %v1159_v6 = vsub.f32 %v5631_v59, %v1066_v27  ;;  %v1160_v16 = vsub.f32 %v5635_v61, %v1066_v27 }
 0x2c7   : > { %4550 = vpow2.f32 %v1221_v9  ;;  %v1225_v11 = vmul.f32 1.442695, %v1159_v6  ;;  %v1227_v46 = vmul.f32 1.442695, %v1160_v16 }
 0x2c8   : > { %4552 = vpow2.f32 %v1223_v7 }
 0x2c9   : > { %4554 = vpow2.f32 %v1225_v11 }
 0x2ca   : > { %4556 = vpow2.f32 %v1227_v46  ;;  %v1069_v4 = vpop.xlane.xlu1 %1068 }
 0x2cb   : > { %v1161_v5 = vsub.f32 %v5639_v0, %v1069_v4  ;;  %v1162_v18 = vsub.f32 %v5641_v2, %v1069_v4 }
 0x2cd   : > { %v1229_v8 = vmul.f32 1.442695, %v1161_v5  ;;  %v1231_v17 = vmul.f32 1.442695, %v1162_v18 }
 0x2ce   : > { %v1072_v58 = vpop.xlane.xlu1 %1071 }
 0x2cf   : > { %4558 = vpow2.f32 %v1229_v8  ;;  %v1163_v1 = vsub.f32 %v5643_v3, %v1072_v58  ;;  %v1164_v59 = vsub.f32 %v5647_v21, %v1072_v58 }
 0x2d0   : > { %4560 = vpow2.f32 %v1231_v17  ;;  %v8265_v17 = vmax.f32 %v5771_v62, %v5773_v31 }
 0x2d1   : > { %v5827_v9 = vpop.eup %4550  ;;  %v1233_v6 = vmul.f32 1.442695, %v1163_v1  ;;  %v1235_v27 = vmul.f32 1.442695, %v1164_v59 }
 0x2d2   : > { %v5829_v11 = vpop.eup %4552  ;;  %v1075_v46 = vpop.xlane.xlu1 %1074 }
 0x2d3   : > { %v5831_v61 = vpop.eup %4554  ;;  %4562 = vpow2.f32 %v1233_v6  ;;  %v1165_v0 = vsub.f32 %v5651_v23, %v1075_v46  ;;  %v1166_v2 = vsub.f32 %v5653_v24, %v1075_v46  ;;  %v1349_v8 = vadd.f32 %v5829_v11, %v5827_v9 }
 0x2d4   : > { %v5837_v3 = vpop.eup %4556  ;;  %4564 = vpow2.f32 %v1235_v27 }
 0x2d5   : > { %v1237_v21 = vmul.f32 1.442695, %v1165_v0  ;;  %v1239_v4 = vmul.f32 1.442695, %v1166_v2  ;;  %1350 = vadd.xlane.f32.xlu1 %v1349_v8  ;;  %v1352_v16 = vadd.f32 %v5837_v3, %v5831_v61 }
 0x2d6   : > { %v1078_v7 = vpop.xlane.xlu1 %1077 }
 0x2d7   : > { %4566 = vpow2.f32 %v1237_v21  ;;  %v1167_v14 = vsub.f32 %v5655_v25, %v1078_v7  ;;  %v1168_v23 = vsub.f32 %v5659_v29, %v1078_v7  ;;  %1353 = vadd.xlane.f32.xlu0 %v1352_v16  ;;  %v8266_v29 = vmax.f32 %v5775_v10, %v5779_v19 }
 0x2d8   : > { %4568 = vpow2.f32 %v1239_v4 }
 0x2d9   : > { %v5843_v24 = vpop.eup %4558  ;;  %v1241_v5 = vmul.f32 1.442695, %v1167_v14  ;;  %v1243_v18 = vmul.f32 1.442695, %v1168_v23  ;;  %1134 = vmax.xlane.f32.xlu1 %v8265_v17  ;;  %v8267_v14 = vmax.f32 %v5783_v57, %v5785_v54 }
 0x2da   : > { %v5848_v58 = vpop.eup %4560  ;;  %v1081_v1 = vpop.xlane.xlu1 %1080 }
 0x2db   : > { %4570 = vpow2.f32 %v1241_v5  ;;  %v1169_v59 = vsub.f32 %v5663_v33, %v1081_v1  ;;  %v1170_v25 = vsub.f32 %v5665_v34, %v1081_v1  ;;  %1137 = vmax.xlane.f32.xlu0 %v8266_v29  ;;  %v1355_v6 = vadd.f32 %v5848_v58, %v5843_v24 }
 0x2dc   : > { %4572 = vpow2.f32 %v1243_v18 }
 0x2dd   : > { %v5857_v27 = vpop.eup %4562  ;;  %v1245_v46 = vmul.f32 1.442695, %v1169_v59  ;;  %v1247_v0 = vmul.f32 1.442695, %v1170_v25  ;;  %1356 = vadd.xlane.f32.xlu1 %v1355_v6 }
 0x2de   : > { %v5859_v2 = vpop.eup %4564  ;;  %v1084_v8 = vpop.xlane.xlu1 %1083 }
 0x2df   : > { %4574 = vpow2.f32 %v1245_v46  ;;  %v1171_v33 = vsub.f32 %v5667_v35, %v1084_v8  ;;  %v1172_v34 = vsub.f32 %v5671_v39, %v1084_v8  ;;  %v1358_v21 = vadd.f32 %v5859_v2, %v5857_v27 }
 0x2e0   : > { %4576 = vpow2.f32 %v1247_v0  ;;  %v8268_v46 = vmax.f32 %v5787_v56, %v5791_v47 }
 0x2e1   : > { %v5865_v4 = vpop.eup %4566  ;;  %v1249_v16 = vmul.f32 1.442695, %v1171_v33  ;;  %v1251_v7 = vmul.f32 1.442695, %v1172_v34  ;;  %1359 = vadd.xlane.f32.xlu0 %v1358_v21  ;;  %1140 = vmax.xlane.f32.xlu1 %v8267_v14 }
 0x2e2   : > { %v5870_v23 = vpop.eup %4568  ;;  %v1087_v5 = vpop.xlane.xlu1 %1086 }
 0x2e3   : > { %4578 = vpow2.f32 %v1249_v16  ;;  %v1173_v35 = vsub.f32 %v5675_v41, %v1087_v5  ;;  %v1174_v39 = vsub.f32 %v5677_v44, %v1087_v5  ;;  %v1361_v18 = vadd.f32 %v5870_v23, %v5865_v4 }
 0x2e4   : > { %4580 = vpow2.f32 %v1251_v7  ;;  %v1090_v17 = vpop.xlane.xlu0 %1089 }
 0x2e5   : > { %v5876_v1 = vpop.eup %4570  ;;  %v1253_v59 = vmul.f32 1.442695, %v1173_v35  ;;  %v1255_v25 = vmul.f32 1.442695, %v1174_v39  ;;  %v1175_v29 = vsub.f32 %v5679_v45, %v1090_v17  ;;  %v1176_v6 = vsub.f32 %v5683_v49, %v1090_v17  ;;  %1362 = vadd.xlane.f32.xlu1 %v1361_v18  ;;  %1143 = vmax.xlane.f32.xlu0 %v8268_v46 }
 0x2e6   : > { %v5883_v41 = vpop.eup %4572  ;;  %v8269_v45 = vmax.f32 %v5795_v30, %v5797_v37 }
 0x2e7   : > { %4582 = vpow2.f32 %v1253_v59  ;;  %v1257_v44 = vmul.f32 1.442695, %v1175_v29  ;;  %v1259_v0 = vmul.f32 1.442695, %v1176_v6  ;;  %v1364_v8 = vadd.f32 %v5883_v41, %v5876_v1 }
 0x2e8   : > { %4584 = vpow2.f32 %v1255_v25  ;;  %v8270_v59 = vmax.f32 %v5799_v36, %v5803_v26 }
 0x2e9   : > { %v5887_v33 = vpop.eup %4574  ;;  %4586 = vpow2.f32 %v1257_v44  ;;  %1365 = vadd.xlane.f32.xlu0 %v1364_v8  ;;  %1146 = vmax.xlane.f32.xlu1 %v8269_v45 }
 0x2ea   : > { %v5892_v49 = vpop.eup %4576  ;;  %4588 = vpow2.f32 %v1259_v0  ;;  %v1093_v34 = vpop.xlane.xlu1 %1092 }
 0x2eb   : > { %v1177_v21 = vsub.f32 %v5687_v51, %v1093_v34  ;;  %v1178_v16 = vsub.f32 %v5689_v52, %v1093_v34  ;;  %v1367_v7 = vadd.f32 %v5892_v49, %v5887_v33 }
 0x2ec   : > { %v1096_v14 = vpop.xlane.xlu0 %1095 }
 0x2ed   : > { %v5898_v5 = vpop.eup %4578  ;;  %v1261_v35 = vmul.f32 1.442695, %v1177_v21  ;;  %v1263_v39 = vmul.f32 1.442695, %v1178_v16  ;;  %v1179_v18 = vsub.f32 %v5691_v53, %v1096_v14  ;;  %v1180_v17 = vsub.f32 %v5695_v63, %v1096_v14  ;;  %1368 = vadd.xlane.f32.xlu1 %v1367_v7  ;;  %1149 = vmax.xlane.f32.xlu0 %v8270_v59 }
 0x2ee   : > { %v5905_v51 = vpop.eup %4580  ;;  %v8271_v53 = vmax.f32 %v5807_v42, %v5809_v43 }
 0x2ef   : > { %4590 = vpow2.f32 %v1261_v35  ;;  %v1265_v52 = vmul.f32 1.442695, %v1179_v18  ;;  %v1267_v25 = vmul.f32 1.442695, %v1180_v17  ;;  %v1370_v29 = vadd.f32 %v5905_v51, %v5898_v5 }
 0x2f0   : > { %4592 = vpow2.f32 %v1263_v39  ;;  %v8272_v39 = vmax.f32 %v5811_v12, %v5815_v55 }
 0x2f1   : > { %v5909_v6 = vpop.eup %4582  ;;  %4594 = vpow2.f32 %v1265_v52  ;;  %1371 = vadd.xlane.f32.xlu0 %v1370_v29  ;;  %1152 = vmax.xlane.f32.xlu1 %v8271_v53 }
 0x2f2   : > { %v5914_v63 = vpop.eup %4584  ;;  %4596 = vpow2.f32 %v1267_v25  ;;  %v1099_v46 = vpop.xlane.xlu1 %1098 }
 0x2f3   : > { %v5916_v44 = vpop.eup %4586  ;;  %v1181_v0 = vsub.f32 %v5699_v22, %v1099_v46  ;;  %v1182_v8 = vsub.f32 %v5701_v28, %v1099_v46  ;;  %v1373_v45 = vadd.f32 %v5914_v63, %v5909_v6 }
 0x2f4   : > { %v5922_v34 = vpop.eup %4588  ;;  %v1102_v21 = vpop.xlane.xlu0 %1101 }
 0x2f5   : > { %v1269_v16 = vmul.f32 1.442695, %v1181_v0  ;;  %v1271_v7 = vmul.f32 1.442695, %v1182_v8  ;;  %v1183_v14 = vsub.f32 %v5703_v32, %v1102_v21  ;;  %v1184_v35 = vsub.f32 %v5707_v40, %v1102_v21  ;;  %1374 = vadd.xlane.f32.xlu1 %v1373_v45  ;;  %1155 = vmax.xlane.f32.xlu0 %v8272_v39 }
 0x2f6   : > { %v1376_v18 = vadd.f32 %v5922_v34, %v5916_v44 }
 0x2f7   : > { %4598 = vpow2.f32 %v1269_v16  ;;  %v1273_v22 = vmul.f32 1.442695, %v1183_v14  ;;  %v1275_v28 = vmul.f32 1.442695, %v1184_v35 }
 0x2f8   : > { %4600 = vpow2.f32 %v1271_v7 }
 0x2f9   : > { %v5931_v17 = vpop.eup %4590  ;;  %4602 = vpow2.f32 %v1273_v22  ;;  %1377 = vadd.xlane.f32.xlu0 %v1376_v18 }
 0x2fa   : > { %v5933_v59 = vpop.eup %4592  ;;  %4604 = vpow2.f32 %v1275_v28  ;;  %v1105_v32 = vpop.xlane.xlu1 %1104 }
 0x2fb   : > { %v5935_v40 = vpop.eup %4594  ;;  %v1185_v52 = vsub.f32 %v5711_v50, %v1105_v32  ;;  %v1186_v25 = vsub.f32 %v5713_v60, %v1105_v32  ;;  %v1379_v29 = vadd.f32 %v5933_v59, %v5931_v17 }
 0x2fc   : > { %v5941_v53 = vpop.eup %4596  ;;  %v1108_v46 = vpop.xlane.xlu0 %1107 }
 0x2fd   : > { %v1277_v0 = vmul.f32 1.442695, %v1185_v52  ;;  %v1279_v8 = vmul.f32 1.442695, %v1186_v25  ;;  %v1187_v45 = vsub.f32 %v5715_v20, %v1108_v46  ;;  %v1188_v21 = vsub.f32 %v5719_v15, %v1108_v46  ;;  %1380 = vadd.xlane.f32.xlu1 %v1379_v29  ;;  %v8273_v29 = vld [vmem:[#allocation33_spill] sm:$0xff] }
 0x2fe   : > { %v1382_v16 = vadd.f32 %v5941_v53, %v5935_v40 }
 0x2ff   : > { %4606 = vpow2.f32 %v1277_v0  ;;  %v1281_v50 = vmul.f32 1.442695, %v1187_v45  ;;  %v1283_v7 = vmul.f32 1.442695, %v1188_v21 }
 0x300   : > { %4608 = vpow2.f32 %v1279_v8  ;;  %1383 = vadd.xlane.f32.xlu0 %v1382_v16 }
 0x301   : > { %v5947_v60 = vpop.eup %4598  ;;  %4610 = vpow2.f32 %v1281_v50 }
 0x302   : > { %v5949_v14 = vpop.eup %4600  ;;  %4612 = vpow2.f32 %v1283_v7  ;;  %v1111_v35 = vpop.xlane.xlu1 %1110  ;;  %v8277_v7 = vld [vmem:[#allocation35_spill] sm:$0xff] }
 0x303   : > { %v5951_v39 = vpop.eup %4602  ;;  %v1189_v15 = vsub.f32 %v5723_v38, %v1111_v35  ;;  %v1190_v20 = vsub.f32 %v5725_v13, %v1111_v35  ;;  %v1385_v22 = vadd.f32 %v5949_v14, %v5947_v60 }
 0x304   : > { %v5957_v28 = vpop.eup %4604  ;;  %v1114_v18 = vpop.xlane.xlu0 %1113 }
 0x305   : > { %v1285_v32 = vmul.f32 1.442695, %v1189_v15  ;;  %v1287_v52 = vmul.f32 1.442695, %v1190_v20  ;;  %v1191_v25 = vsub.f32 %v5727_v48, %v1114_v18  ;;  %v1192_v46 = vsub.f32 %v8273_v29, %v1114_v18  ;;  %1386 = vadd.xlane.f32.xlu1 %v1385_v22  ;;  %v8276_v48 = vld [vmem:[#allocation34_spill] sm:$0xff]  ;;  %v8280_v29 = vld [vmem:[#allocation37_spill] sm:$0xff] }
 0x306   : > { %v1388_v0 = vadd.f32 %v5957_v28, %v5951_v39 }
 0x307   : > { %4614 = vpow2.f32 %v1285_v32  ;;  %v1289_v38 = vmul.f32 1.442695, %v1191_v25  ;;  %v1291_v8 = vmul.f32 1.442695, %v1192_v46 }
 0x308   : > { %4616 = vpow2.f32 %v1287_v52  ;;  %1389 = vadd.xlane.f32.xlu0 %v1388_v0  ;;  %v8279_v52 = vld [vmem:[#allocation36_spill] sm:$0xff] }
 0x309   : > { %v5963_v13 = vpop.eup %4606  ;;  %4618 = vpow2.f32 %v1289_v38 }
 0x30a   : > { %8274 = vst [vmem:[#allocation33_spill] sm:$0xff] %v5963_v13  ;;  %v5965_v45 = vpop.eup %4608  ;;  %4620 = vpow2.f32 %v1291_v8  ;;  %v1117_v21 = vpop.xlane.xlu1 %1116 }
 0x30b   : > { %v5967_v16 = vpop.eup %4610  ;;  %v1193_v50 = vsub.f32 %v8276_v48, %v1117_v21  ;;  %v1194_v35 = vsub.f32 %v8277_v7, %v1117_v21  ;;  %v1391_v15 = vadd.f32 %v5965_v45, %v5963_v13  ;;  %v8288_v13 = vld [vmem:[#allocation41_spill] sm:$0xff] }
 0x30c   : > { %8275 = vst [vmem:[#allocation46_spill] sm:$0xff] %v5967_v16  ;;  %v5973_v20 = vpop.eup %4612  ;;  %v1120_v22 = vpop.xlane.xlu0 %1119 }
 0x30d   : > { %8278 = vst [vmem:[#allocation34_spill] sm:$0xff] %v5973_v20  ;;  %v1293_v18 = vmul.f32 1.442695, %v1193_v50  ;;  %v1295_v32 = vmul.f32 1.442695, %v1194_v35  ;;  %v1195_v25 = vsub.f32 %v8279_v52, %v1120_v22  ;;  %v1196_v46 = vsub.f32 %v8280_v29, %v1120_v22  ;;  %1392 = vadd.xlane.f32.xlu1 %v1391_v15  ;;  %v8284_v35 = vld [vmem:[#allocation38_spill] sm:$0xff] }
 0x30e   : > { %v1394_v0 = vadd.f32 %v5973_v20, %v5967_v16  ;;  %v8285_v15 = vld [vmem:[#allocation39_spill] sm:$0xff] }
 0x30f   : > { %4622 = vpow2.f32 %v1293_v18  ;;  %v1297_v38 = vmul.f32 1.442695, %v1195_v25  ;;  %v1299_v8 = vmul.f32 1.442695, %v1196_v46 }
 0x310   : > { %4624 = vpow2.f32 %v1295_v32  ;;  %1395 = vadd.xlane.f32.xlu0 %v1394_v0  ;;  %v8287_v0 = vld [vmem:[#allocation40_spill] sm:$0xff] }
 0x311   : > { %v5979_v21 = vpop.eup %4614  ;;  %4626 = vpow2.f32 %v1297_v38 }
 0x312   : > { %8281 = vst [vmem:[#allocation35_spill] sm:$0xff] %v5979_v21  ;;  %v5981_v48 = vpop.eup %4616  ;;  %4628 = vpow2.f32 %v1299_v8  ;;  %v1123_v50 = vpop.xlane.xlu1 %1122 }
 0x313   : > { %8282 = vst [vmem:[#allocation36_spill] sm:$0xff] %v5981_v48  ;;  %v5983_v7 = vpop.eup %4618  ;;  %v1197_v22 = vsub.f32 %v8284_v35, %v1123_v50  ;;  %v1198_v52 = vsub.f32 %v8285_v15, %v1123_v50  ;;  %v1397_v18 = vadd.f32 %v5981_v48, %v5979_v21  ;;  %v8291_v21 = vld [vmem:[#allocation44_spill] sm:$0xff] }
 0x314   : > { %8283 = vst [vmem:[#allocation37_spill] sm:$0xff] %v5983_v7  ;;  %v5989_v25 = vpop.eup %4620  ;;  %v1126_v32 = vpop.xlane.xlu0 %1125 }
 0x315   : > { %8286 = vst [vmem:[#allocation38_spill] sm:$0xff] %v5989_v25  ;;  %v1301_v29 = vmul.f32 1.442695, %v1197_v22  ;;  %v1303_v46 = vmul.f32 1.442695, %v1198_v52  ;;  %v1199_v38 = vsub.f32 %v8287_v0, %v1126_v32  ;;  %v1200_v16 = vsub.f32 %v8288_v13, %v1126_v32  ;;  %1398 = vadd.xlane.f32.xlu1 %v1397_v18  ;;  %v8289_v0 = vld [vmem:[#allocation42_spill] sm:$0xff] }
 0x316   : > { %v1400_v8 = vadd.f32 %v5989_v25, %v5983_v7  ;;  %v8290_v18 = vld [vmem:[#allocation43_spill] sm:$0xff]  ;;  %v8292_v7 = vld [vmem:[#allocation45_spill] sm:$0xff] }
 0x317   : > { %4630 = vpow2.f32 %v1301_v29  ;;  %v1305_v35 = vmul.f32 1.442695, %v1199_v38  ;;  %v1307_v20 = vmul.f32 1.442695, %v1200_v16 }
 0x318   : > { %4632 = vpow2.f32 %v1303_v46  ;;  %1401 = vadd.xlane.f32.xlu0 %v1400_v8 }
 0x319   : > { %v5995_v50 = vpop.eup %4622  ;;  %4634 = vpow2.f32 %v1305_v35 }
 0x31a   : > { %v5997_v15 = vpop.eup %4624  ;;  %4636 = vpow2.f32 %v1307_v20  ;;  %v1129_v22 = vpop.xlane.xlu1 %1128 }
 0x31b   : > { %v5999_v52 = vpop.eup %4626  ;;  %v1201_v13 = vsub.f32 %v8289_v0, %v1129_v22  ;;  %v1202_v32 = vsub.f32 %v8290_v18, %v1129_v22  ;;  %v1403_v29 = vadd.f32 %v5997_v15, %v5995_v50 }
 0x31c   : > { %v6005_v38 = vpop.eup %4628  ;;  %v1132_v16 = vpop.xlane.xlu0 %1131 }
 0x31d   : > { %v1309_v46 = vmul.f32 1.442695, %v1201_v13  ;;  %v1311_v8 = vmul.f32 1.442695, %v1202_v32  ;;  %v1203_v35 = vsub.f32 %v8291_v21, %v1132_v16  ;;  %v1204_v25 = vsub.f32 %v8292_v7, %v1132_v16  ;;  %1404 = vadd.xlane.f32.xlu1 %v1403_v29 }
 0x31e   : > { %v1406_v20 = vadd.f32 %v6005_v38, %v5999_v52 }
 0x31f   : > { %4638 = vpow2.f32 %v1309_v46  ;;  %v1313_v0 = vmul.f32 1.442695, %v1203_v35  ;;  %v1315_v48 = vmul.f32 1.442695, %v1204_v25 }
 0x320   : > { %4640 = vpow2.f32 %v1311_v8  ;;  %1407 = vadd.xlane.f32.xlu0 %v1406_v20 }
 0x321   : > { %v6011_v22 = vpop.eup %4630  ;;  %4642 = vpow2.f32 %v1313_v0 }
 0x322   : > { %8293 = vst [vmem:[#allocation39_spill] sm:$0xff] %v6011_v22  ;;  %v6013_v18 = vpop.eup %4632  ;;  %4644 = vpow2.f32 %v1315_v48 }
 0x323   : > { %v6015_v13 = vpop.eup %4634  ;;  %v1409_v21 = vadd.f32 %v6013_v18, %v6011_v22 }
 0x324   : > { %8294 = vst [vmem:[#allocation40_spill] sm:$0xff] %v6015_v13  ;;  %v6019_v7 = vpop.eup %4636 }
 0x325   : > { %8295 = vst [vmem:[#allocation41_spill] sm:$0xff] %v6019_v7  ;;  %1410 = vadd.xlane.f32.xlu1 %v1409_v21  ;;  %v1412_v32 = vadd.f32 %v6019_v7, %v6015_v13 }
 0x327   : > { %1413 = vadd.xlane.f32.xlu0 %v1412_v32 }
 0x329   : > { %v6023_v25 = vpop.eup %4638 }
 0x32a   : > { %8296 = vst [vmem:[#allocation42_spill] sm:$0xff] %v6023_v25  ;;  %v6025_v29 = vpop.eup %4640 }
 0x32b   : > { %8297 = vst [vmem:[#allocation43_spill] sm:$0xff] %v6025_v29  ;;  %v6027_v16 = vpop.eup %4642  ;;  %v1415_v48 = vadd.f32 %v6025_v29, %v6023_v25 }
 0x32c   : > { %8298 = vst [vmem:[#allocation44_spill] sm:$0xff] %v6027_v16  ;;  %v6031_v46 = vpop.eup %4644 }
 0x32d   : > { %8299 = vst [vmem:[#allocation45_spill] sm:$0xff] %v6031_v46  ;;  %1416 = vadd.xlane.f32.xlu1 %v1415_v48  ;;  %v1418_v8 = vadd.f32 %v6031_v46, %v6027_v16 }
 0x32f   : > { %1419 = vadd.xlane.f32.xlu0 %v1418_v8 }
 0x362   : > { %v1351_v35 = vpop.xlane.xlu1 %1350 }
 0x363   : > { %4646 = vrcp.f32 %v1351_v35 }
 0x364   : > { %v1354_v20 = vpop.xlane.xlu0 %1353 }
 0x365   : > { %4648 = vrcp.f32 %v1354_v20 }
 0x366   : > { %v1135_v0 = vpop.xlane.xlu1 %1134 }
 0x367   : > { %v1205_v21 = vsub.f32 %v5771_v62, %v1135_v0  ;;  %v1206_v32 = vsub.f32 %v5773_v31, %v1135_v0 }
 0x368   : > { %v1138_v22 = vpop.xlane.xlu0 %1137 }
 0x369   : > { %v1317_v13 = vmul.f32 1.442695, %v1205_v21  ;;  %v1319_v7 = vmul.f32 1.442695, %v1206_v32  ;;  %v1207_v25 = vsub.f32 %v5775_v10, %v1138_v22  ;;  %v1208_v48 = vsub.f32 %v5779_v19, %v1138_v22 }
 0x36a   : > { %v1357_v29 = vpop.xlane.xlu1 %1356 }
 0x36b   : > { %4650 = vpow2.f32 %v1317_v13  ;;  %v1321_v16 = vmul.f32 1.442695, %v1207_v25  ;;  %v1323_v8 = vmul.f32 1.442695, %v1208_v48 }
 0x36c   : > { %4652 = vpow2.f32 %v1319_v7 }
 0x36d   : > { %v4647_v35 = vpop.eup %4646  ;;  %4654 = vpow2.f32 %v1321_v16 }
 0x36e   : > { %4656 = vpow2.f32 %v1323_v8  ;;  %v1360_v20 = vpop.xlane.xlu0 %1359  ;;  %v1141_v46 = vpop.xlane.xlu1 %1140  ;;  %v1478_v10 = vmul.f32 %v4647_v35, %v5829_v11  ;;  %v1477_v22 = vmul.f32 %v4647_v35, %v5827_v9 }
 0x36f   : > { %v4649_v62 = vpop.eup %4648  ;;  %4658 = vrcp.f32 %v1357_v29  ;;  %v1209_v31 = vsub.f32 %v5783_v57, %v1141_v46  ;;  %v1210_v0 = vsub.f32 %v5785_v54, %v1141_v46 }
 0x370   : > { %4660 = vrcp.f32 %v1360_v20  ;;  %v1480_v19 = vmul.f32 %v4649_v62, %v5837_v3  ;;  %v1479_v13 = vmul.f32 %v4649_v62, %v5831_v61 }
 0x371   : > { %v1325_v7 = vmul.f32 1.442695, %v1209_v31  ;;  %v1327_v25 = vmul.f32 1.442695, %v1210_v0 }
 0x372   : > { %v1363_v16 = vpop.xlane.xlu1 %1362  ;;  %v1144_v21 = vpop.xlane.xlu0 %1143  ;;  %v1542_v32 = vpack.c.bf16 %v1480_v19, %v1478_v10  ;;  %v1541_v48 = vpack.c.bf16 %v1479_v13, %v1477_v22 }
 0x373   : > { %4662 = vpow2.f32 %v1325_v7  ;;  %v1211_v57 = vsub.f32 %v5787_v56, %v1144_v21  ;;  %v1212_v54 = vsub.f32 %v5791_v47, %v1144_v21 }
 0x374   : > { %4664 = vpow2.f32 %v1327_v25  ;;  %1573 = vmatprep.subr.bf16.mxu1 %v1542_v32 }
 0x375   : > { %v6047_v11 = vpop.eup %4650  ;;  %4666 = vrcp.f32 %v1363_v16  ;;  %v1329_v3 = vmul.f32 1.442695, %v1211_v57  ;;  %v1331_v9 = vmul.f32 1.442695, %v1212_v54  ;;  %1574 = vmatpush1.bf16.xpose.msra.mxu1 %v1541_v48 }
 0x376   : > { %v6049_v61 = vpop.eup %4652  ;;  %v1366_v29 = vpop.xlane.xlu0 %1365 }
 0x377   : > { %v1147_v46 = vpop.xlane.xlu1 %1146  ;;  %v6051_v8 = vpop.eup %4654  ;;  %4668 = vpow2.f32 %v1329_v3  ;;  %v1421_v47 = vadd.f32 %v6049_v61, %v6047_v11 }
 0x378   : > { %v1213_v35 = vsub.f32 %v5795_v30, %v1147_v46  ;;  %v1214_v56 = vsub.f32 %v5797_v37, %v1147_v46  ;;  %v6057_v20 = vpop.eup %4656  ;;  %4670 = vpow2.f32 %v1331_v9 }
 0x379   : > { %v4659_v62 = vpop.eup %4658  ;;  %4672 = vrcp.f32 %v1366_v29  ;;  %1422 = vadd.xlane.f32.xlu1 %v1421_v47  ;;  %v1424_v10 = vadd.f32 %v6057_v20, %v6051_v8 }
 0x37a   : > { %v1333_v31 = vmul.f32 1.442695, %v1213_v35  ;;  %v1335_v0 = vmul.f32 1.442695, %v1214_v56  ;;  %v4661_v19 = vpop.eup %4660  ;;  %v1150_v13 = vpop.xlane.xlu0 %1149  ;;  %v1482_v30 = vmul.f32 %v4659_v62, %v5848_v58  ;;  %v1481_v16 = vmul.f32 %v4659_v62, %v5843_v24 }
 0x37b   : > { %v1369_v22 = vpop.xlane.xlu1 %1368  ;;  %v1215_v37 = vsub.f32 %v5799_v36, %v1150_v13  ;;  %v1216_v7 = vsub.f32 %v5803_v26, %v1150_v13  ;;  %1425 = vadd.xlane.f32.xlu0 %v1424_v10  ;;  %v1484_v25 = vmul.f32 %v4661_v19, %v5859_v2  ;;  %v1483_v21 = vmul.f32 %v4661_v19, %v5857_v27 }
 0x37c   : > { %4674 = vpow2.f32 %v1333_v31 }
 0x37d   : > { %4676 = vpow2.f32 %v1335_v0  ;;  %v6067_v32 = vpop.eup %4662  ;;  %v1337_v48 = vmul.f32 1.442695, %v1215_v37  ;;  %v1339_v57 = vmul.f32 1.442695, %v1216_v7  ;;  %v1544_v54 = vpack.c.bf16 %v1484_v25, %v1482_v30 }
 0x37e   : > { %v6069_v3 = vpop.eup %4664  ;;  %4678 = vrcp.f32 %v1369_v22  ;;  %v1372_v58 = vpop.xlane.xlu0 %1371  ;;  %v1543_v9 = vpack.c.bf16 %v1483_v21, %v1481_v16 }
 0x37f   : > { %v1153_v36 = vpop.xlane.xlu1 %1152  ;;  %v4667_v26 = vpop.eup %4666  ;;  %4680 = vpow2.f32 %v1337_v48  ;;  %1575 = vmatprep.subr.bf16.mxu1 %v1544_v54  ;;  %v1427_v27 = vadd.f32 %v6069_v3, %v6067_v32 }
 0x380   : > { %v1217_v2 = vsub.f32 %v5807_v42, %v1153_v36  ;;  %v1218_v24 = vsub.f32 %v5809_v43, %v1153_v36  ;;  %4682 = vpow2.f32 %v1339_v57  ;;  %1576 = vmatpush1.bf16.xpose.msra.mxu1 %v1543_v9  ;;  %v1486_v62 = vmul.f32 %v4667_v26, %v5870_v23 }
 0x381   : > { %v6075_v29 = vpop.eup %4668  ;;  %4684 = vrcp.f32 %v1372_v58  ;;  %1428 = vadd.xlane.f32.xlu1 %v1427_v27  ;;  %v1485_v22 = vmul.f32 %v4667_v26, %v5865_v4 }
 0x382   : > { %v1341_v46 = vmul.f32 1.442695, %v1217_v2  ;;  %v1343_v35 = vmul.f32 1.442695, %v1218_v24  ;;  %v6077_v56 = vpop.eup %4670  ;;  %v1156_v47 = vpop.xlane.xlu0 %1155 }
 0x383   : > { %v4673_v31 = vpop.eup %4672  ;;  %v1375_v42 = vpop.xlane.xlu1 %1374  ;;  %v1219_v43 = vsub.f32 %v5811_v12, %v1156_v47  ;;  %v1220_v0 = vsub.f32 %v5815_v55, %v1156_v47  ;;  %v1430_v10 = vadd.f32 %v6077_v56, %v6075_v29 }
 0x384   : > { %4686 = vpow2.f32 %v1341_v46  ;;  %v1488_v19 = vmul.f32 %v4673_v31, %v5883_v41  ;;  %v1487_v13 = vmul.f32 %v4673_v31, %v5876_v1 }
 0x385   : > { %4688 = vpow2.f32 %v1343_v35  ;;  %v1345_v23 = vmul.f32 1.442695, %v1219_v43  ;;  %v1347_v37 = vmul.f32 1.442695, %v1220_v0  ;;  %1431 = vadd.xlane.f32.xlu0 %v1430_v10 }
 0x386   : > { %v6087_v30 = vpop.eup %4674  ;;  %4690 = vrcp.f32 %v1375_v42  ;;  %v1546_v12 = vpack.c.bf16 %v1488_v19, %v1486_v62  ;;  %v1378_v55 = vpop.xlane.xlu0 %1377  ;;  %v1545_v25 = vpack.c.bf16 %v1487_v13, %v1485_v22 }
 0x387   : > { %v6089_v7 = vpop.eup %4676  ;;  %4692 = vpow2.f32 %v1345_v23 }
 0x388   : > { %v1433_v16 = vadd.f32 %v6089_v7, %v6087_v30  ;;  %v4679_v41 = vpop.eup %4678  ;;  %4694 = vpow2.f32 %v1347_v37  ;;  %1577 = vmatprep.subr.bf16.mxu1 %v1546_v12 }
 0x389   : > { %v6093_v4 = vpop.eup %4680  ;;  %4696 = vrcp.f32 %v1378_v55  ;;  %1578 = vmatpush1.bf16.xpose.msra.mxu1 %v1545_v25  ;;  %v1490_v54 = vmul.f32 %v4679_v41, %v5892_v49  ;;  %v1489_v36 = vmul.f32 %v4679_v41, %v5887_v33  ;;  %v374_v41 = vld [vmem:[%s8069_s5 + $0x20] sm:$0xff] }
 0x38a   : > { %1434 = vadd.xlane.f32.xlu1 %v1433_v16  ;;  %v6095_v1 = vpop.eup %4682  ;;  %v1381_v21 = vpop.xlane.xlu1 %1380 }
 0x38b   : > { %v4685_v48 = vpop.eup %4684  ;;  %v1436_v57 = vadd.f32 %v6095_v1, %v6093_v4  ;;  %4698 = vrcp.f32 %v1381_v21 }
 0x38c   : > { %v1492_v58 = vmul.f32 %v4685_v48, %v5905_v51  ;;  %v1491_v9 = vmul.f32 %v4685_v48, %v5898_v5 }
 0x38d   : > { %1437 = vadd.xlane.f32.xlu0 %v1436_v57  ;;  %v1384_v2 = vpop.xlane.xlu0 %1383 }
 0x38e   : > { %v6103_v26 = vpop.eup %4686  ;;  %4700 = vrcp.f32 %v1384_v2  ;;  %v1548_v27 = vpack.c.bf16 %v1492_v58, %v1490_v54  ;;  %v1547_v46 = vpack.c.bf16 %v1491_v9, %v1489_v36  ;;  %v8300_v36 = vld [vmem:[#allocation18_spill] sm:$0xff] }
 0x38f   : > { %v6105_v24 = vpop.eup %4688  ;;  %v8301_v2 = vld [vmem:[#allocation34_spill] sm:$0xff] }
 0x390   : > { %v1439_v35 = vadd.f32 %v6105_v24, %v6103_v26  ;;  %v4691_v49 = vpop.eup %4690  ;;  %1579 = vmatprep.subr.bf16.mxu1 %v1548_v27 }
 0x391   : > { %v6109_v47 = vpop.eup %4692  ;;  %1580 = vmatpush1.bf16.xpose.msra.mxu1 %v1547_v46  ;;  %v1494_v31 = vmul.f32 %v4691_v49, %v5914_v63  ;;  %v1493_v43 = vmul.f32 %v4691_v49, %v5909_v6  ;;  %v8302_v46 = vld [vmem:[#allocation17_spill] sm:$0xff]  ;;  %v8303_v49 = vld [vmem:[#allocation46_spill] sm:$0xff] }
 0x392   : > { %1440 = vadd.xlane.f32.xlu1 %v1439_v35  ;;  %v6111_v33 = vpop.eup %4694  ;;  %v1387_v5 = vpop.xlane.xlu1 %1386 }
 0x393   : > { %v4697_v51 = vpop.eup %4696  ;;  %v1442_v62 = vadd.f32 %v6111_v33, %v6109_v47  ;;  %4702 = vrcp.f32 %v1387_v5 }
 0x394   : > { %v1496_v42 = vmul.f32 %v4697_v51, %v5922_v34  ;;  %v1495_v0 = vmul.f32 %v4697_v51, %v5916_v44 }
 0x395   : > { %1443 = vadd.xlane.f32.xlu0 %v1442_v62  ;;  %v1390_v10 = vpop.xlane.xlu0 %1389  ;;  %v4699_v19 = vpop.eup %4698  ;;  %v8304_v62 = vld [vmem:[#allocation33_spill] sm:$0xff] }
 0x396   : > { %4704 = vrcp.f32 %v1390_v10  ;;  %v1550_v22 = vpack.c.bf16 %v1496_v42, %v1494_v31  ;;  %v1549_v13 = vpack.c.bf16 %v1495_v0, %v1493_v43  ;;  %v1498_v37 = vmul.f32 %v4699_v19, %v5933_v59  ;;  %v8305_v43 = vld [vmem:[#allocation19_spill] sm:$0xff] }
 0x397   : > { %v1497_v44 = vmul.f32 %v4699_v19, %v5931_v17  ;;  %v8307_v19 = vld [vmem:[#allocation36_spill] sm:$0xff] }
 0x398   : > { %v4701_v23 = vpop.eup %4700  ;;  %1581 = vmatprep.subr.bf16.mxu1 %v1550_v22 }
 0x399   : > { %1582 = vmatpush1.bf16.xpose.msra.mxu1 %v1549_v13  ;;  %v1500_v63 = vmul.f32 %v4701_v23, %v5941_v53  ;;  %v1499_v34 = vmul.f32 %v4701_v23, %v5935_v40  ;;  %v8308_v13 = vld [vmem:[#allocation38_spill] sm:$0xff] }
 0x39a   : > { %v1393_v12 = vpop.xlane.xlu1 %1392 }
 0x39b   : > { %v1552_v55 = vpack.c.bf16 %v1500_v63, %v1498_v37  ;;  %4706 = vrcp.f32 %v1393_v12  ;;  %v1551_v16 = vpack.c.bf16 %v1499_v34, %v1497_v44  ;;  %v8309_v37 = vld [vmem:[#allocation21_spill] sm:$0xff]  ;;  %v8310_v12 = vld [vmem:[#allocation22_spill] sm:$0xff] }
 0x39c   : > { %v8311_v34 = vld [vmem:[#allocation37_spill] sm:$0xff] }
 0x39d   : > { %1583 = vmatprep.subr.bf16.mxu1 %v1552_v55  ;;  %v1396_v6 = vpop.xlane.xlu0 %1395  ;;  %v4703_v25 = vpop.eup %4702 }
 0x39e   : > { %4708 = vrcp.f32 %v1396_v6  ;;  %v1502_v59 = vmul.f32 %v4703_v25, %v5949_v14  ;;  %v1501_v54 = vmul.f32 %v4703_v25, %v5947_v60  ;;  %v8312_v25 = vld [vmem:[#allocation35_spill] sm:$0xff] }
 0x3a0   : > { %v4705_v21 = vpop.eup %4704 }
 0x3a1   : > { %1584 = vmatpush1.bf16.xpose.msra.mxu1 %v1551_v16  ;;  %v1504_v53 = vmul.f32 %v4705_v21, %v5957_v28  ;;  %v1503_v57 = vmul.f32 %v4705_v21, %v5951_v39  ;;  %v371_v28 = vld [vmem:[%s8069_s5 + $0x8] sm:$0xff]  ;;  %v8313_v21 = vld [vmem:[#allocation23_spill] sm:$0xff] }
 0x3a2   : > { %v1399_v40 = vpop.xlane.xlu1 %1398 }
 0x3a3   : > { %400 = vperm.xlu1 %4541, %v374_v41   ;;  %v1554_v48 = vpack.c.bf16 %v1504_v53, %v1502_v59  ;;  %4710 = vrcp.f32 %v1399_v40  ;;  %v1553_v9 = vpack.c.bf16 %v1503_v57, %v1501_v54  ;;  %v8314_v59 = vld [vmem:[#allocation24_spill] sm:$0xff] }
 0x3a5   : > { %1585 = vmatprep.subr.bf16.mxu1 %v1554_v48  ;;  %v1402_v17 = vpop.xlane.xlu0 %1401  ;;  %v4707_v58 = vpop.eup %4706 }
 0x3a6   : > { %4712 = vrcp.f32 %v1402_v17  ;;  %v1506_v39 = vmul.f32 %v4707_v58, %v5965_v45  ;;  %v1505_v31 = vmul.f32 %v4707_v58, %v8304_v62  ;;  %v8306_v45 = vld [vmem:[#allocation20_spill] sm:$0xff]  ;;  %v8315_v17 = vld [vmem:[#allocation25_spill] sm:$0xff]  ;;  %v8316_v58 = vld [vmem:[#allocation26_spill] sm:$0xff] }
 0x3a7   : > { %1636 = vrot.lane.b32.xlu1 %v8300_v36, %s5343_s22  ;;  %v8321_v62 = vld [vmem:[#allocation30_spill] sm:$0xff] }
 0x3a8   : > { %v4709_v14 = vpop.eup %4708 }
 0x3a9   : > { %1586 = vmatpush1.bf16.xpose.msra.mxu1 %v1553_v9  ;;  %v1508_v27 = vmul.f32 %v4709_v14, %v8301_v2  ;;  %v1507_v5 = vmul.f32 %v4709_v14, %v8303_v49  ;;  %v8319_v49 = vld [vmem:[#allocation41_spill] sm:$0xff] }
 0x3aa   : > { %v1405_v60 = vpop.xlane.xlu1 %1404 }
 0x3ab   : > { %1638 = vrot.lane.b32.xlu1 %v8302_v46, %s5343_s22  ;;  %385 = vperm.xlu0 %4540, %v371_v28   ;;  %v1556_v35 = vpack.c.bf16 %v1508_v27, %v1506_v39  ;;  %4714 = vrcp.f32 %v1405_v60  ;;  %v1555_v0 = vpack.c.bf16 %v1507_v5, %v1505_v31  ;;  %v8318_v27 = vld [vmem:[#allocation28_spill] sm:$0xff] }
 0x3ad   : > { %1587 = vmatprep.subr.bf16.mxu1 %v1556_v35  ;;  %v1408_v51 = vpop.xlane.xlu0 %1407  ;;  %v4711_v42 = vpop.eup %4710 }
 0x3ae   : > { %4716 = vrcp.f32 %v1408_v51  ;;  %v1510_v22 = vmul.f32 %v4711_v42, %v8307_v19  ;;  %v1509_v16 = vmul.f32 %v4711_v42, %v8312_v25  ;;  %v8324_v19 = vld [vmem:[#allocation31_spill] sm:$0xff] }
 0x3af   : > { %1642 = vrot.lane.b32.xlu1 %v8305_v43, %s5343_s22  ;;  %1640 = vrot.lane.b32.xlu0 %v8306_v45, %s5343_s22 }
 0x3b0   : > { %v4713_v10 = vpop.eup %4712 }
 0x3b1   : > { %1588 = vmatpush1.bf16.xpose.msra.mxu1 %v1555_v0  ;;  %v1512_v23 = vmul.f32 %v4713_v10, %v8308_v13  ;;  %v1511_v6 = vmul.f32 %v4713_v10, %v8311_v34  ;;  %v8323_v0 = vld [vmem:[#allocation39_spill] sm:$0xff] }
 0x3b2   : > { %v1411_v63 = vpop.xlane.xlu1 %1410 }
 0x3b3   : > { %1646 = vrot.lane.b32.xlu1 %v8309_v37, %s5343_s22  ;;  %4718 = vrcp.f32 %v1411_v63  ;;  %1644 = vrot.lane.b32.xlu0 %v8310_v12, %s5343_s22  ;;  %v1558_v55 = vpack.c.bf16 %v1512_v23, %v1510_v22  ;;  %v1557_v53 = vpack.c.bf16 %v1511_v6, %v1509_v16  ;;  %v8325_v22 = vld [vmem:[#allocation32_spill] sm:$0xff]  ;;  %v8326_v23 = vld [vmem:[#allocation43_spill] sm:$0xff]  ;;  %v8329_v16 = vld [vmem:[#allocation42_spill] sm:$0xff] }
 0x3b4   : > { %v1414_v44 = vpop.xlane.xlu0 %1413 }
 0x3b5   : > { %1589 = vmatprep.subr.bf16.mxu1 %v1558_v55  ;;  %4720 = vrcp.f32 %v1414_v44  ;;  %v4715_v41 = vpop.eup %4714  ;;  %v8327_v55 = vld [vmem:[#allocation45_spill] sm:$0xff]  ;;  %v8328_v44 = vld [vmem:[#allocation44_spill] sm:$0xff] }
 0x3b6   : > { %v1514_v48 = vmul.f32 %v4715_v41, %v5997_v15  ;;  %v1513_v2 = vmul.f32 %v4715_v41, %v5995_v50  ;;  %v8317_v15 = vld [vmem:[#allocation27_spill] sm:$0xff]  ;;  %v8322_v50 = vld [vmem:[#allocation40_spill] sm:$0xff] }
 0x3b7   : > { %1650 = vrot.lane.b32.xlu1 %v8313_v21, %s5343_s22  ;;  %1648 = vrot.lane.b32.xlu0 %v8314_v59, %s5343_s22 }
 0x3b8   : > { %v4717_v40 = vpop.eup %4716 }
 0x3b9   : > { %1590 = vmatpush1.bf16.xpose.msra.mxu1 %v1557_v53  ;;  %v1516_v57 = vmul.f32 %v4717_v40, %v6005_v38  ;;  %v1515_v14 = vmul.f32 %v4717_v40, %v5999_v52  ;;  %v8320_v52 = vld [vmem:[#allocation29_spill] sm:$0xff] }
 0x3ba   : > { %v1417_v54 = vpop.xlane.xlu1 %1416 }
 0x3bb   : > { %1654 = vrot.lane.b32.xlu1 %v8315_v17, %s5343_s22  ;;  %4722 = vrcp.f32 %v1417_v54  ;;  %1652 = vrot.lane.b32.xlu0 %v8316_v58, %s5343_s22  ;;  %v1560_v9 = vpack.c.bf16 %v1516_v57, %v1514_v48  ;;  %v1559_v60 = vpack.c.bf16 %v1515_v14, %v1513_v2 }
 0x3bc   : > { %v1420_v28 = vpop.xlane.xlu0 %1419 }
 0x3bd   : > { %v4719_v39 = vpop.eup %4718  ;;  %1591 = vmatprep.subr.bf16.mxu1 %v1560_v9  ;;  %4724 = vrcp.f32 %v1420_v28 }
 0x3be   : > { %v1518_v35 = vmul.f32 %v4719_v39, %v6013_v18  ;;  %v1517_v10 = vmul.f32 %v4719_v39, %v8323_v0 }
 0x3bf   : > { %1658 = vrot.lane.b32.xlu1 %v8317_v15, %s5343_s22  ;;  %v4721_v38 = vpop.eup %4720  ;;  %1656 = vrot.lane.b32.xlu0 %v8318_v27, %s5343_s22 }
 0x3c0   : > { %v1520_v5 = vmul.f32 %v4721_v38, %v8319_v49  ;;  %v1519_v31 = vmul.f32 %v4721_v38, %v8322_v50 }
 0x3c1   : > { %1592 = vmatpush1.bf16.xpose.msra.mxu1 %v1559_v60 }
 0x3c2   : > { %v1562_v51 = vpack.c.bf16 %v1520_v5, %v1518_v35  ;;  %v1561_v13 = vpack.c.bf16 %v1519_v31, %v1517_v10 }
 0x3c3   : > { %1662 = vrot.lane.b32.xlu1 %v8320_v52, %s5343_s22  ;;  %1660 = vrot.lane.b32.xlu0 %v8321_v62, %s5343_s22 }
 0x3c4   : > { %1593 = vmatprep.subr.bf16.mxu1 %v1562_v51 }
 0x3c5   : > { %v4723_v42 = vpop.eup %4722 }
 0x3c6   : > { %v1522_v63 = vmul.f32 %v4723_v42, %v8326_v23  ;;  %v1521_v41 = vmul.f32 %v4723_v42, %v8329_v16  ;;  %v8330_v23 = vld [vmem:[#allocation10_spill] sm:$0xff] }
 0x3c7   : > { %1666 = vrot.lane.b32.xlu1 %v8324_v19, %s5343_s22  ;;  %v4725_v18 = vpop.eup %4724  ;;  %1664 = vrot.lane.b32.xlu0 %v8325_v22, %s5343_s22 }
 0x3c8   : > { %v1524_v34 = vmul.f32 %v4725_v18, %v8327_v55  ;;  %v1523_v25 = vmul.f32 %v4725_v18, %v8328_v44 }
 0x3c9   : > { %1594 = vmatpush1.bf16.xpose.msra.mxu1 %v1561_v13 }
 0x3ca   : > { %v1564_v6 = vpack.c.bf16 %v1524_v34, %v1522_v63  ;;  %v1563_v53 = vpack.c.bf16 %v1523_v25, %v1521_v41 }
 0x3cc   : > { %1595 = vmatprep.subr.bf16.mxu1 %v1564_v6 }
 0x3d1   : > { %1596 = vmatpush1.bf16.xpose.msra.mxu1 %v1563_v53 }
 0x406   : > { %v1423_v40 = vpop.xlane.xlu1 %1422 }
 0x407   : > { %4726 = vrcp.f32 %v1423_v40  ;;  %v8331_v40 = vld [vmem:[#allocation4_spill] sm:$0xff] }
 0x408   : > { %v1426_v48 = vpop.xlane.xlu0 %1425 }
 0x409   : > { %4728 = vrcp.f32 %v1426_v48 }
 0x40e   : > { %v1429_v57 = vpop.xlane.xlu1 %1428 }
 0x40f   : > { %4730 = vrcp.f32 %v1429_v57 }
 0x411   : > { %v4727_v54 = vpop.eup %4726 }
 0x412   : > { %v1432_v9 = vpop.xlane.xlu0 %1431  ;;  %v1526_v28 = vmul.f32 %v4727_v54, %v6049_v61  ;;  %v1525_v2 = vmul.f32 %v4727_v54, %v6047_v11  ;;  %v8332_v54 = vld [vmem:[#allocation3_spill] sm:$0xff] }
 0x413   : > { %v4729_v14 = vpop.eup %4728  ;;  %4732 = vrcp.f32 %v1432_v9 }
 0x414   : > { %v1528_v39 = vmul.f32 %v4729_v14, %v6057_v20  ;;  %v1527_v38 = vmul.f32 %v4729_v14, %v6051_v8 }
 0x416   : > { %v1566_v35 = vpack.c.bf16 %v1528_v39, %v1526_v28  ;;  %v1565_v49 = vpack.c.bf16 %v1527_v38, %v1525_v2  ;;  %v8333_v28 = vld [vmem:[#allocation9_spill] sm:$0xff] }
 0x417   : > { %v1435_v60 = vpop.xlane.xlu1 %1434 }
 0x418   : > { %1597 = vmatprep.subr.bf16.mxu1 %v1566_v35  ;;  %4734 = vrcp.f32 %v1435_v60 }
 0x419   : > { %1598 = vmatpush1.bf16.xpose.msra.mxu1 %v1565_v49  ;;  %v4731_v51 = vpop.eup %4730 }
 0x41a   : > { %v1438_v5 = vpop.xlane.xlu0 %1437  ;;  %v1530_v42 = vmul.f32 %v4731_v51, %v6069_v3  ;;  %v1529_v20 = vmul.f32 %v4731_v51, %v6067_v32 }
 0x41b   : > { %4736 = vrcp.f32 %v1438_v5 }
 0x41d   : > { %v4733_v50 = vpop.eup %4732 }
 0x41e   : > { %v1532_v61 = vmul.f32 %v4733_v50, %v6077_v56  ;;  %v1531_v11 = vmul.f32 %v4733_v50, %v6075_v29 }
 0x41f   : > { %v1441_v31 = vpop.xlane.xlu1 %1440 }
 0x420   : > { %4738 = vrcp.f32 %v1441_v31  ;;  %v1568_v8 = vpack.c.bf16 %v1532_v61, %v1530_v42  ;;  %v1567_v0 = vpack.c.bf16 %v1531_v11, %v1529_v20 }
 0x422   : > { %1599 = vmatprep.subr.bf16.mxu1 %v1568_v8  ;;  %v1444_v18 = vpop.xlane.xlu0 %1443  ;;  %v4735_v13 = vpop.eup %4734 }
 0x423   : > { %v401_v10 = vpop.permute.xlu1 %400  ;;  %4740 = vrcp.f32 %v1444_v18  ;;  %1600 = vmatpush1.bf16.xpose.msra.mxu1 %v1567_v0  ;;  %v1534_v3 = vmul.f32 %v4735_v13, %v6089_v7  ;;  %v1533_v32 = vmul.f32 %v4735_v13, %v6087_v30 }
 0x424   : > { %v508_v63 = vadd.f32 %v8330_v23, %v401_v10  ;;  %v506_v39 = vadd.f32 %v8333_v28, %v401_v10 }
 0x425   : > { %v4737_v55 = vpop.eup %4736 }
 0x426   : > { %v811_v34 = vpack.c.bf16 %v508_v63, %v508_v63  ;;  %v1536_v56 = vmul.f32 %v4737_v55, %v6095_v1  ;;  %v1535_v29 = vmul.f32 %v4737_v55, %v6093_v4  ;;  %v810_v2 = vpack.c.bf16 %v506_v39, %v506_v39 }
 0x428   : > { %1605 = vmatprep.mubr.bf16.mxu1 %v811_v34  ;;  %v1570_v6 = vpack.c.bf16 %v1536_v56, %v1534_v3  ;;  %v1569_v44 = vpack.c.bf16 %v1535_v29, %v1533_v32 }
 0x42a   : > { %v4739_v25 = vpop.eup %4738  ;;  %1601 = vmatprep.subr.bf16.mxu1 %v1570_v6  ;;  %v386_v16 = vpop.permute.xlu0 %385 }
 0x42b   : > { %1602 = vmatpush1.bf16.xpose.msra.mxu1 %v1569_v44  ;;  %v1538_v53 = vmul.f32 %v4739_v25, %v6105_v24  ;;  %v492_v48 = vadd.f32 %v8331_v40, %v386_v16  ;;  %v1537_v1 = vmul.f32 %v4739_v25, %v6103_v26  ;;  %v490_v9 = vadd.f32 %v8332_v54, %v386_v16 }
 0x42c   : > { %v8334_v26 = vmov 0  }
 0x42d   : > { %v4741_v41 = vpop.eup %4740  ;;  %v1617_v14 = vpack.c.bf16 %v492_v48, %v492_v48  ;;  %v1616_v24 = vpack.c.bf16 %v490_v9, %v490_v9 }
 0x42e   : > { %v1540_v7 = vmul.f32 %v4741_v41, %v6111_v33  ;;  %v1539_v30 = vmul.f32 %v4741_v41, %v6109_v47  ;;  %v1637_v47 = vpop.permute.xlu1 %1636  ;;  %v1641_v60 = vpop.permute.xlu0 %1640 }
 0x42f   : > { %v1717_v33 = vsel %vm861_vm1, %v1616_v24, 0 }
 0x430   : > { %v1572_v57 = vpack.c.bf16 %v1540_v7, %v1538_v53  ;;  %v1571_v4 = vpack.c.bf16 %v1539_v30, %v1537_v1 }
 0x432   : > { %1603 = vmatprep.subr.bf16.mxu1 %v1572_v57  ;;  %v1639_v38 = vpop.permute.xlu1 %1638  ;;  %v1645_v49 = vpop.permute.xlu0 %1644 }
 0x433   : > { %1604 = vmatpush1.bf16.xpose.msra.mxu1 %v1571_v4 }
 0x434   : > { %4397 = vmatprep.subr.msk.bf16.mxu1 %vm861_vm1, %v1617_v14 }
 0x436   : > { %v1643_v35 = vpop.permute.xlu1 %1642  ;;  %v1649_v51 = vpop.permute.xlu0 %1648 }
 0x43a   : > { %1606 = vmatmul.mubr.bf16.vlgmr.msra.gmra.mrb[0].mxu1 %v810_v2  ;;  %v1647_v5 = vpop.permute.xlu1 %1646  ;;  %v1653_v31 = vpop.permute.xlu0 %1652 }
 0x43b   : > { %1723 = vmatpush1.bf16.msra.mxu1 %v1717_v33  ;;  %1754 = vmatprep.mubr.bf16.mxu1 %v8334_v26 }
 0x43e   : > { %v1651_v50 = vpop.permute.xlu1 %1650  ;;  %v1657_v61 = vpop.permute.xlu0 %1656 }
 0x442   : > { %4398 = vmatmul.mubr.msk.bf16.vlgmr.msra.gmra.mrb[4].mxu1 %vm812_vm2, %v1637_v47  ;;  %v1655_v42 = vpop.permute.xlu1 %1654  ;;  %v1661_v11 = vpop.permute.xlu0 %1660 }
 0x443   : > { %1764 = vmatprep.mubr.bf16.mxu1 %v8334_v26 }
 0x446   : > { %v1659_v20 = vpop.permute.xlu1 %1658  ;;  %v1665_v0 = vpop.permute.xlu0 %1664 }
 0x44a   : > { %4399 = vmatmul.mubr.msk.bf16.gmra.mrb[8].mxu1 %vm812_vm2, %v1639_v38  ;;  %v1663_v8 = vpop.permute.xlu1 %1662 }
 0x44b   : > { %1774 = vmatprep.mubr.bf16.mxu1 %v8334_v26 }
 0x44e   : > { %v1667_v10 = vpop.permute.xlu1 %1666 }
 0x452   : > { %4400 = vmatmul.mubr.msk.bf16.gmra.mrb[12].mxu1 %vm812_vm2, %v1641_v60 }
 0x453   : > { %1784 = vmatprep.mubr.bf16.mxu1 %v8334_v26 }
 0x45a   : > { %4401 = vmatmul.mubr.msk.bf16.gmra.mrb[16].mxu1 %vm812_vm2, %v1643_v35 }
 0x45b   : > { %1794 = vmatprep.mubr.bf16.mxu1 %v8334_v26 }
 0x462   : > { %4402 = vmatmul.mubr.msk.bf16.gmra.mrb[20].mxu1 %vm812_vm2, %v1645_v49 }
 0x463   : > { %1804 = vmatprep.mubr.bf16.mxu1 %v8334_v26 }
 0x46a   : > { %4403 = vmatmul.mubr.msk.bf16.gmra.mrb[24].mxu1 %vm812_vm2, %v1647_v5 }
 0x46b   : > { %1814 = vmatprep.mubr.bf16.mxu1 %v8334_v26 }
 0x472   : > { %4404 = vmatmul.mubr.msk.bf16.gmra.mrb[28].mxu1 %vm812_vm2, %v1649_v51 }
 0x473   : > { %1824 = vmatprep.mubr.bf16.mxu1 %v8334_v26 }
 0x47a   : > { %4405 = vmatmul.mubr.msk.bf16.gmra.mrb[32].mxu1 %vm812_vm2, %v1651_v50 }
 0x47b   : > { %1834 = vmatprep.mubr.bf16.mxu1 %v8334_v26 }
 0x482   : > { %4406 = vmatmul.mubr.msk.bf16.gmra.mrb[36].mxu1 %vm812_vm2, %v1653_v31 }
 0x483   : > { %1844 = vmatprep.mubr.bf16.mxu1 %v8334_v26 }
 0x48a   : > { %4407 = vmatmul.mubr.msk.bf16.gmra.mrb[40].mxu1 %vm812_vm2, %v1655_v42 }
 0x48b   : > { %1854 = vmatprep.mubr.bf16.mxu1 %v8334_v26 }
 0x492   : > { %4408 = vmatmul.mubr.msk.bf16.gmra.mrb[44].mxu1 %vm812_vm2, %v1657_v61 }
 0x493   : > { %1864 = vmatprep.mubr.bf16.mxu1 %v8334_v26 }
 0x49a   : > { %4409 = vmatmul.mubr.msk.bf16.gmra.mrb[48].mxu1 %vm812_vm2, %v1659_v20 }
 0x49b   : > { %1874 = vmatprep.mubr.bf16.mxu1 %v8334_v26 }
 0x4a2   : > { %4410 = vmatmul.mubr.msk.bf16.gmra.mrb[52].mxu1 %vm812_vm2, %v1661_v11 }
 0x4a3   : > { %1884 = vmatprep.mubr.bf16.mxu1 %v8334_v26 }
 0x4aa   : > { %4411 = vmatmul.mubr.msk.bf16.gmra.mrb[56].mxu1 %vm812_vm2, %v1663_v8 }
 0x4ab   : > { %1894 = vmatprep.mubr.bf16.mxu1 %v8334_v26 }
 0x4b2   : > { %4412 = vmatmul.mubr.msk.bf16.gmra.mrb[60].mxu1 %vm812_vm2, %v1665_v0 }
 0x4b3   : > { %1904 = vmatprep.mubr.bf16.mxu1 %v8334_v26 }
 0x4ba   : > { %4413 = vmatmul.mubr.msk.bf16.gmra.mrb[64].mxu1 %vm812_vm2, %v1667_v10 }
 0x50d   : > { %v6239_v18 = vpop.f32.mrb[0].mxu1 }
 0x50e   : > { %8335 = vst [vmem:[#allocation34_spill] sm:$0xff] %v6239_v18  ;;  %v6241_v13 = vpop.f32.mrb[1].mxu1 }
 0x50f   : > { %8336 = vst [vmem:[#allocation46_spill] sm:$0xff] %v6241_v13  ;;  %v1611_v23 = vpop.f32.mrb[2].mxu1 }
 0x510   : > { %v1612_v63 = vpop.f32.mrb[3].mxu1 }
 0x515   : > { %v6243_v55 = vpop.f32.mrb[4].mxu1 }
 0x516   : > { %v6245_v34 = vpop.f32.mrb[5].mxu1 }
 0x517   : > { %v6247_v3 = vpop.f32.mrb[6].mxu1  ;;  %v1915_v56 = vmax.f32 %v6243_v55, %v6245_v34 }
 0x518   : > { %v6251_v32 = vpop.f32.mrb[7].mxu1 }
 0x519   : > { %v1918_v29 = vmax.f32 %v6247_v3, %v6251_v32  ;;  %1916 = vmax.xlane.f32.xlu0 %v1915_v56 }
 0x51b   : > { %1919 = vmax.xlane.f32.xlu1 %v1918_v29 }
 0x51d   : > { %v6255_v6 = vpop.f32.mrb[8].mxu1 }
 0x51e   : > { %v6257_v44 = vpop.f32.mrb[9].mxu1 }
 0x51f   : > { %v6259_v25 = vpop.f32.mrb[10].mxu1  ;;  %v1921_v16 = vmax.f32 %v6255_v6, %v6257_v44 }
 0x520   : > { %v6263_v41 = vpop.f32.mrb[11].mxu1 }
 0x521   : > { %1922 = vmax.xlane.f32.xlu0 %v1921_v16  ;;  %v1924_v53 = vmax.f32 %v6259_v25, %v6263_v41 }
 0x525   : > { %1925 = vmax.xlane.f32.xlu0 %v1924_v53  ;;  %v6267_v40 = vpop.f32.mrb[12].mxu1 }
 0x526   : > { %v6269_v48 = vpop.f32.mrb[13].mxu1 }
 0x527   : > { %v1927_v7 = vmax.f32 %v6267_v40, %v6269_v48  ;;  %v6273_v1 = vpop.f32.mrb[14].mxu1 }
 0x528   : > { %v6275_v30 = vpop.f32.mrb[15].mxu1 }
 0x529   : > { %v1930_v57 = vmax.f32 %v6273_v1, %v6275_v30  ;;  %1928 = vmax.xlane.f32.xlu1 %v1927_v7 }
 0x52b   : > { %1931 = vmax.xlane.f32.xlu0 %v1930_v57 }
 0x52d   : > { %v6279_v4 = vpop.f32.mrb[16].mxu1 }
 0x52e   : > { %v6281_v54 = vpop.f32.mrb[17].mxu1 }
 0x52f   : > { %v1933_v9 = vmax.f32 %v6279_v4, %v6281_v54  ;;  %v6285_v14 = vpop.f32.mrb[18].mxu1 }
 0x530   : > { %v6287_v28 = vpop.f32.mrb[19].mxu1 }
 0x531   : > { %v1936_v39 = vmax.f32 %v6285_v14, %v6287_v28  ;;  %1934 = vmax.xlane.f32.xlu1 %v1933_v9 }
 0x533   : > { %1937 = vmax.xlane.f32.xlu0 %v1936_v39 }
 0x535   : > { %v6291_v24 = vpop.f32.mrb[20].mxu1 }
 0x536   : > { %v6293_v2 = vpop.f32.mrb[21].mxu1 }
 0x537   : > { %v1939_v33 = vmax.f32 %v6291_v24, %v6293_v2  ;;  %v6297_v47 = vpop.f32.mrb[22].mxu1 }
 0x538   : > { %v6299_v38 = vpop.f32.mrb[23].mxu1 }
 0x539   : > { %v1942_v60 = vmax.f32 %v6297_v47, %v6299_v38  ;;  %1940 = vmax.xlane.f32.xlu1 %v1939_v33 }
 0x53b   : > { %1943 = vmax.xlane.f32.xlu0 %v1942_v60 }
 0x53d   : > { %v6303_v35 = vpop.f32.mrb[24].mxu1 }
 0x53e   : > { %v6305_v49 = vpop.f32.mrb[25].mxu1 }
 0x53f   : > { %v1945_v5 = vmax.f32 %v6303_v35, %v6305_v49  ;;  %v6309_v51 = vpop.f32.mrb[26].mxu1 }
 0x540   : > { %v6311_v50 = vpop.f32.mrb[27].mxu1 }
 0x541   : > { %v1948_v31 = vmax.f32 %v6309_v51, %v6311_v50  ;;  %1946 = vmax.xlane.f32.xlu1 %v1945_v5 }
 0x543   : > { %1949 = vmax.xlane.f32.xlu0 %v1948_v31 }
 0x545   : > { %v6315_v42 = vpop.f32.mrb[28].mxu1 }
 0x546   : > { %v6317_v61 = vpop.f32.mrb[29].mxu1 }
 0x547   : > { %v1951_v20 = vmax.f32 %v6315_v42, %v6317_v61  ;;  %v6321_v11 = vpop.f32.mrb[30].mxu1 }
 0x548   : > { %v6323_v8 = vpop.f32.mrb[31].mxu1 }
 0x549   : > { %v1954_v0 = vmax.f32 %v6321_v11, %v6323_v8  ;;  %1952 = vmax.xlane.f32.xlu1 %v1951_v20 }
 0x54b   : > { %1955 = vmax.xlane.f32.xlu0 %v1954_v0 }
 0x54d   : > { %v6327_v10 = vpop.f32.mrb[32].mxu1 }
 0x54e   : > { %v6329_v23 = vpop.f32.mrb[33].mxu1 }
 0x54f   : > { %v1957_v63 = vmax.f32 %v6327_v10, %v6329_v23  ;;  %v6333_v56 = vpop.f32.mrb[34].mxu1 }
 0x550   : > { %v6335_v29 = vpop.f32.mrb[35].mxu1 }
 0x551   : > { %v1960_v16 = vmax.f32 %v6333_v56, %v6335_v29  ;;  %1958 = vmax.xlane.f32.xlu1 %v1957_v63 }
 0x553   : > { %1961 = vmax.xlane.f32.xlu0 %v1960_v16 }
 0x555   : > { %v6339_v53 = vpop.f32.mrb[36].mxu1 }
 0x556   : > { %v6341_v7 = vpop.f32.mrb[37].mxu1 }
 0x557   : > { %v1963_v57 = vmax.f32 %v6339_v53, %v6341_v7  ;;  %v6345_v9 = vpop.f32.mrb[38].mxu1 }
 0x558   : > { %v6347_v39 = vpop.f32.mrb[39].mxu1 }
 0x559   : > { %8337 = vst [vmem:[#allocation33_spill] sm:$0xff] %v6347_v39  ;;  %v1966_v33 = vmax.f32 %v6345_v9, %v6347_v39  ;;  %1964 = vmax.xlane.f32.xlu1 %v1963_v57 }
 0x55b   : > { %1967 = vmax.xlane.f32.xlu0 %v1966_v33 }
 0x55d   : > { %v6351_v60 = vpop.f32.mrb[40].mxu1 }
 0x55e   : > { %8338 = vst [vmem:[#allocation36_spill] sm:$0xff] %v6351_v60  ;;  %v6353_v5 = vpop.f32.mrb[41].mxu1 }
 0x55f   : > { %8339 = vst [vmem:[#allocation38_spill] sm:$0xff] %v6353_v5  ;;  %v1969_v31 = vmax.f32 %v6351_v60, %v6353_v5  ;;  %v6357_v20 = vpop.f32.mrb[42].mxu1 }
 0x560   : > { %8340 = vst [vmem:[#allocation37_spill] sm:$0xff] %v6357_v20  ;;  %v6359_v0 = vpop.f32.mrb[43].mxu1 }
 0x561   : > { %8341 = vst [vmem:[#allocation35_spill] sm:$0xff] %v6359_v0  ;;  %v1972_v63 = vmax.f32 %v6357_v20, %v6359_v0  ;;  %1970 = vmax.xlane.f32.xlu1 %v1969_v31 }
 0x563   : > { %1973 = vmax.xlane.f32.xlu0 %v1972_v63 }
 0x565   : > { %v6363_v16 = vpop.f32.mrb[44].mxu1 }
 0x566   : > { %8342 = vst [vmem:[#allocation41_spill] sm:$0xff] %v6363_v16  ;;  %v6365_v57 = vpop.f32.mrb[45].mxu1 }
 0x567   : > { %8343 = vst [vmem:[#allocation40_spill] sm:$0xff] %v6365_v57  ;;  %v1975_v33 = vmax.f32 %v6363_v16, %v6365_v57  ;;  %v6369_v13 = vpop.f32.mrb[46].mxu1 }
 0x568   : > { %8344 = vst [vmem:[#allocation39_spill] sm:$0xff] %v6369_v13  ;;  %v6371_v18 = vpop.f32.mrb[47].mxu1 }
 0x569   : > { %8345 = vst [vmem:[#allocation43_spill] sm:$0xff] %v6371_v18  ;;  %v1978_v26 = vmax.f32 %v6369_v13, %v6371_v18  ;;  %1976 = vmax.xlane.f32.xlu1 %v1975_v33 }
 0x56b   : > { %1979 = vmax.xlane.f32.xlu0 %v1978_v26 }
 0x56d   : > { %v6375_v22 = vpop.f32.mrb[48].mxu1 }
 0x56e   : > { %8346 = vst [vmem:[#allocation45_spill] sm:$0xff] %v6375_v22  ;;  %v6377_v31 = vpop.f32.mrb[49].mxu1 }
 0x56f   : > { %8347 = vst [vmem:[#allocation44_spill] sm:$0xff] %v6377_v31  ;;  %v1981_v63 = vmax.f32 %v6375_v22, %v6377_v31  ;;  %v6381_v19 = vpop.f32.mrb[50].mxu1 }
 0x570   : > { %8348 = vst [vmem:[#allocation42_spill] sm:$0xff] %v6381_v19  ;;  %v6383_v62 = vpop.f32.mrb[51].mxu1 }
 0x571   : > { %8349 = vst [vmem:[#allocation10_spill] sm:$0xff] %v6383_v62  ;;  %v1984_v52 = vmax.f32 %v6381_v19, %v6383_v62  ;;  %1982 = vmax.xlane.f32.xlu1 %v1981_v63 }
 0x573   : > { %1985 = vmax.xlane.f32.xlu0 %v1984_v52 }
 0x575   : > { %v6387_v27 = vpop.f32.mrb[52].mxu1 }
 0x576   : > { %v6389_v33 = vpop.f32.mrb[53].mxu1 }
 0x577   : > { %v6393_v15 = vpop.f32.mrb[54].mxu1 }
 0x578   : > { %v6395_v58 = vpop.f32.mrb[55].mxu1 }
 0x57d   : > { %v6399_v59 = vpop.f32.mrb[56].mxu1 }
 0x57e   : > { %v6401_v21 = vpop.f32.mrb[57].mxu1 }
 0x57f   : > { %v6405_v63 = vpop.f32.mrb[58].mxu1 }
 0x580   : > { %v6407_v12 = vpop.f32.mrb[59].mxu1 }
 0x585   : > { %v6411_v37 = vpop.f32.mrb[60].mxu1 }
 0x586   : > { %v6413_v45 = vpop.f32.mrb[61].mxu1 }
 0x587   : > { %v6417_v43 = vpop.f32.mrb[62].mxu1 }
 0x588   : > { %v6419_v46 = vpop.f32.mrb[63].mxu1 }
 0x58d   : > { %v6423_v36 = vpop.f32.mrb[64].mxu1 }
 0x58e   : > { %v6425_v62 = vpop.f32.mrb[65].mxu1 }
 0x58f   : > { %v6429_v19 = vpop.f32.mrb[66].mxu1 }
 0x590   : > { %v6431_v31 = vpop.f32.mrb[67].mxu1 }
 0x5a6   : > { %v1917_v22 = vpop.xlane.xlu0 %1916 }
 0x5a7   : > { %v2011_v18 = vsub.f32 %v6243_v55, %v1917_v22  ;;  %v2012_v13 = vsub.f32 %v6245_v34, %v1917_v22 }
 0x5a8   : > { %v1920_v52 = vpop.xlane.xlu1 %1919 }
 0x5a9   : > { %v2075_v57 = vmul.f32 1.442695, %v2011_v18  ;;  %v2077_v16 = vmul.f32 1.442695, %v2012_v13  ;;  %v2013_v0 = vsub.f32 %v6247_v3, %v1920_v52  ;;  %v2014_v20 = vsub.f32 %v6251_v32, %v1920_v52 }
 0x5ab   : > { %4742 = vpow2.f32 %v2075_v57  ;;  %v2079_v26 = vmul.f32 1.442695, %v2013_v0  ;;  %v2081_v5 = vmul.f32 1.442695, %v2014_v20 }
 0x5ac   : > { %4744 = vpow2.f32 %v2077_v16 }
 0x5ad   : > { %4746 = vpow2.f32 %v2079_v26 }
 0x5ae   : > { %4748 = vpow2.f32 %v2081_v5  ;;  %v1923_v60 = vpop.xlane.xlu0 %1922 }
 0x5af   : > { %v2015_v17 = vsub.f32 %v6255_v6, %v1923_v60  ;;  %v2016_v55 = vsub.f32 %v6257_v44, %v1923_v60 }
 0x5b1   : > { %v2083_v39 = vmul.f32 1.442695, %v2015_v17  ;;  %v2085_v22 = vmul.f32 1.442695, %v2016_v55 }
 0x5b2   : > { %v1926_v34 = vpop.xlane.xlu0 %1925 }
 0x5b3   : > { %4750 = vpow2.f32 %v2083_v39  ;;  %v2017_v18 = vsub.f32 %v6259_v25, %v1926_v34  ;;  %v2018_v13 = vsub.f32 %v6263_v41, %v1926_v34 }
 0x5b4   : > { %4752 = vpow2.f32 %v2085_v22  ;;  %v8350_v22 = vmax.f32 %v6387_v27, %v6389_v33 }
 0x5b5   : > { %v6443_v3 = vpop.eup %4742  ;;  %v2087_v32 = vmul.f32 1.442695, %v2017_v18  ;;  %v2089_v20 = vmul.f32 1.442695, %v2018_v13 }
 0x5b6   : > { %v6445_v0 = vpop.eup %4744  ;;  %v1929_v5 = vpop.xlane.xlu1 %1928 }
 0x5b7   : > { %v6447_v16 = vpop.eup %4746  ;;  %4754 = vpow2.f32 %v2087_v32  ;;  %v2019_v17 = vsub.f32 %v6267_v40, %v1929_v5  ;;  %v2020_v6 = vsub.f32 %v6269_v48, %v1929_v5  ;;  %v2203_v44 = vadd.f32 %v6445_v0, %v6443_v3 }
 0x5b8   : > { %v6453_v25 = vpop.eup %4748  ;;  %4756 = vpow2.f32 %v2089_v20  ;;  %v1932_v41 = vpop.xlane.xlu0 %1931  ;;  %v8351_v32 = vmax.f32 %v6393_v15, %v6395_v58 }
 0x5b9   : > { %v2091_v39 = vmul.f32 1.442695, %v2019_v17  ;;  %v2093_v60 = vmul.f32 1.442695, %v2020_v6  ;;  %2204 = vadd.xlane.f32.xlu1 %v2203_v44  ;;  %v2021_v57 = vsub.f32 %v6273_v1, %v1932_v41  ;;  %v2022_v26 = vsub.f32 %v6275_v30, %v1932_v41 }
 0x5ba   : > { %v2206_v52 = vadd.f32 %v6453_v25, %v6447_v16 }
 0x5bb   : > { %4758 = vpow2.f32 %v2091_v39  ;;  %v2095_v40 = vmul.f32 1.442695, %v2021_v57  ;;  %v2097_v48 = vmul.f32 1.442695, %v2022_v26  ;;  %v8352_v26 = vmax.f32 %v6399_v59, %v6401_v21 }
 0x5bc   : > { %4760 = vpow2.f32 %v2093_v60  ;;  %2207 = vadd.xlane.f32.xlu0 %v2206_v52 }
 0x5bd   : > { %v6459_v55 = vpop.eup %4750  ;;  %4762 = vpow2.f32 %v2095_v40  ;;  %1988 = vmax.xlane.f32.xlu1 %v8350_v22 }
 0x5be   : > { %v6464_v34 = vpop.eup %4752  ;;  %4764 = vpow2.f32 %v2097_v48  ;;  %v1935_v1 = vpop.xlane.xlu1 %1934 }
 0x5bf   : > { %v2023_v30 = vsub.f32 %v6279_v4, %v1935_v1  ;;  %v2024_v18 = vsub.f32 %v6281_v54, %v1935_v1  ;;  %v2209_v13 = vadd.f32 %v6464_v34, %v6459_v55 }
 0x5c0   : > { %1991 = vmax.xlane.f32.xlu0 %v8351_v32  ;;  %v1938_v20 = vpop.xlane.xlu0 %1937  ;;  %v8353_v32 = vmax.f32 %v6405_v63, %v6407_v12 }
 0x5c1   : > { %v6473_v5 = vpop.eup %4754  ;;  %v2099_v17 = vmul.f32 1.442695, %v2023_v30  ;;  %v2101_v6 = vmul.f32 1.442695, %v2024_v18  ;;  %2210 = vadd.xlane.f32.xlu1 %v2209_v13  ;;  %v2025_v44 = vsub.f32 %v6285_v14, %v1938_v20  ;;  %v2026_v41 = vsub.f32 %v6287_v28, %v1938_v20 }
 0x5c2   : > { %v6477_v4 = vpop.eup %4756 }
 0x5c3   : > { %4766 = vpow2.f32 %v2099_v17  ;;  %v2103_v54 = vmul.f32 1.442695, %v2025_v44  ;;  %v2105_v39 = vmul.f32 1.442695, %v2026_v41  ;;  %v2212_v60 = vadd.f32 %v6477_v4, %v6473_v5 }
 0x5c4   : > { %4768 = vpow2.f32 %v2101_v6  ;;  %v8354_v41 = vmax.f32 %v6411_v37, %v6413_v45 }
 0x5c5   : > { %v6481_v57 = vpop.eup %4758  ;;  %4770 = vpow2.f32 %v2103_v54  ;;  %1994 = vmax.xlane.f32.xlu1 %v8352_v26  ;;  %2213 = vadd.xlane.f32.xlu0 %v2212_v60 }
 0x5c6   : > { %v6486_v14 = vpop.eup %4760  ;;  %4772 = vpow2.f32 %v2105_v39  ;;  %v1941_v28 = vpop.xlane.xlu1 %1940 }
 0x5c7   : > { %v6488_v52 = vpop.eup %4762  ;;  %v2027_v40 = vsub.f32 %v6291_v24, %v1941_v28  ;;  %v2028_v48 = vsub.f32 %v6293_v2, %v1941_v28  ;;  %v2215_v22 = vadd.f32 %v6486_v14, %v6481_v57 }
 0x5c8   : > { %v6494_v1 = vpop.eup %4764  ;;  %v1944_v30 = vpop.xlane.xlu0 %1943 }
 0x5c9   : > { %v2107_v18 = vmul.f32 1.442695, %v2027_v40  ;;  %v2109_v13 = vmul.f32 1.442695, %v2028_v48  ;;  %2216 = vadd.xlane.f32.xlu1 %v2215_v22  ;;  %1997 = vmax.xlane.f32.xlu0 %v8353_v32  ;;  %v2029_v20 = vsub.f32 %v6297_v47, %v1944_v30  ;;  %v2030_v17 = vsub.f32 %v6299_v38, %v1944_v30 }
 0x5ca   : > { %v2218_v6 = vadd.f32 %v6494_v1, %v6488_v52  ;;  %v8355_v30 = vmax.f32 %v6417_v43, %v6419_v46 }
 0x5cb   : > { %4774 = vpow2.f32 %v2107_v18  ;;  %v2111_v24 = vmul.f32 1.442695, %v2029_v20  ;;  %v2113_v2 = vmul.f32 1.442695, %v2030_v17  ;;  %v8356_v17 = vmax.f32 %v6423_v36, %v6425_v62 }
 0x5cc   : > { %4776 = vpow2.f32 %v2109_v13 }
 0x5cd   : > { %v6503_v44 = vpop.eup %4766  ;;  %4778 = vpow2.f32 %v2111_v24  ;;  %2000 = vmax.xlane.f32.xlu1 %v8354_v41  ;;  %2219 = vadd.xlane.f32.xlu0 %v2218_v6 }
 0x5ce   : > { %v6508_v54 = vpop.eup %4768  ;;  %4780 = vpow2.f32 %v2113_v2  ;;  %v1947_v47 = vpop.xlane.xlu1 %1946 }
 0x5cf   : > { %v6510_v38 = vpop.eup %4770  ;;  %v2031_v39 = vsub.f32 %v6303_v35, %v1947_v47  ;;  %v2032_v60 = vsub.f32 %v6305_v49, %v1947_v47  ;;  %v2221_v26 = vadd.f32 %v6508_v54, %v6503_v44 }
 0x5d0   : > { %v6516_v28 = vpop.eup %4772  ;;  %v1950_v40 = vpop.xlane.xlu0 %1949 }
 0x5d1   : > { %v2115_v48 = vmul.f32 1.442695, %v2031_v39  ;;  %v2117_v22 = vmul.f32 1.442695, %v2032_v60  ;;  %2222 = vadd.xlane.f32.xlu1 %v2221_v26  ;;  %2003 = vmax.xlane.f32.xlu0 %v8355_v30  ;;  %v2033_v18 = vsub.f32 %v6309_v51, %v1950_v40  ;;  %v2034_v13 = vsub.f32 %v6311_v50, %v1950_v40 }
 0x5d2   : > { %v2224_v32 = vadd.f32 %v6516_v28, %v6510_v38  ;;  %v8357_v40 = vmax.f32 %v6429_v19, %v6431_v31 }
 0x5d3   : > { %4782 = vpow2.f32 %v2115_v48  ;;  %v2119_v35 = vmul.f32 1.442695, %v2033_v18  ;;  %v2121_v49 = vmul.f32 1.442695, %v2034_v13 }
 0x5d4   : > { %4784 = vpow2.f32 %v2117_v22 }
 0x5d5   : > { %v6525_v20 = vpop.eup %4774  ;;  %4786 = vpow2.f32 %v2119_v35  ;;  %2006 = vmax.xlane.f32.xlu1 %v8356_v17  ;;  %2225 = vadd.xlane.f32.xlu0 %v2224_v32 }
 0x5d6   : > { %v6530_v24 = vpop.eup %4776  ;;  %4788 = vpow2.f32 %v2121_v49  ;;  %v1953_v51 = vpop.xlane.xlu1 %1952 }
 0x5d7   : > { %v6532_v50 = vpop.eup %4778  ;;  %v2035_v2 = vsub.f32 %v6315_v42, %v1953_v51  ;;  %v2036_v6 = vsub.f32 %v6317_v61, %v1953_v51  ;;  %v2227_v41 = vadd.f32 %v6530_v24, %v6525_v20 }
 0x5d8   : > { %v6538_v47 = vpop.eup %4780  ;;  %v1956_v39 = vpop.xlane.xlu0 %1955 }
 0x5d9   : > { %v2123_v60 = vmul.f32 1.442695, %v2035_v2  ;;  %v2125_v26 = vmul.f32 1.442695, %v2036_v6  ;;  %2228 = vadd.xlane.f32.xlu1 %v2227_v41  ;;  %2009 = vmax.xlane.f32.xlu0 %v8357_v40  ;;  %v2037_v48 = vsub.f32 %v6321_v11, %v1956_v39  ;;  %v2038_v22 = vsub.f32 %v6323_v8, %v1956_v39 }
 0x5da   : > { %v2230_v30 = vadd.f32 %v6538_v47, %v6532_v50 }
 0x5db   : > { %4790 = vpow2.f32 %v2123_v60  ;;  %v2127_v42 = vmul.f32 1.442695, %v2037_v48  ;;  %v2129_v61 = vmul.f32 1.442695, %v2038_v22 }
 0x5dc   : > { %4792 = vpow2.f32 %v2125_v26 }
 0x5dd   : > { %v6547_v18 = vpop.eup %4782  ;;  %4794 = vpow2.f32 %v2127_v42  ;;  %2231 = vadd.xlane.f32.xlu0 %v2230_v30 }
 0x5de   : > { %v6549_v13 = vpop.eup %4784  ;;  %4796 = vpow2.f32 %v2129_v61  ;;  %v1959_v35 = vpop.xlane.xlu1 %1958 }
 0x5df   : > { %v6551_v49 = vpop.eup %4786  ;;  %v2039_v11 = vsub.f32 %v6327_v10, %v1959_v35  ;;  %v2040_v8 = vsub.f32 %v6329_v23, %v1959_v35  ;;  %v2233_v32 = vadd.f32 %v6549_v13, %v6547_v18 }
 0x5e0   : > { %v6557_v17 = vpop.eup %4788  ;;  %v1962_v51 = vpop.xlane.xlu0 %1961 }
 0x5e1   : > { %v2131_v2 = vmul.f32 1.442695, %v2039_v11  ;;  %v2133_v6 = vmul.f32 1.442695, %v2040_v8  ;;  %2234 = vadd.xlane.f32.xlu1 %v2233_v32  ;;  %v2041_v41 = vsub.f32 %v6333_v56, %v1962_v51  ;;  %v2042_v39 = vsub.f32 %v6335_v29, %v1962_v51  ;;  %v8358_v32 = vld [vmem:[#allocation33_spill] sm:$0xff] }
 0x5e2   : > { %v2236_v60 = vadd.f32 %v6557_v17, %v6551_v49 }
 0x5e3   : > { %4798 = vpow2.f32 %v2131_v2  ;;  %v2135_v10 = vmul.f32 1.442695, %v2041_v41  ;;  %v2137_v26 = vmul.f32 1.442695, %v2042_v39 }
 0x5e4   : > { %4800 = vpow2.f32 %v2133_v6  ;;  %2237 = vadd.xlane.f32.xlu0 %v2236_v60 }
 0x5e5   : > { %v6563_v23 = vpop.eup %4790  ;;  %4802 = vpow2.f32 %v2135_v10 }
 0x5e6   : > { %v6565_v40 = vpop.eup %4792  ;;  %4804 = vpow2.f32 %v2137_v26  ;;  %v1965_v48 = vpop.xlane.xlu1 %1964  ;;  %v8362_v26 = vld [vmem:[#allocation38_spill] sm:$0xff] }
 0x5e7   : > { %v6567_v22 = vpop.eup %4794  ;;  %v2043_v56 = vsub.f32 %v6339_v53, %v1965_v48  ;;  %v2044_v29 = vsub.f32 %v6341_v7, %v1965_v48  ;;  %v2239_v42 = vadd.f32 %v6565_v40, %v6563_v23 }
 0x5e8   : > { %v6573_v61 = vpop.eup %4796  ;;  %v1968_v30 = vpop.xlane.xlu0 %1967 }
 0x5e9   : > { %v2139_v35 = vmul.f32 1.442695, %v2043_v56  ;;  %v2141_v11 = vmul.f32 1.442695, %v2044_v29  ;;  %2240 = vadd.xlane.f32.xlu1 %v2239_v42  ;;  %v2045_v8 = vsub.f32 %v6345_v9, %v1968_v30  ;;  %v2046_v51 = vsub.f32 %v8358_v32, %v1968_v30  ;;  %v8361_v9 = vld [vmem:[#allocation36_spill] sm:$0xff]  ;;  %v8365_v32 = vld [vmem:[#allocation35_spill] sm:$0xff] }
 0x5ea   : > { %v2242_v2 = vadd.f32 %v6573_v61, %v6567_v22 }
 0x5eb   : > { %4806 = vpow2.f32 %v2139_v35  ;;  %v2143_v53 = vmul.f32 1.442695, %v2045_v8  ;;  %v2145_v6 = vmul.f32 1.442695, %v2046_v51 }
 0x5ec   : > { %4808 = vpow2.f32 %v2141_v11  ;;  %2243 = vadd.xlane.f32.xlu0 %v2242_v2  ;;  %v8364_v11 = vld [vmem:[#allocation37_spill] sm:$0xff] }
 0x5ed   : > { %v6579_v7 = vpop.eup %4798  ;;  %4810 = vpow2.f32 %v2143_v53 }
 0x5ee   : > { %8359 = vst [vmem:[#allocation4_spill] sm:$0xff] %v6579_v7  ;;  %v6581_v41 = vpop.eup %4800  ;;  %4812 = vpow2.f32 %v2145_v6  ;;  %v1971_v39 = vpop.xlane.xlu1 %1970 }
 0x5ef   : > { %v6583_v60 = vpop.eup %4802  ;;  %v2047_v10 = vsub.f32 %v8361_v9, %v1971_v39  ;;  %v2048_v48 = vsub.f32 %v8362_v26, %v1971_v39  ;;  %v2245_v56 = vadd.f32 %v6581_v41, %v6579_v7  ;;  %v8373_v7 = vld [vmem:[#allocation43_spill] sm:$0xff] }
 0x5f0   : > { %8360 = vst [vmem:[#allocation3_spill] sm:$0xff] %v6583_v60  ;;  %v6589_v29 = vpop.eup %4804  ;;  %v1974_v42 = vpop.xlane.xlu0 %1973 }
 0x5f1   : > { %8363 = vst [vmem:[#allocation9_spill] sm:$0xff] %v6589_v29  ;;  %v2147_v30 = vmul.f32 1.442695, %v2047_v10  ;;  %v2149_v35 = vmul.f32 1.442695, %v2048_v48  ;;  %2246 = vadd.xlane.f32.xlu1 %v2245_v56  ;;  %v2049_v8 = vsub.f32 %v8364_v11, %v1974_v42  ;;  %v2050_v51 = vsub.f32 %v8365_v32, %v1974_v42  ;;  %v8369_v48 = vld [vmem:[#allocation41_spill] sm:$0xff] }
 0x5f2   : > { %v2248_v2 = vadd.f32 %v6589_v29, %v6583_v60  ;;  %v8370_v42 = vld [vmem:[#allocation40_spill] sm:$0xff] }
 0x5f3   : > { %4814 = vpow2.f32 %v2147_v30  ;;  %v2151_v53 = vmul.f32 1.442695, %v2049_v8  ;;  %v2153_v6 = vmul.f32 1.442695, %v2050_v51 }
 0x5f4   : > { %4816 = vpow2.f32 %v2149_v35  ;;  %2249 = vadd.xlane.f32.xlu0 %v2248_v2  ;;  %v8372_v2 = vld [vmem:[#allocation39_spill] sm:$0xff] }
 0x5f5   : > { %v6595_v39 = vpop.eup %4806  ;;  %4818 = vpow2.f32 %v2151_v53 }
 0x5f6   : > { %8366 = vst [vmem:[#allocation33_spill] sm:$0xff] %v6595_v39  ;;  %v6597_v9 = vpop.eup %4808  ;;  %4820 = vpow2.f32 %v2153_v6  ;;  %v1977_v10 = vpop.xlane.xlu1 %1976 }
 0x5f7   : > { %8367 = vst [vmem:[#allocation36_spill] sm:$0xff] %v6597_v9  ;;  %v6599_v26 = vpop.eup %4810  ;;  %v2051_v56 = vsub.f32 %v8369_v48, %v1977_v10  ;;  %v2052_v11 = vsub.f32 %v8370_v42, %v1977_v10  ;;  %v2251_v30 = vadd.f32 %v6597_v9, %v6595_v39 }
 0x5f8   : > { %8368 = vst [vmem:[#allocation38_spill] sm:$0xff] %v6599_v26  ;;  %v6605_v8 = vpop.eup %4812  ;;  %v1980_v35 = vpop.xlane.xlu0 %1979 }
 0x5f9   : > { %8371 = vst [vmem:[#allocation37_spill] sm:$0xff] %v6605_v8  ;;  %v2155_v32 = vmul.f32 1.442695, %v2051_v56  ;;  %v2157_v51 = vmul.f32 1.442695, %v2052_v11  ;;  %2252 = vadd.xlane.f32.xlu1 %v2251_v30  ;;  %v2053_v53 = vsub.f32 %v8372_v2, %v1980_v35  ;;  %v2054_v6 = vsub.f32 %v8373_v7, %v1980_v35  ;;  %v8374_v30 = vld [vmem:[#allocation45_spill] sm:$0xff] }
 0x5fa   : > { %v2254_v60 = vadd.f32 %v6605_v8, %v6599_v26  ;;  %v8375_v7 = vld [vmem:[#allocation44_spill] sm:$0xff]  ;;  %v8377_v26 = vld [vmem:[#allocation10_spill] sm:$0xff] }
 0x5fb   : > { %4822 = vpow2.f32 %v2155_v32  ;;  %v2159_v48 = vmul.f32 1.442695, %v2053_v53  ;;  %v2161_v29 = vmul.f32 1.442695, %v2054_v6 }
 0x5fc   : > { %4824 = vpow2.f32 %v2157_v51  ;;  %2255 = vadd.xlane.f32.xlu0 %v2254_v60 }
 0x5fd   : > { %v6611_v10 = vpop.eup %4814  ;;  %4826 = vpow2.f32 %v2159_v48  ;;  %v8376_v48 = vld [vmem:[#allocation42_spill] sm:$0xff] }
 0x5fe   : > { %v6613_v42 = vpop.eup %4816  ;;  %4828 = vpow2.f32 %v2161_v29  ;;  %v1983_v56 = vpop.xlane.xlu1 %1982 }
 0x5ff   : > { %v6615_v11 = vpop.eup %4818  ;;  %v2055_v2 = vsub.f32 %v8374_v30, %v1983_v56  ;;  %v2056_v35 = vsub.f32 %v8375_v7, %v1983_v56  ;;  %v2257_v32 = vadd.f32 %v6613_v42, %v6611_v10 }
 0x600   : > { %v6621_v53 = vpop.eup %4820  ;;  %v1986_v51 = vpop.xlane.xlu0 %1985 }
 0x601   : > { %v2163_v60 = vmul.f32 1.442695, %v2055_v2  ;;  %v2165_v6 = vmul.f32 1.442695, %v2056_v35  ;;  %2258 = vadd.xlane.f32.xlu1 %v2257_v32  ;;  %v2057_v39 = vsub.f32 %v8376_v48, %v1986_v51  ;;  %v2058_v29 = vsub.f32 %v8377_v26, %v1986_v51 }
 0x602   : > { %v2260_v8 = vadd.f32 %v6621_v53, %v6615_v11 }
 0x603   : > { %4830 = vpow2.f32 %v2163_v60  ;;  %v2167_v30 = vmul.f32 1.442695, %v2057_v39  ;;  %v2169_v9 = vmul.f32 1.442695, %v2058_v29 }
 0x604   : > { %4832 = vpow2.f32 %v2165_v6  ;;  %2261 = vadd.xlane.f32.xlu0 %v2260_v8 }
 0x605   : > { %v6627_v56 = vpop.eup %4822  ;;  %4834 = vpow2.f32 %v2167_v30 }
 0x606   : > { %8378 = vst [vmem:[#allocation35_spill] sm:$0xff] %v6627_v56  ;;  %v6629_v7 = vpop.eup %4824  ;;  %4836 = vpow2.f32 %v2169_v9 }
 0x607   : > { %v6631_v2 = vpop.eup %4826  ;;  %v2263_v35 = vadd.f32 %v6629_v7, %v6627_v56 }
 0x608   : > { %8379 = vst [vmem:[#allocation41_spill] sm:$0xff] %v6631_v2  ;;  %v6635_v26 = vpop.eup %4828 }
 0x609   : > { %8380 = vst [vmem:[#allocation40_spill] sm:$0xff] %v6635_v26  ;;  %2264 = vadd.xlane.f32.xlu1 %v2263_v35  ;;  %v2266_v39 = vadd.f32 %v6635_v26, %v6631_v2 }
 0x60b   : > { %2267 = vadd.xlane.f32.xlu0 %v2266_v39 }
 0x60d   : > { %v6639_v32 = vpop.eup %4830 }
 0x60e   : > { %8381 = vst [vmem:[#allocation39_spill] sm:$0xff] %v6639_v32  ;;  %v6641_v8 = vpop.eup %4832 }
 0x60f   : > { %8382 = vst [vmem:[#allocation43_spill] sm:$0xff] %v6641_v8  ;;  %v6643_v51 = vpop.eup %4834  ;;  %v2269_v9 = vadd.f32 %v6641_v8, %v6639_v32 }
 0x610   : > { %8383 = vst [vmem:[#allocation45_spill] sm:$0xff] %v6643_v51  ;;  %v6647_v60 = vpop.eup %4836 }
 0x611   : > { %8384 = vst [vmem:[#allocation44_spill] sm:$0xff] %v6647_v60  ;;  %2270 = vadd.xlane.f32.xlu1 %v2269_v9  ;;  %v2272_v6 = vadd.f32 %v6647_v60, %v6643_v51 }
 0x613   : > { %2273 = vadd.xlane.f32.xlu0 %v2272_v6 }
 0x646   : > { %v2205_v48 = vpop.xlane.xlu1 %2204 }
 0x647   : > { %4838 = vrcp.f32 %v2205_v48 }
 0x649   : > { %v2208_v29 = vpop.xlane.xlu0 %2207 }
 0x64a   : > { %4840 = vrcp.f32 %v2208_v29  ;;  %v1989_v30 = vpop.xlane.xlu1 %1988 }
 0x64b   : > { %v2059_v35 = vsub.f32 %v6387_v27, %v1989_v30  ;;  %v2060_v39 = vsub.f32 %v6389_v33, %v1989_v30 }
 0x64d   : > { %v2171_v56 = vmul.f32 1.442695, %v2059_v35  ;;  %v2173_v2 = vmul.f32 1.442695, %v2060_v39  ;;  %v1992_v26 = vpop.xlane.xlu0 %1991 }
 0x64e   : > { %v2061_v32 = vsub.f32 %v6393_v15, %v1992_v26  ;;  %v2062_v9 = vsub.f32 %v6395_v58, %v1992_v26  ;;  %v2211_v8 = vpop.xlane.xlu1 %2210 }
 0x64f   : > { %4842 = vpow2.f32 %v2171_v56 }
 0x650   : > { %4844 = vpow2.f32 %v2173_v2  ;;  %v2175_v6 = vmul.f32 1.442695, %v2061_v32  ;;  %v2177_v51 = vmul.f32 1.442695, %v2062_v9 }
 0x651   : > { %v4839_v48 = vpop.eup %4838  ;;  %4846 = vrcp.f32 %v2211_v8 }
 0x652   : > { %4848 = vpow2.f32 %v2175_v6  ;;  %v1995_v29 = vpop.xlane.xlu1 %1994  ;;  %v2214_v60 = vpop.xlane.xlu0 %2213  ;;  %v2332_v15 = vmul.f32 %v4839_v48, %v6445_v0  ;;  %v2331_v35 = vmul.f32 %v4839_v48, %v6443_v3 }
 0x653   : > { %4850 = vpow2.f32 %v2177_v51  ;;  %v2063_v27 = vsub.f32 %v6399_v59, %v1995_v29  ;;  %v2064_v33 = vsub.f32 %v6401_v21, %v1995_v29 }
 0x654   : > { %v4841_v30 = vpop.eup %4840  ;;  %4852 = vrcp.f32 %v2214_v60 }
 0x655   : > { %v2179_v58 = vmul.f32 1.442695, %v2063_v27  ;;  %v2181_v26 = vmul.f32 1.442695, %v2064_v33  ;;  %v2334_v56 = vmul.f32 %v4841_v30, %v6453_v25  ;;  %v2333_v2 = vmul.f32 %v4841_v30, %v6447_v16 }
 0x656   : > { %v2217_v32 = vpop.xlane.xlu1 %2216  ;;  %v1998_v8 = vpop.xlane.xlu0 %1997 }
 0x657   : > { %4854 = vpow2.f32 %v2179_v58  ;;  %v2065_v51 = vsub.f32 %v6405_v63, %v1998_v8  ;;  %v2066_v59 = vsub.f32 %v6407_v12, %v1998_v8  ;;  %v2396_v21 = vpack.c.bf16 %v2334_v56, %v2332_v15 }
 0x658   : > { %4856 = vpow2.f32 %v2181_v26  ;;  %v2395_v60 = vpack.c.bf16 %v2333_v2, %v2331_v35 }
 0x659   : > { %v6663_v39 = vpop.eup %4842  ;;  %4858 = vrcp.f32 %v2217_v32  ;;  %v2183_v0 = vmul.f32 1.442695, %v2065_v51  ;;  %v2185_v9 = vmul.f32 1.442695, %v2066_v59  ;;  %2427 = vmatprep.subr.bf16.mxu0 %v2396_v21 }
 0x65a   : > { %v6665_v25 = vpop.eup %4844  ;;  %2428 = vmatpush1.bf16.xpose.msra.mxu0 %v2395_v60  ;;  %v2001_v16 = vpop.xlane.xlu1 %2000 }
 0x65b   : > { %v2220_v6 = vpop.xlane.xlu0 %2219  ;;  %v4847_v3 = vpop.eup %4846  ;;  %4860 = vpow2.f32 %v2183_v0  ;;  %v2067_v63 = vsub.f32 %v6411_v37, %v2001_v16  ;;  %v2068_v12 = vsub.f32 %v6413_v45, %v2001_v16  ;;  %v2275_v48 = vadd.f32 %v6665_v25, %v6663_v39 }
 0x65c   : > { %v6671_v29 = vpop.eup %4848  ;;  %4862 = vpow2.f32 %v2185_v9  ;;  %v2336_v45 = vmul.f32 %v4847_v3, %v6464_v34  ;;  %v2335_v8 = vmul.f32 %v4847_v3, %v6459_v55 }
 0x65d   : > { %v6673_v27 = vpop.eup %4850  ;;  %v2187_v33 = vmul.f32 1.442695, %v2067_v63  ;;  %v2189_v30 = vmul.f32 1.442695, %v2068_v12  ;;  %4864 = vrcp.f32 %v2220_v6  ;;  %2276 = vadd.xlane.f32.xlu1 %v2275_v48 }
 0x65e   : > { %v4853_v15 = vpop.eup %4852  ;;  %v2223_v58 = vpop.xlane.xlu1 %2222  ;;  %v2278_v26 = vadd.f32 %v6673_v27, %v6671_v29 }
 0x65f   : > { %v2004_v37 = vpop.xlane.xlu0 %2003  ;;  %4866 = vpow2.f32 %v2187_v33  ;;  %v2338_v32 = vmul.f32 %v4853_v15, %v6477_v4  ;;  %v2337_v35 = vmul.f32 %v4853_v15, %v6473_v5 }
 0x660   : > { %v2069_v56 = vsub.f32 %v6417_v43, %v2004_v37  ;;  %v2070_v2 = vsub.f32 %v6419_v46, %v2004_v37  ;;  %4868 = vpow2.f32 %v2189_v30  ;;  %2279 = vadd.xlane.f32.xlu0 %v2278_v26 }
 0x661   : > { %v6683_v51 = vpop.eup %4854  ;;  %v2398_v60 = vpack.c.bf16 %v2338_v32, %v2336_v45  ;;  %4870 = vrcp.f32 %v2223_v58  ;;  %v2397_v9 = vpack.c.bf16 %v2337_v35, %v2335_v8 }
 0x662   : > { %v2191_v59 = vmul.f32 1.442695, %v2069_v56  ;;  %v2193_v21 = vmul.f32 1.442695, %v2070_v2  ;;  %v6685_v0 = vpop.eup %4856  ;;  %v2007_v34 = vpop.xlane.xlu1 %2006 }
 0x663   : > { %v2226_v43 = vpop.xlane.xlu0 %2225  ;;  %v4859_v46 = vpop.eup %4858  ;;  %v2071_v4 = vsub.f32 %v6423_v36, %v2007_v34  ;;  %v2072_v16 = vsub.f32 %v6425_v62, %v2007_v34  ;;  %2429 = vmatprep.subr.bf16.mxu0 %v2398_v60  ;;  %v2281_v55 = vadd.f32 %v6685_v0, %v6683_v51 }
 0x664   : > { %4872 = vpow2.f32 %v2191_v59  ;;  %2430 = vmatpush1.bf16.xpose.msra.mxu0 %v2397_v9  ;;  %v2340_v48 = vmul.f32 %v4859_v46, %v6486_v14  ;;  %v2339_v26 = vmul.f32 %v4859_v46, %v6481_v57 }
 0x665   : > { %4874 = vpow2.f32 %v2193_v21  ;;  %v6691_v5 = vpop.eup %4860  ;;  %v2195_v6 = vmul.f32 1.442695, %v2071_v4  ;;  %v2197_v3 = vmul.f32 1.442695, %v2072_v16  ;;  %2282 = vadd.xlane.f32.xlu1 %v2281_v55 }
 0x666   : > { %4876 = vrcp.f32 %v2226_v43  ;;  %v6693_v63 = vpop.eup %4862  ;;  %v2229_v62 = vpop.xlane.xlu1 %2228 }
 0x667   : > { %v2010_v12 = vpop.xlane.xlu0 %2009  ;;  %v4865_v36 = vpop.eup %4864  ;;  %4878 = vpow2.f32 %v2195_v6  ;;  %v2284_v15 = vadd.f32 %v6693_v63, %v6691_v5 }
 0x668   : > { %v2073_v33 = vsub.f32 %v6429_v19, %v2010_v12  ;;  %v2074_v30 = vsub.f32 %v6431_v31, %v2010_v12  ;;  %4880 = vpow2.f32 %v2197_v3  ;;  %v2342_v58 = vmul.f32 %v4865_v36, %v6494_v1 }
 0x669   : > { %v2341_v37 = vmul.f32 %v4865_v36, %v6488_v52  ;;  %v6703_v45 = vpop.eup %4866  ;;  %2285 = vadd.xlane.f32.xlu0 %v2284_v15  ;;  %4882 = vrcp.f32 %v2229_v62 }
 0x66a   : > { %v2199_v14 = vmul.f32 1.442695, %v2073_v33  ;;  %v2201_v56 = vmul.f32 1.442695, %v2074_v30  ;;  %v6705_v2 = vpop.eup %4868  ;;  %v2400_v19 = vpack.c.bf16 %v2342_v58, %v2340_v48 }
 0x66b   : > { %v2232_v31 = vpop.xlane.xlu0 %2231  ;;  %v2399_v32 = vpack.c.bf16 %v2341_v37, %v2339_v26  ;;  %v2287_v8 = vadd.f32 %v6705_v2, %v6703_v45  ;;  %v4871_v1 = vpop.eup %4870 }
 0x66c   : > { %4884 = vpow2.f32 %v2199_v14  ;;  %2431 = vmatprep.subr.bf16.mxu0 %v2400_v19  ;;  %v2344_v60 = vmul.f32 %v4871_v1, %v6508_v54  ;;  %v2343_v43 = vmul.f32 %v4871_v1, %v6503_v44  ;;  %v375_v1 = vld [vmem:[%s8069_s5 + $0x28] sm:$0xff] }
 0x66d   : > { %4886 = vpow2.f32 %v2201_v56  ;;  %2432 = vmatpush1.bf16.xpose.msra.mxu0 %v2399_v32  ;;  %2288 = vadd.xlane.f32.xlu1 %v2287_v8 }
 0x66e   : > { %v6709_v57 = vpop.eup %4872  ;;  %4888 = vrcp.f32 %v2232_v31  ;;  %v2235_v35 = vpop.xlane.xlu1 %2234 }
 0x66f   : > { %v6711_v52 = vpop.eup %4874  ;;  %4890 = vrcp.f32 %v2235_v35 }
 0x670   : > { %v4877_v59 = vpop.eup %4876  ;;  %v2290_v21 = vadd.f32 %v6711_v52, %v6709_v57 }
 0x671   : > { %v2346_v34 = vmul.f32 %v4877_v59, %v6516_v28  ;;  %v2345_v9 = vmul.f32 %v4877_v59, %v6510_v38  ;;  %v6719_v46 = vpop.eup %4878  ;;  %v2238_v4 = vpop.xlane.xlu0 %2237 }
 0x672   : > { %2291 = vadd.xlane.f32.xlu0 %v2290_v21  ;;  %v6721_v16 = vpop.eup %4880  ;;  %4892 = vrcp.f32 %v2238_v4  ;;  %v8386_v4 = vld [vmem:[#allocation9_spill] sm:$0xff] }
 0x673   : > { %v2402_v55 = vpack.c.bf16 %v2346_v34, %v2344_v60  ;;  %v2401_v6 = vpack.c.bf16 %v2345_v9, %v2343_v43  ;;  %v2293_v3 = vadd.f32 %v6721_v16, %v6719_v46  ;;  %v4883_v54 = vpop.eup %4882  ;;  %v8385_v43 = vld [vmem:[#allocation18_spill] sm:$0xff] }
 0x674   : > { %v2348_v36 = vmul.f32 %v4883_v54, %v6530_v24  ;;  %v2347_v33 = vmul.f32 %v4883_v54, %v6525_v20  ;;  %v8388_v54 = vld [vmem:[#allocation3_spill] sm:$0xff] }
 0x675   : > { %2433 = vmatprep.subr.bf16.mxu0 %v2402_v55  ;;  %2294 = vadd.xlane.f32.xlu1 %v2293_v3 }
 0x676   : > { %v6725_v12 = vpop.eup %4884  ;;  %2434 = vmatpush1.bf16.xpose.msra.mxu0 %v2401_v6  ;;  %v2241_v38 = vpop.xlane.xlu1 %2240  ;;  %v8387_v6 = vld [vmem:[#allocation17_spill] sm:$0xff] }
 0x677   : > { %v6727_v44 = vpop.eup %4886  ;;  %4894 = vrcp.f32 %v2241_v38 }
 0x678   : > { %v4889_v28 = vpop.eup %4888  ;;  %v2296_v48 = vadd.f32 %v6727_v44, %v6725_v12 }
 0x679   : > { %v2350_v62 = vmul.f32 %v4889_v28, %v6538_v47  ;;  %v2349_v30 = vmul.f32 %v4889_v28, %v6532_v50  ;;  %v2244_v15 = vpop.xlane.xlu0 %2243  ;;  %v4891_v58 = vpop.eup %4890 }
 0x67a   : > { %2297 = vadd.xlane.f32.xlu0 %v2296_v48  ;;  %4896 = vrcp.f32 %v2244_v15  ;;  %v2352_v56 = vmul.f32 %v4891_v58, %v6549_v13  ;;  %v2351_v50 = vmul.f32 %v4891_v58, %v6547_v18  ;;  %v8389_v48 = vld [vmem:[#allocation4_spill] sm:$0xff] }
 0x67b   : > { %v2404_v26 = vpack.c.bf16 %v2350_v62, %v2348_v36  ;;  %v2403_v37 = vpack.c.bf16 %v2349_v30, %v2347_v33  ;;  %v8390_v33 = vld [vmem:[#allocation19_spill] sm:$0xff]  ;;  %v8392_v58 = vld [vmem:[#allocation36_spill] sm:$0xff] }
 0x67c   : > { %v4893_v14 = vpop.eup %4892 }
 0x67d   : > { %2435 = vmatprep.subr.bf16.mxu0 %v2404_v26  ;;  %v2354_v24 = vmul.f32 %v4893_v14, %v6557_v17  ;;  %v2353_v47 = vmul.f32 %v4893_v14, %v6551_v49 }
 0x67e   : > { %2436 = vmatpush1.bf16.xpose.msra.mxu0 %v2403_v37  ;;  %v2247_v19 = vpop.xlane.xlu1 %2246  ;;  %v8393_v37 = vld [vmem:[#allocation37_spill] sm:$0xff] }
 0x67f   : > { %v2406_v31 = vpack.c.bf16 %v2354_v24, %v2352_v56  ;;  %4898 = vrcp.f32 %v2247_v19  ;;  %v2405_v8 = vpack.c.bf16 %v2353_v47, %v2351_v50  ;;  %v8394_v56 = vld [vmem:[#allocation21_spill] sm:$0xff]  ;;  %v8395_v19 = vld [vmem:[#allocation22_spill] sm:$0xff] }
 0x680   : > { %v8396_v47 = vld [vmem:[#allocation38_spill] sm:$0xff] }
 0x681   : > { %2437 = vmatprep.subr.bf16.mxu0 %v2406_v31  ;;  %v2250_v20 = vpop.xlane.xlu0 %2249  ;;  %v4895_v32 = vpop.eup %4894 }
 0x682   : > { %4900 = vrcp.f32 %v2250_v20  ;;  %v2356_v13 = vmul.f32 %v4895_v32, %v6565_v40  ;;  %v2355_v60 = vmul.f32 %v4895_v32, %v6563_v23  ;;  %v8397_v32 = vld [vmem:[#allocation33_spill] sm:$0xff] }
 0x684   : > { %v4897_v35 = vpop.eup %4896 }
 0x685   : > { %v2358_v17 = vmul.f32 %v4897_v35, %v6573_v61  ;;  %v2357_v21 = vmul.f32 %v4897_v35, %v6567_v22  ;;  %v372_v61 = vld [vmem:[%s8069_s5 + $0x10] sm:$0xff]  ;;  %v8398_v35 = vld [vmem:[#allocation23_spill] sm:$0xff] }
 0x686   : > { %2438 = vmatpush1.bf16.xpose.msra.mxu0 %v2405_v8  ;;  %405 = vperm.xlu1 %4541, %v375_v1   ;;  %v2253_v49 = vpop.xlane.xlu1 %2252 }
 0x687   : > { %v2408_v59 = vpack.c.bf16 %v2358_v17, %v2356_v13  ;;  %4902 = vrcp.f32 %v2253_v49  ;;  %v2407_v9 = vpack.c.bf16 %v2357_v21, %v2355_v60  ;;  %v8399_v13 = vld [vmem:[#allocation24_spill] sm:$0xff] }
 0x689   : > { %2439 = vmatprep.subr.bf16.mxu0 %v2408_v59  ;;  %v2256_v18 = vpop.xlane.xlu0 %2255  ;;  %v4899_v34 = vpop.eup %4898 }
 0x68a   : > { %4904 = vrcp.f32 %v2256_v18  ;;  %2474 = vrot.lane.b32.xlu1 %v8385_v43, %s5344_s9  ;;  %v2360_v22 = vmul.f32 %v4899_v34, %v6581_v41  ;;  %v2359_v36 = vmul.f32 %v4899_v34, %v8389_v48  ;;  %v8391_v41 = vld [vmem:[#allocation20_spill] sm:$0xff]  ;;  %v8400_v18 = vld [vmem:[#allocation25_spill] sm:$0xff]  ;;  %v8401_v34 = vld [vmem:[#allocation26_spill] sm:$0xff] }
 0x68b   : > { %v8406_v48 = vld [vmem:[#allocation30_spill] sm:$0xff] }
 0x68c   : > { %v4901_v40 = vpop.eup %4900 }
 0x68d   : > { %v2362_v55 = vmul.f32 %v4901_v40, %v8386_v4  ;;  %v2361_v38 = vmul.f32 %v4901_v40, %v8388_v54  ;;  %v8404_v54 = vld [vmem:[#allocation40_spill] sm:$0xff] }
 0x68e   : > { %2440 = vmatpush1.bf16.xpose.msra.mxu0 %v2407_v9  ;;  %2476 = vrot.lane.b32.xlu1 %v8387_v6, %s5344_s9  ;;  %v2259_v23 = vpop.xlane.xlu1 %2258 }
 0x68f   : > { %v2410_v3 = vpack.c.bf16 %v2362_v55, %v2360_v22  ;;  %4906 = vrcp.f32 %v2259_v23  ;;  %v2409_v30 = vpack.c.bf16 %v2361_v38, %v2359_v36  ;;  %v8403_v55 = vld [vmem:[#allocation28_spill] sm:$0xff] }
 0x690   : > { %390 = vperm.xlu0 %4540, %v372_v61  }
 0x691   : > { %2441 = vmatprep.subr.bf16.mxu0 %v2410_v3  ;;  %v2262_v28 = vpop.xlane.xlu0 %2261  ;;  %v4903_v62 = vpop.eup %4902 }
 0x692   : > { %4908 = vrcp.f32 %v2262_v28  ;;  %2480 = vrot.lane.b32.xlu1 %v8390_v33, %s5344_s9  ;;  %v2364_v26 = vmul.f32 %v4903_v62, %v8392_v58  ;;  %v2363_v8 = vmul.f32 %v4903_v62, %v8397_v32  ;;  %v8409_v58 = vld [vmem:[#allocation31_spill] sm:$0xff] }
 0x694   : > { %2478 = vrot.lane.b32.xlu0 %v8391_v41, %s5344_s9  ;;  %v4905_v15 = vpop.eup %4904 }
 0x695   : > { %v2366_v14 = vmul.f32 %v4905_v15, %v8393_v37  ;;  %v2365_v20 = vmul.f32 %v4905_v15, %v8396_v47 }
 0x696   : > { %2442 = vmatpush1.bf16.xpose.msra.mxu0 %v2409_v30  ;;  %2484 = vrot.lane.b32.xlu1 %v8394_v56, %s5344_s9  ;;  %v2265_v24 = vpop.xlane.xlu1 %2264  ;;  %v8408_v30 = vld [vmem:[#allocation35_spill] sm:$0xff] }
 0x697   : > { %4910 = vrcp.f32 %v2265_v24  ;;  %v2412_v31 = vpack.c.bf16 %v2366_v14, %v2364_v26  ;;  %v2411_v17 = vpack.c.bf16 %v2365_v20, %v2363_v8  ;;  %v8410_v26 = vld [vmem:[#allocation32_spill] sm:$0xff]  ;;  %v8411_v14 = vld [vmem:[#allocation43_spill] sm:$0xff] }
 0x698   : > { %2482 = vrot.lane.b32.xlu0 %v8395_v19, %s5344_s9  ;;  %v2268_v50 = vpop.xlane.xlu0 %2267  ;;  %v8414_v8 = vld [vmem:[#allocation39_spill] sm:$0xff] }
 0x699   : > { %2443 = vmatprep.subr.bf16.mxu0 %v2412_v31  ;;  %4912 = vrcp.f32 %v2268_v50  ;;  %v4907_v1 = vpop.eup %4906  ;;  %v8412_v31 = vld [vmem:[#allocation44_spill] sm:$0xff]  ;;  %v8413_v50 = vld [vmem:[#allocation45_spill] sm:$0xff] }
 0x69a   : > { %2488 = vrot.lane.b32.xlu1 %v8398_v35, %s5344_s9  ;;  %v2368_v59 = vmul.f32 %v4907_v1, %v6613_v42  ;;  %v2367_v4 = vmul.f32 %v4907_v1, %v6611_v10  ;;  %v8402_v42 = vld [vmem:[#allocation27_spill] sm:$0xff]  ;;  %v8407_v10 = vld [vmem:[#allocation41_spill] sm:$0xff] }
 0x69c   : > { %2486 = vrot.lane.b32.xlu0 %v8399_v13, %s5344_s9  ;;  %v4909_v49 = vpop.eup %4908 }
 0x69d   : > { %v2370_v21 = vmul.f32 %v4909_v49, %v6621_v53  ;;  %v2369_v40 = vmul.f32 %v4909_v49, %v6615_v11  ;;  %v8405_v11 = vld [vmem:[#allocation29_spill] sm:$0xff] }
 0x69e   : > { %2444 = vmatpush1.bf16.xpose.msra.mxu0 %v2411_v17  ;;  %2492 = vrot.lane.b32.xlu1 %v8400_v18, %s5344_s9  ;;  %v2271_v60 = vpop.xlane.xlu1 %2270 }
 0x69f   : > { %4914 = vrcp.f32 %v2271_v60  ;;  %v2414_v9 = vpack.c.bf16 %v2370_v21, %v2368_v59  ;;  %v2413_v23 = vpack.c.bf16 %v2369_v40, %v2367_v4 }
 0x6a0   : > { %2490 = vrot.lane.b32.xlu0 %v8401_v34, %s5344_s9  ;;  %v2274_v61 = vpop.xlane.xlu0 %2273 }
 0x6a1   : > { %v4911_v22 = vpop.eup %4910  ;;  %2445 = vmatprep.subr.bf16.mxu0 %v2414_v9  ;;  %4916 = vrcp.f32 %v2274_v61 }
 0x6a2   : > { %2496 = vrot.lane.b32.xlu1 %v8402_v42, %s5344_s9  ;;  %v2372_v3 = vmul.f32 %v4911_v22, %v6629_v7  ;;  %v2371_v15 = vmul.f32 %v4911_v22, %v8408_v30 }
 0x6a3   : > { %v4913_v53 = vpop.eup %4912 }
 0x6a4   : > { %2494 = vrot.lane.b32.xlu0 %v8403_v55, %s5344_s9  ;;  %v2374_v38 = vmul.f32 %v4913_v53, %v8404_v54  ;;  %v2373_v36 = vmul.f32 %v4913_v53, %v8407_v10 }
 0x6a6   : > { %2446 = vmatpush1.bf16.xpose.msra.mxu0 %v2413_v23  ;;  %2500 = vrot.lane.b32.xlu1 %v8405_v11, %s5344_s9  ;;  %v2416_v28 = vpack.c.bf16 %v2374_v38, %v2372_v3  ;;  %v2415_v37 = vpack.c.bf16 %v2373_v36, %v2371_v15 }
 0x6a8   : > { %2498 = vrot.lane.b32.xlu0 %v8406_v48, %s5344_s9  ;;  %2447 = vmatprep.subr.bf16.mxu0 %v2416_v28 }
 0x6a9   : > { %v4915_v62 = vpop.eup %4914 }
 0x6aa   : > { %2504 = vrot.lane.b32.xlu1 %v8409_v58, %s5344_s9  ;;  %v2376_v24 = vmul.f32 %v4915_v62, %v8411_v14  ;;  %v2375_v1 = vmul.f32 %v4915_v62, %v8414_v8  ;;  %v8415_v14 = vld [vmem:[#allocation12_spill] sm:$0xff] }
 0x6ab   : > { %v4917_v7 = vpop.eup %4916 }
 0x6ac   : > { %2502 = vrot.lane.b32.xlu0 %v8410_v26, %s5344_s9  ;;  %v2378_v47 = vmul.f32 %v4917_v7, %v8412_v31  ;;  %v2377_v32 = vmul.f32 %v4917_v7, %v8413_v50 }
 0x6ae   : > { %2448 = vmatpush1.bf16.xpose.msra.mxu0 %v2415_v37  ;;  %v2418_v20 = vpack.c.bf16 %v2378_v47, %v2376_v24  ;;  %v2417_v17 = vpack.c.bf16 %v2377_v32, %v2375_v1 }
 0x6b0   : > { %2449 = vmatprep.subr.bf16.mxu0 %v2418_v20 }
 0x6b6   : > { %2450 = vmatpush1.bf16.xpose.msra.mxu0 %v2417_v17 }
 0x6ea   : > { %v2277_v49 = vpop.xlane.xlu1 %2276 }
 0x6eb   : > { %4918 = vrcp.f32 %v2277_v49  ;;  %v8416_v49 = vld [vmem:[#allocation6_spill] sm:$0xff] }
 0x6ed   : > { %v2280_v59 = vpop.xlane.xlu0 %2279 }
 0x6ee   : > { %4920 = vrcp.f32 %v2280_v59 }
 0x6f2   : > { %v2283_v21 = vpop.xlane.xlu1 %2282 }
 0x6f3   : > { %4922 = vrcp.f32 %v2283_v21 }
 0x6f5   : > { %v4919_v60 = vpop.eup %4918 }
 0x6f6   : > { %v2286_v9 = vpop.xlane.xlu0 %2285  ;;  %v2380_v61 = vmul.f32 %v4919_v60, %v6665_v25  ;;  %v2379_v4 = vmul.f32 %v4919_v60, %v6663_v39  ;;  %v8417_v60 = vld [vmem:[#allocation5_spill] sm:$0xff] }
 0x6f7   : > { %4924 = vrcp.f32 %v2286_v9 }
 0x6f8   : > { %v4921_v40 = vpop.eup %4920 }
 0x6f9   : > { %v2382_v22 = vmul.f32 %v4921_v40, %v6673_v27  ;;  %v2381_v53 = vmul.f32 %v4921_v40, %v6671_v29 }
 0x6fa   : > { %v2289_v23 = vpop.xlane.xlu1 %2288 }
 0x6fb   : > { %v2420_v3 = vpack.c.bf16 %v2382_v22, %v2380_v61  ;;  %v2419_v54 = vpack.c.bf16 %v2381_v53, %v2379_v4  ;;  %4926 = vrcp.f32 %v2289_v23  ;;  %v8418_v61 = vld [vmem:[#allocation11_spill] sm:$0xff] }
 0x6fd   : > { %2451 = vmatprep.subr.bf16.mxu0 %v2420_v3  ;;  %v4923_v28 = vpop.eup %4922 }
 0x6fe   : > { %2452 = vmatpush1.bf16.xpose.msra.mxu0 %v2419_v54  ;;  %v2384_v62 = vmul.f32 %v4923_v28, %v6685_v0  ;;  %v2383_v27 = vmul.f32 %v4923_v28, %v6683_v51 }
 0x6ff   : > { %v2292_v38 = vpop.xlane.xlu0 %2291 }
 0x700   : > { %4928 = vrcp.f32 %v2292_v38 }
 0x701   : > { %v4925_v10 = vpop.eup %4924 }
 0x702   : > { %v2295_v36 = vpop.xlane.xlu1 %2294  ;;  %v2386_v25 = vmul.f32 %v4925_v10, %v6693_v63  ;;  %v2385_v39 = vmul.f32 %v4925_v10, %v6691_v5 }
 0x703   : > { %4930 = vrcp.f32 %v2295_v36 }
 0x704   : > { %v2422_v29 = vpack.c.bf16 %v2386_v25, %v2384_v62  ;;  %v2421_v30 = vpack.c.bf16 %v2385_v39, %v2383_v27 }
 0x705   : > { %v4927_v37 = vpop.eup %4926 }
 0x706   : > { %v406_v15 = vpop.permute.xlu1 %405  ;;  %2453 = vmatprep.subr.bf16.mxu0 %v2422_v29  ;;  %v2388_v0 = vmul.f32 %v4927_v37, %v6705_v2  ;;  %v2387_v51 = vmul.f32 %v4927_v37, %v6703_v45 }
 0x707   : > { %v2298_v7 = vpop.xlane.xlu0 %2297  ;;  %v512_v24 = vadd.f32 %v8415_v14, %v406_v15  ;;  %2454 = vmatpush1.bf16.xpose.msra.mxu0 %v2421_v30  ;;  %v510_v22 = vadd.f32 %v8418_v61, %v406_v15 }
 0x708   : > { %4932 = vrcp.f32 %v2298_v7 }
 0x709   : > { %v1619_v47 = vpack.c.bf16 %v512_v24, %v512_v24  ;;  %v1618_v4 = vpack.c.bf16 %v510_v22, %v510_v22 }
 0x70a   : > { %v4929_v31 = vpop.eup %4928 }
 0x70b   : > { %v2390_v63 = vmul.f32 %v4929_v31, %v6711_v52  ;;  %v2389_v5 = vmul.f32 %v4929_v31, %v6709_v57  ;;  %2459 = vmatprep.mubr.bf16.mxu0 %v1619_v47 }
 0x70d   : > { %v2424_v20 = vpack.c.bf16 %v2390_v63, %v2388_v0  ;;  %v2423_v50 = vpack.c.bf16 %v2389_v5, %v2387_v51  ;;  %v4931_v32 = vpop.eup %4930 }
 0x70e   : > { %v2392_v17 = vmul.f32 %v4931_v32, %v6721_v16  ;;  %v2391_v52 = vmul.f32 %v4931_v32, %v6719_v46  ;;  %v8419_v46 = vmov 0  }
 0x70f   : > { %2455 = vmatprep.subr.bf16.mxu0 %v2424_v20  ;;  %v391_v8 = vpop.permute.xlu0 %390 }
 0x710   : > { %2456 = vmatpush1.bf16.xpose.msra.mxu0 %v2423_v50  ;;  %v498_v59 = vadd.f32 %v8416_v49, %v391_v8  ;;  %v496_v9 = vadd.f32 %v8417_v60, %v391_v8 }
 0x712   : > { %v4933_v1 = vpop.eup %4932  ;;  %v2471_v40 = vpack.c.bf16 %v498_v59, %v498_v59  ;;  %v2470_v16 = vpack.c.bf16 %v496_v9, %v496_v9 }
 0x713   : > { %v2394_v2 = vmul.f32 %v4933_v1, %v6727_v44  ;;  %v2393_v45 = vmul.f32 %v4933_v1, %v6725_v12  ;;  %v2475_v12 = vpop.permute.xlu1 %2474  ;;  %v2479_v23 = vpop.permute.xlu0 %2478 }
 0x714   : > { %v2555_v44 = vsel %vm861_vm1, %v2470_v16, 0 }
 0x715   : > { %v2426_v21 = vpack.c.bf16 %v2394_v2, %v2392_v17  ;;  %v2425_v57 = vpack.c.bf16 %v2393_v45, %v2391_v52 }
 0x717   : > { %2457 = vmatprep.subr.bf16.mxu0 %v2426_v21  ;;  %v2477_v53 = vpop.permute.xlu1 %2476  ;;  %v2483_v54 = vpop.permute.xlu0 %2482 }
 0x718   : > { %2458 = vmatpush1.bf16.xpose.msra.mxu0 %v2425_v57 }
 0x719   : > { %4414 = vmatprep.subr.msk.bf16.mxu0 %vm861_vm1, %v2471_v40 }
 0x71b   : > { %v2481_v3 = vpop.permute.xlu1 %2480  ;;  %v2487_v28 = vpop.permute.xlu0 %2486 }
 0x71f   : > { %2460 = vmatmul.mubr.bf16.vlgmr.msra.gmra.mrb[112].mxu0 %v1618_v4  ;;  %v2485_v38 = vpop.permute.xlu1 %2484  ;;  %v2491_v36 = vpop.permute.xlu0 %2490 }
 0x720   : > { %2561 = vmatpush1.bf16.msra.mxu0 %v2555_v44  ;;  %2592 = vmatprep.mubr.bf16.mxu0 %v8419_v46 }
 0x723   : > { %v2489_v10 = vpop.permute.xlu1 %2488  ;;  %v2495_v25 = vpop.permute.xlu0 %2494 }
 0x727   : > { %4415 = vmatmul.mubr.msk.bf16.vlgmr.msra.gmra.mrb[116].mxu0 %vm812_vm2, %v2475_v12  ;;  %v2493_v62 = vpop.permute.xlu1 %2492  ;;  %v2499_v39 = vpop.permute.xlu0 %2498 }
 0x728   : > { %2602 = vmatprep.mubr.bf16.mxu0 %v8419_v46 }
 0x72b   : > { %v2497_v27 = vpop.permute.xlu1 %2496  ;;  %v2503_v30 = vpop.permute.xlu0 %2502 }
 0x72f   : > { %4416 = vmatmul.mubr.msk.bf16.gmra.mrb[120].mxu0 %vm812_vm2, %v2477_v53  ;;  %v2501_v29 = vpop.permute.xlu1 %2500 }
 0x730   : > { %2612 = vmatprep.mubr.bf16.mxu0 %v8419_v46 }
 0x733   : > { %v2505_v15 = vpop.permute.xlu1 %2504 }
 0x737   : > { %4417 = vmatmul.mubr.msk.bf16.gmra.mrb[124].mxu0 %vm812_vm2, %v2479_v23 }
 0x738   : > { %2622 = vmatprep.mubr.bf16.mxu0 %v8419_v46 }
 0x73f   : > { %4418 = vmatmul.mubr.msk.bf16.gmra.mrb[128].mxu0 %vm812_vm2, %v2481_v3 }
 0x740   : > { %2632 = vmatprep.mubr.bf16.mxu0 %v8419_v46 }
 0x747   : > { %4419 = vmatmul.mubr.msk.bf16.gmra.mrb[132].mxu0 %vm812_vm2, %v2483_v54 }
 0x748   : > { %2642 = vmatprep.mubr.bf16.mxu0 %v8419_v46 }
 0x74f   : > { %4420 = vmatmul.mubr.msk.bf16.gmra.mrb[136].mxu0 %vm812_vm2, %v2485_v38 }
 0x750   : > { %2652 = vmatprep.mubr.bf16.mxu0 %v8419_v46 }
 0x757   : > { %4421 = vmatmul.mubr.msk.bf16.gmra.mrb[140].mxu0 %vm812_vm2, %v2487_v28 }
 0x758   : > { %2662 = vmatprep.mubr.bf16.mxu0 %v8419_v46 }
 0x75f   : > { %4422 = vmatmul.mubr.msk.bf16.gmra.mrb[144].mxu0 %vm812_vm2, %v2489_v10 }
 0x760   : > { %2672 = vmatprep.mubr.bf16.mxu0 %v8419_v46 }
 0x767   : > { %4423 = vmatmul.mubr.msk.bf16.gmra.mrb[148].mxu0 %vm812_vm2, %v2491_v36 }
 0x768   : > { %2682 = vmatprep.mubr.bf16.mxu0 %v8419_v46 }
 0x76f   : > { %4424 = vmatmul.mubr.msk.bf16.gmra.mrb[152].mxu0 %vm812_vm2, %v2493_v62 }
 0x770   : > { %2692 = vmatprep.mubr.bf16.mxu0 %v8419_v46 }
 0x777   : > { %4425 = vmatmul.mubr.msk.bf16.gmra.mrb[156].mxu0 %vm812_vm2, %v2495_v25 }
 0x778   : > { %2702 = vmatprep.mubr.bf16.mxu0 %v8419_v46 }
 0x77f   : > { %4426 = vmatmul.mubr.msk.bf16.gmra.mrb[160].mxu0 %vm812_vm2, %v2497_v27 }
 0x780   : > { %2712 = vmatprep.mubr.bf16.mxu0 %v8419_v46 }
 0x787   : > { %4427 = vmatmul.mubr.msk.bf16.gmra.mrb[164].mxu0 %vm812_vm2, %v2499_v39 }
 0x788   : > { %2722 = vmatprep.mubr.bf16.mxu0 %v8419_v46 }
 0x78f   : > { %4428 = vmatmul.mubr.msk.bf16.gmra.mrb[168].mxu0 %vm812_vm2, %v2501_v29 }
 0x790   : > { %2732 = vmatprep.mubr.bf16.mxu0 %v8419_v46 }
 0x797   : > { %4429 = vmatmul.mubr.msk.bf16.gmra.mrb[172].mxu0 %vm812_vm2, %v2503_v30 }
 0x798   : > { %2742 = vmatprep.mubr.bf16.mxu0 %v8419_v46 }
 0x79f   : > { %4430 = vmatmul.mubr.msk.bf16.gmra.mrb[176].mxu0 %vm812_vm2, %v2505_v15 }
 0x7f2   : > { %v6855_v7 = vpop.f32.mrb[112].mxu0 }
 0x7f3   : > { %8420 = vst [vmem:[#allocation42_spill] sm:$0xff] %v6855_v7  ;;  %v6859_v24 = vpop.f32.mrb[113].mxu0 }
 0x7f4   : > { %8422 = vst [vmem:[#allocation10_spill] sm:$0xff] %v6859_v24  ;;  %v2465_v0 = vpop.f32.mrb[114].mxu0 }
 0x7f5   : > { %v2466_v63 = vpop.f32.mrb[115].mxu0 }
 0x7fa   : > { %v6863_v51 = vpop.f32.mrb[116].mxu0 }
 0x7fb   : > { %v6865_v5 = vpop.f32.mrb[117].mxu0 }
 0x7fc   : > { %v2753_v20 = vmax.f32 %v6863_v51, %v6865_v5  ;;  %v6869_v50 = vpop.f32.mrb[118].mxu0 }
 0x7fd   : > { %v6871_v32 = vpop.f32.mrb[119].mxu0 }
 0x7fe   : > { %v2756_v8 = vmax.f32 %v6869_v50, %v6871_v32  ;;  %2754 = vmax.xlane.f32.xlu0 %v2753_v20 }
 0x800   : > { %2757 = vmax.xlane.f32.xlu1 %v2756_v8 }
 0x802   : > { %v6875_v1 = vpop.f32.mrb[120].mxu0 }
 0x803   : > { %v6877_v17 = vpop.f32.mrb[121].mxu0 }
 0x804   : > { %v2759_v49 = vmax.f32 %v6875_v1, %v6877_v17  ;;  %v6881_v59 = vpop.f32.mrb[122].mxu0 }
 0x805   : > { %v6883_v2 = vpop.f32.mrb[123].mxu0 }
 0x806   : > { %v2762_v52 = vmax.f32 %v6881_v59, %v6883_v2  ;;  %2760 = vmax.xlane.f32.xlu0 %v2759_v49 }
 0x80a   : > { %2763 = vmax.xlane.f32.xlu0 %v2762_v52  ;;  %v6887_v45 = vpop.f32.mrb[124].mxu0 }
 0x80b   : > { %v6889_v21 = vpop.f32.mrb[125].mxu0 }
 0x80c   : > { %v2765_v57 = vmax.f32 %v6887_v45, %v6889_v21  ;;  %v6893_v60 = vpop.f32.mrb[126].mxu0 }
 0x80d   : > { %v6895_v9 = vpop.f32.mrb[127].mxu0 }
 0x80e   : > { %v2768_v40 = vmax.f32 %v6893_v60, %v6895_v9  ;;  %2766 = vmax.xlane.f32.xlu1 %v2765_v57 }
 0x810   : > { %2769 = vmax.xlane.f32.xlu0 %v2768_v40 }
 0x812   : > { %v6899_v61 = vpop.f32.mrb[128].mxu0 }
 0x813   : > { %v6901_v22 = vpop.f32.mrb[129].mxu0 }
 0x814   : > { %v2771_v16 = vmax.f32 %v6899_v61, %v6901_v22  ;;  %v6905_v4 = vpop.f32.mrb[130].mxu0 }
 0x815   : > { %v6907_v44 = vpop.f32.mrb[131].mxu0 }
 0x816   : > { %v2774_v12 = vmax.f32 %v6905_v4, %v6907_v44  ;;  %2772 = vmax.xlane.f32.xlu1 %v2771_v16 }
 0x818   : > { %2775 = vmax.xlane.f32.xlu0 %v2774_v12 }
 0x81a   : > { %v6911_v53 = vpop.f32.mrb[132].mxu0 }
 0x81b   : > { %v6913_v23 = vpop.f32.mrb[133].mxu0 }
 0x81c   : > { %v2777_v3 = vmax.f32 %v6911_v53, %v6913_v23  ;;  %v6917_v54 = vpop.f32.mrb[134].mxu0 }
 0x81d   : > { %v6919_v38 = vpop.f32.mrb[135].mxu0 }
 0x81e   : > { %v2780_v28 = vmax.f32 %v6917_v54, %v6919_v38  ;;  %2778 = vmax.xlane.f32.xlu1 %v2777_v3 }
 0x820   : > { %2781 = vmax.xlane.f32.xlu0 %v2780_v28 }
 0x822   : > { %v6923_v10 = vpop.f32.mrb[136].mxu0 }
 0x823   : > { %v6925_v36 = vpop.f32.mrb[137].mxu0 }
 0x824   : > { %v2783_v62 = vmax.f32 %v6923_v10, %v6925_v36  ;;  %v6929_v25 = vpop.f32.mrb[138].mxu0 }
 0x825   : > { %v6931_v27 = vpop.f32.mrb[139].mxu0 }
 0x826   : > { %v2786_v39 = vmax.f32 %v6929_v25, %v6931_v27  ;;  %2784 = vmax.xlane.f32.xlu1 %v2783_v62 }
 0x828   : > { %2787 = vmax.xlane.f32.xlu0 %v2786_v39 }
 0x82a   : > { %v6935_v29 = vpop.f32.mrb[140].mxu0 }
 0x82b   : > { %v6937_v30 = vpop.f32.mrb[141].mxu0 }
 0x82c   : > { %v2789_v15 = vmax.f32 %v6935_v29, %v6937_v30  ;;  %v6941_v0 = vpop.f32.mrb[142].mxu0 }
 0x82d   : > { %v6943_v63 = vpop.f32.mrb[143].mxu0 }
 0x82e   : > { %v2792_v20 = vmax.f32 %v6941_v0, %v6943_v63  ;;  %2790 = vmax.xlane.f32.xlu1 %v2789_v15 }
 0x830   : > { %2793 = vmax.xlane.f32.xlu0 %v2792_v20 }
 0x832   : > { %v6947_v8 = vpop.f32.mrb[144].mxu0 }
 0x833   : > { %v6949_v49 = vpop.f32.mrb[145].mxu0 }
 0x834   : > { %v2795_v52 = vmax.f32 %v6947_v8, %v6949_v49  ;;  %v6953_v57 = vpop.f32.mrb[146].mxu0 }
 0x835   : > { %v6955_v40 = vpop.f32.mrb[147].mxu0 }
 0x836   : > { %v2798_v16 = vmax.f32 %v6953_v57, %v6955_v40  ;;  %2796 = vmax.xlane.f32.xlu1 %v2795_v52 }
 0x838   : > { %2799 = vmax.xlane.f32.xlu0 %v2798_v16 }
 0x83a   : > { %v6959_v12 = vpop.f32.mrb[148].mxu0 }
 0x83b   : > { %v6961_v3 = vpop.f32.mrb[149].mxu0 }
 0x83c   : > { %v2801_v28 = vmax.f32 %v6959_v12, %v6961_v3  ;;  %v6965_v62 = vpop.f32.mrb[150].mxu0 }
 0x83d   : > { %v6967_v39 = vpop.f32.mrb[151].mxu0 }
 0x83e   : > { %8424 = vst [vmem:[#allocation9_spill] sm:$0xff] %v6967_v39  ;;  %v2804_v15 = vmax.f32 %v6965_v62, %v6967_v39  ;;  %2802 = vmax.xlane.f32.xlu1 %v2801_v28 }
 0x840   : > { %2805 = vmax.xlane.f32.xlu0 %v2804_v15 }
 0x842   : > { %v6971_v20 = vpop.f32.mrb[152].mxu0 }
 0x843   : > { %8425 = vst [vmem:[#allocation3_spill] sm:$0xff] %v6971_v20  ;;  %v6973_v52 = vpop.f32.mrb[153].mxu0 }
 0x844   : > { %8426 = vst [vmem:[#allocation4_spill] sm:$0xff] %v6973_v52  ;;  %v2807_v16 = vmax.f32 %v6971_v20, %v6973_v52  ;;  %v6977_v14 = vpop.f32.mrb[154].mxu0 }
 0x845   : > { %8427 = vst [vmem:[#allocation36_spill] sm:$0xff] %v6977_v14  ;;  %v6979_v47 = vpop.f32.mrb[155].mxu0 }
 0x846   : > { %8428 = vst [vmem:[#allocation37_spill] sm:$0xff] %v6979_v47  ;;  %v2810_v37 = vmax.f32 %v6977_v14, %v6979_v47  ;;  %2808 = vmax.xlane.f32.xlu1 %v2807_v16 }
 0x848   : > { %2811 = vmax.xlane.f32.xlu0 %v2810_v37 }
 0x84a   : > { %v6983_v7 = vpop.f32.mrb[156].mxu0 }
 0x84b   : > { %8429 = vst [vmem:[#allocation38_spill] sm:$0xff] %v6983_v7  ;;  %v6985_v28 = vpop.f32.mrb[157].mxu0 }
 0x84c   : > { %8430 = vst [vmem:[#allocation33_spill] sm:$0xff] %v6985_v28  ;;  %v2813_v15 = vmax.f32 %v6983_v7, %v6985_v28  ;;  %v6989_v31 = vpop.f32.mrb[158].mxu0 }
 0x84d   : > { %8431 = vst [vmem:[#allocation40_spill] sm:$0xff] %v6989_v31  ;;  %v6991_v24 = vpop.f32.mrb[159].mxu0 }
 0x84e   : > { %8432 = vst [vmem:[#allocation41_spill] sm:$0xff] %v6991_v24  ;;  %v2816_v46 = vmax.f32 %v6989_v31, %v6991_v24  ;;  %2814 = vmax.xlane.f32.xlu1 %v2813_v15 }
 0x850   : > { %2817 = vmax.xlane.f32.xlu0 %v2816_v46 }
 0x852   : > { %v6995_v26 = vpop.f32.mrb[160].mxu0 }
 0x853   : > { %8433 = vst [vmem:[#allocation35_spill] sm:$0xff] %v6995_v26  ;;  %v6997_v16 = vpop.f32.mrb[161].mxu0 }
 0x854   : > { %8434 = vst [vmem:[#allocation43_spill] sm:$0xff] %v6997_v16  ;;  %v2819_v37 = vmax.f32 %v6995_v26, %v6997_v16  ;;  %v7001_v58 = vpop.f32.mrb[162].mxu0 }
 0x855   : > { %8435 = vst [vmem:[#allocation44_spill] sm:$0xff] %v7001_v58  ;;  %v7003_v48 = vpop.f32.mrb[163].mxu0 }
 0x856   : > { %8436 = vst [vmem:[#allocation45_spill] sm:$0xff] %v7003_v48  ;;  %v2822_v11 = vmax.f32 %v7001_v58, %v7003_v48  ;;  %2820 = vmax.xlane.f32.xlu1 %v2819_v37 }
 0x858   : > { %2823 = vmax.xlane.f32.xlu0 %v2822_v11 }
 0x85a   : > { %v7007_v55 = vpop.f32.mrb[164].mxu0 }
 0x85b   : > { %v7009_v15 = vpop.f32.mrb[165].mxu0 }
 0x85c   : > { %v7013_v42 = vpop.f32.mrb[166].mxu0 }
 0x85d   : > { %v7015_v34 = vpop.f32.mrb[167].mxu0 }
 0x862   : > { %v7019_v13 = vpop.f32.mrb[168].mxu0 }
 0x863   : > { %v7021_v35 = vpop.f32.mrb[169].mxu0 }
 0x864   : > { %v7025_v37 = vpop.f32.mrb[170].mxu0 }
 0x865   : > { %v7027_v19 = vpop.f32.mrb[171].mxu0 }
 0x86a   : > { %v7031_v56 = vpop.f32.mrb[172].mxu0 }
 0x86b   : > { %v7033_v41 = vpop.f32.mrb[173].mxu0 }
 0x86c   : > { %v7037_v33 = vpop.f32.mrb[174].mxu0 }
 0x86d   : > { %v7039_v6 = vpop.f32.mrb[175].mxu0 }
 0x872   : > { %v7043_v43 = vpop.f32.mrb[176].mxu0 }
 0x873   : > { %v7045_v48 = vpop.f32.mrb[177].mxu0 }
 0x874   : > { %v7049_v58 = vpop.f32.mrb[178].mxu0 }
 0x875   : > { %v7051_v16 = vpop.f32.mrb[179].mxu0 }
 0x88b   : > { %v2755_v26 = vpop.xlane.xlu0 %2754 }
 0x88c   : > { %v2849_v24 = vsub.f32 %v6863_v51, %v2755_v26  ;;  %v2850_v31 = vsub.f32 %v6865_v5, %v2755_v26 }
 0x88d   : > { %v2758_v11 = vpop.xlane.xlu1 %2757 }
 0x88e   : > { %v2913_v28 = vmul.f32 1.442695, %v2849_v24  ;;  %v2915_v7 = vmul.f32 1.442695, %v2850_v31  ;;  %v2851_v47 = vsub.f32 %v6869_v50, %v2758_v11  ;;  %v2852_v14 = vsub.f32 %v6871_v32, %v2758_v11 }
 0x890   : > { %4934 = vpow2.f32 %v2913_v28  ;;  %v2917_v46 = vmul.f32 1.442695, %v2851_v47  ;;  %v2919_v52 = vmul.f32 1.442695, %v2852_v14 }
 0x891   : > { %4936 = vpow2.f32 %v2915_v7 }
 0x892   : > { %4938 = vpow2.f32 %v2917_v46 }
 0x893   : > { %4940 = vpow2.f32 %v2919_v52  ;;  %v2761_v20 = vpop.xlane.xlu0 %2760 }
 0x894   : > { %v2853_v18 = vsub.f32 %v6875_v1, %v2761_v20  ;;  %v2854_v51 = vsub.f32 %v6877_v17, %v2761_v20 }
 0x896   : > { %v2921_v39 = vmul.f32 1.442695, %v2853_v18  ;;  %v2923_v26 = vmul.f32 1.442695, %v2854_v51 }
 0x897   : > { %v2764_v5 = vpop.xlane.xlu0 %2763 }
 0x898   : > { %4942 = vpow2.f32 %v2921_v39  ;;  %v2855_v24 = vsub.f32 %v6881_v59, %v2764_v5  ;;  %v2856_v31 = vsub.f32 %v6883_v2, %v2764_v5 }
 0x899   : > { %4944 = vpow2.f32 %v2923_v26  ;;  %v8437_v26 = vmax.f32 %v7007_v55, %v7009_v15 }
 0x89a   : > { %v7063_v50 = vpop.eup %4934  ;;  %v2925_v14 = vmul.f32 1.442695, %v2855_v24  ;;  %v2927_v7 = vmul.f32 1.442695, %v2856_v31 }
 0x89b   : > { %v7065_v47 = vpop.eup %4936  ;;  %v2767_v32 = vpop.xlane.xlu1 %2766 }
 0x89c   : > { %v7067_v52 = vpop.eup %4938  ;;  %4946 = vpow2.f32 %v2925_v14  ;;  %v2857_v18 = vsub.f32 %v6887_v45, %v2767_v32  ;;  %v2858_v1 = vsub.f32 %v6889_v21, %v2767_v32  ;;  %v3041_v17 = vadd.f32 %v7065_v47, %v7063_v50 }
 0x89d   : > { %v7073_v59 = vpop.eup %4940  ;;  %4948 = vpow2.f32 %v2927_v7  ;;  %v2770_v2 = vpop.xlane.xlu0 %2769  ;;  %v8438_v14 = vmax.f32 %v7013_v42, %v7015_v34 }
 0x89e   : > { %v2929_v39 = vmul.f32 1.442695, %v2857_v18  ;;  %v2931_v20 = vmul.f32 1.442695, %v2858_v1  ;;  %3042 = vadd.xlane.f32.xlu1 %v3041_v17  ;;  %v2859_v28 = vsub.f32 %v6893_v60, %v2770_v2  ;;  %v2860_v46 = vsub.f32 %v6895_v9, %v2770_v2 }
 0x89f   : > { %v3044_v11 = vadd.f32 %v7073_v59, %v7067_v52 }
 0x8a0   : > { %4950 = vpow2.f32 %v2929_v39  ;;  %v2933_v45 = vmul.f32 1.442695, %v2859_v28  ;;  %v2935_v21 = vmul.f32 1.442695, %v2860_v46  ;;  %v8439_v46 = vmax.f32 %v7019_v13, %v7021_v35 }
 0x8a1   : > { %4952 = vpow2.f32 %v2931_v20  ;;  %3045 = vadd.xlane.f32.xlu0 %v3044_v11 }
 0x8a2   : > { %v7079_v51 = vpop.eup %4942  ;;  %4954 = vpow2.f32 %v2933_v45  ;;  %2826 = vmax.xlane.f32.xlu1 %v8437_v26 }
 0x8a3   : > { %v7084_v5 = vpop.eup %4944  ;;  %4956 = vpow2.f32 %v2935_v21  ;;  %v2773_v60 = vpop.xlane.xlu1 %2772 }
 0x8a4   : > { %v2861_v9 = vsub.f32 %v6899_v61, %v2773_v60  ;;  %v2862_v24 = vsub.f32 %v6901_v22, %v2773_v60  ;;  %v3047_v31 = vadd.f32 %v7084_v5, %v7079_v51 }
 0x8a5   : > { %2829 = vmax.xlane.f32.xlu0 %v8438_v14  ;;  %v2776_v7 = vpop.xlane.xlu0 %2775  ;;  %v8440_v14 = vmax.f32 %v7025_v37, %v7027_v19 }
 0x8a6   : > { %v7093_v32 = vpop.eup %4946  ;;  %v2937_v18 = vmul.f32 1.442695, %v2861_v9  ;;  %v2939_v1 = vmul.f32 1.442695, %v2862_v24  ;;  %3048 = vadd.xlane.f32.xlu1 %v3047_v31  ;;  %v2863_v17 = vsub.f32 %v6905_v4, %v2776_v7  ;;  %v2864_v2 = vsub.f32 %v6907_v44, %v2776_v7 }
 0x8a7   : > { %v7097_v61 = vpop.eup %4948 }
 0x8a8   : > { %4958 = vpow2.f32 %v2937_v18  ;;  %v2941_v22 = vmul.f32 1.442695, %v2863_v17  ;;  %v2943_v39 = vmul.f32 1.442695, %v2864_v2  ;;  %v3050_v20 = vadd.f32 %v7097_v61, %v7093_v32 }
 0x8a9   : > { %4960 = vpow2.f32 %v2939_v1  ;;  %v8441_v2 = vmax.f32 %v7031_v56, %v7033_v41 }
 0x8aa   : > { %v7101_v28 = vpop.eup %4950  ;;  %4962 = vpow2.f32 %v2941_v22  ;;  %2832 = vmax.xlane.f32.xlu1 %v8439_v46  ;;  %3051 = vadd.xlane.f32.xlu0 %v3050_v20 }
 0x8ab   : > { %v7106_v4 = vpop.eup %4952  ;;  %4964 = vpow2.f32 %v2943_v39  ;;  %v2779_v44 = vpop.xlane.xlu1 %2778 }
 0x8ac   : > { %v7108_v11 = vpop.eup %4954  ;;  %v2865_v45 = vsub.f32 %v6911_v53, %v2779_v44  ;;  %v2866_v21 = vsub.f32 %v6913_v23, %v2779_v44  ;;  %v3053_v26 = vadd.f32 %v7106_v4, %v7101_v28 }
 0x8ad   : > { %v7114_v60 = vpop.eup %4956  ;;  %v2782_v9 = vpop.xlane.xlu0 %2781 }
 0x8ae   : > { %v2945_v24 = vmul.f32 1.442695, %v2865_v45  ;;  %v2947_v31 = vmul.f32 1.442695, %v2866_v21  ;;  %3054 = vadd.xlane.f32.xlu1 %v3053_v26  ;;  %2835 = vmax.xlane.f32.xlu0 %v8440_v14  ;;  %v2867_v7 = vsub.f32 %v6917_v54, %v2782_v9  ;;  %v2868_v18 = vsub.f32 %v6919_v38, %v2782_v9 }
 0x8af   : > { %v3056_v1 = vadd.f32 %v7114_v60, %v7108_v11  ;;  %v8442_v9 = vmax.f32 %v7037_v33, %v7039_v6 }
 0x8b0   : > { %4966 = vpow2.f32 %v2945_v24  ;;  %v2949_v53 = vmul.f32 1.442695, %v2867_v7  ;;  %v2951_v23 = vmul.f32 1.442695, %v2868_v18  ;;  %v8443_v18 = vmax.f32 %v7043_v43, %v7045_v48 }
 0x8b1   : > { %4968 = vpow2.f32 %v2947_v31 }
 0x8b2   : > { %v7123_v17 = vpop.eup %4958  ;;  %4970 = vpow2.f32 %v2949_v53  ;;  %2838 = vmax.xlane.f32.xlu1 %v8441_v2  ;;  %3057 = vadd.xlane.f32.xlu0 %v3056_v1 }
 0x8b3   : > { %v7128_v22 = vpop.eup %4960  ;;  %4972 = vpow2.f32 %v2951_v23  ;;  %v2785_v54 = vpop.xlane.xlu1 %2784 }
 0x8b4   : > { %v7130_v38 = vpop.eup %4962  ;;  %v2869_v39 = vsub.f32 %v6923_v10, %v2785_v54  ;;  %v2870_v20 = vsub.f32 %v6925_v36, %v2785_v54  ;;  %v3059_v46 = vadd.f32 %v7128_v22, %v7123_v17 }
 0x8b5   : > { %v7136_v44 = vpop.eup %4964  ;;  %v2788_v45 = vpop.xlane.xlu0 %2787 }
 0x8b6   : > { %v2953_v21 = vmul.f32 1.442695, %v2869_v39  ;;  %v2955_v26 = vmul.f32 1.442695, %v2870_v20  ;;  %3060 = vadd.xlane.f32.xlu1 %v3059_v46  ;;  %2841 = vmax.xlane.f32.xlu0 %v8442_v9  ;;  %v2871_v24 = vsub.f32 %v6929_v25, %v2788_v45  ;;  %v2872_v31 = vsub.f32 %v6931_v27, %v2788_v45 }
 0x8b7   : > { %v3062_v14 = vadd.f32 %v7136_v44, %v7130_v38  ;;  %v8444_v45 = vmax.f32 %v7049_v58, %v7051_v16 }
 0x8b8   : > { %4974 = vpow2.f32 %v2953_v21  ;;  %v2957_v10 = vmul.f32 1.442695, %v2871_v24  ;;  %v2959_v36 = vmul.f32 1.442695, %v2872_v31 }
 0x8b9   : > { %4976 = vpow2.f32 %v2955_v26 }
 0x8ba   : > { %v7145_v7 = vpop.eup %4966  ;;  %4978 = vpow2.f32 %v2957_v10  ;;  %2844 = vmax.xlane.f32.xlu1 %v8443_v18  ;;  %3063 = vadd.xlane.f32.xlu0 %v3062_v14 }
 0x8bb   : > { %v7150_v53 = vpop.eup %4968  ;;  %4980 = vpow2.f32 %v2959_v36  ;;  %v2791_v25 = vpop.xlane.xlu1 %2790 }
 0x8bc   : > { %v7152_v27 = vpop.eup %4970  ;;  %v2873_v23 = vsub.f32 %v6935_v29, %v2791_v25  ;;  %v2874_v1 = vsub.f32 %v6937_v30, %v2791_v25  ;;  %v3065_v2 = vadd.f32 %v7150_v53, %v7145_v7 }
 0x8bd   : > { %v7158_v54 = vpop.eup %4972  ;;  %v2794_v39 = vpop.xlane.xlu0 %2793 }
 0x8be   : > { %v2961_v20 = vmul.f32 1.442695, %v2873_v23  ;;  %v2963_v46 = vmul.f32 1.442695, %v2874_v1  ;;  %3066 = vadd.xlane.f32.xlu1 %v3065_v2  ;;  %2847 = vmax.xlane.f32.xlu0 %v8444_v45  ;;  %v2875_v21 = vsub.f32 %v6941_v0, %v2794_v39  ;;  %v2876_v26 = vsub.f32 %v6943_v63, %v2794_v39 }
 0x8bf   : > { %v3068_v9 = vadd.f32 %v7158_v54, %v7152_v27 }
 0x8c0   : > { %4982 = vpow2.f32 %v2961_v20  ;;  %v2965_v29 = vmul.f32 1.442695, %v2875_v21  ;;  %v2967_v30 = vmul.f32 1.442695, %v2876_v26 }
 0x8c1   : > { %4984 = vpow2.f32 %v2963_v46 }
 0x8c2   : > { %v7167_v24 = vpop.eup %4974  ;;  %4986 = vpow2.f32 %v2965_v29  ;;  %3069 = vadd.xlane.f32.xlu0 %v3068_v9 }
 0x8c3   : > { %v7169_v31 = vpop.eup %4976  ;;  %4988 = vpow2.f32 %v2967_v30  ;;  %v2797_v10 = vpop.xlane.xlu1 %2796 }
 0x8c4   : > { %v7171_v36 = vpop.eup %4978  ;;  %v2877_v0 = vsub.f32 %v6947_v8, %v2797_v10  ;;  %v2878_v63 = vsub.f32 %v6949_v49, %v2797_v10  ;;  %v3071_v14 = vadd.f32 %v7169_v31, %v7167_v24 }
 0x8c5   : > { %v7177_v18 = vpop.eup %4980  ;;  %v2800_v25 = vpop.xlane.xlu0 %2799 }
 0x8c6   : > { %v2969_v23 = vmul.f32 1.442695, %v2877_v0  ;;  %v2971_v1 = vmul.f32 1.442695, %v2878_v63  ;;  %3072 = vadd.xlane.f32.xlu1 %v3071_v14  ;;  %v2879_v2 = vsub.f32 %v6953_v57, %v2800_v25  ;;  %v2880_v39 = vsub.f32 %v6955_v40, %v2800_v25  ;;  %v8445_v14 = vld [vmem:[#allocation9_spill] sm:$0xff] }
 0x8c7   : > { %v3074_v20 = vadd.f32 %v7177_v18, %v7171_v36 }
 0x8c8   : > { %4990 = vpow2.f32 %v2969_v23  ;;  %v2973_v8 = vmul.f32 1.442695, %v2879_v2  ;;  %v2975_v46 = vmul.f32 1.442695, %v2880_v39 }
 0x8c9   : > { %4992 = vpow2.f32 %v2971_v1  ;;  %3075 = vadd.xlane.f32.xlu0 %v3074_v20 }
 0x8ca   : > { %v7183_v49 = vpop.eup %4982  ;;  %4994 = vpow2.f32 %v2973_v8 }
 0x8cb   : > { %v7185_v45 = vpop.eup %4984  ;;  %4996 = vpow2.f32 %v2975_v46  ;;  %v2803_v21 = vpop.xlane.xlu1 %2802  ;;  %v8449_v46 = vld [vmem:[#allocation4_spill] sm:$0xff] }
 0x8cc   : > { %v7187_v26 = vpop.eup %4986  ;;  %v2881_v57 = vsub.f32 %v6959_v12, %v2803_v21  ;;  %v2882_v40 = vsub.f32 %v6961_v3, %v2803_v21  ;;  %v3077_v29 = vadd.f32 %v7185_v45, %v7183_v49 }
 0x8cd   : > { %v7193_v30 = vpop.eup %4988  ;;  %v2806_v9 = vpop.xlane.xlu0 %2805 }
 0x8ce   : > { %v2977_v10 = vmul.f32 1.442695, %v2881_v57  ;;  %v2979_v0 = vmul.f32 1.442695, %v2882_v40  ;;  %3078 = vadd.xlane.f32.xlu1 %v3077_v29  ;;  %v2883_v63 = vsub.f32 %v6965_v62, %v2806_v9  ;;  %v2884_v25 = vsub.f32 %v8445_v14, %v2806_v9  ;;  %v8448_v62 = vld [vmem:[#allocation3_spill] sm:$0xff]  ;;  %v8452_v14 = vld [vmem:[#allocation37_spill] sm:$0xff] }
 0x8cf   : > { %v3080_v23 = vadd.f32 %v7193_v30, %v7187_v26 }
 0x8d0   : > { %4998 = vpow2.f32 %v2977_v10  ;;  %v2981_v12 = vmul.f32 1.442695, %v2883_v63  ;;  %v2983_v1 = vmul.f32 1.442695, %v2884_v25 }
 0x8d1   : > { %5000 = vpow2.f32 %v2979_v0  ;;  %3081 = vadd.xlane.f32.xlu0 %v3080_v23  ;;  %v8451_v0 = vld [vmem:[#allocation36_spill] sm:$0xff] }
 0x8d2   : > { %v7199_v3 = vpop.eup %4990  ;;  %5002 = vpow2.f32 %v2981_v12 }
 0x8d3   : > { %8446 = vst [vmem:[#allocation39_spill] sm:$0xff] %v7199_v3  ;;  %v7201_v2 = vpop.eup %4992  ;;  %5004 = vpow2.f32 %v2983_v1  ;;  %v2809_v39 = vpop.xlane.xlu1 %2808 }
 0x8d4   : > { %v7203_v20 = vpop.eup %4994  ;;  %v2885_v8 = vsub.f32 %v8448_v62, %v2809_v39  ;;  %v2886_v21 = vsub.f32 %v8449_v46, %v2809_v39  ;;  %v3083_v57 = vadd.f32 %v7201_v2, %v7199_v3  ;;  %v8460_v3 = vld [vmem:[#allocation41_spill] sm:$0xff] }
 0x8d5   : > { %8447 = vst [vmem:[#allocation12_spill] sm:$0xff] %v7203_v20  ;;  %v7209_v40 = vpop.eup %4996  ;;  %v2812_v29 = vpop.xlane.xlu0 %2811 }
 0x8d6   : > { %8450 = vst [vmem:[#allocation6_spill] sm:$0xff] %v7209_v40  ;;  %v2985_v9 = vmul.f32 1.442695, %v2885_v8  ;;  %v2987_v10 = vmul.f32 1.442695, %v2886_v21  ;;  %3084 = vadd.xlane.f32.xlu1 %v3083_v57  ;;  %v2887_v63 = vsub.f32 %v8451_v0, %v2812_v29  ;;  %v2888_v25 = vsub.f32 %v8452_v14, %v2812_v29  ;;  %v8456_v21 = vld [vmem:[#allocation38_spill] sm:$0xff] }
 0x8d7   : > { %v3086_v23 = vadd.f32 %v7209_v40, %v7203_v20  ;;  %v8457_v29 = vld [vmem:[#allocation33_spill] sm:$0xff] }
 0x8d8   : > { %5006 = vpow2.f32 %v2985_v9  ;;  %v2989_v12 = vmul.f32 1.442695, %v2887_v63  ;;  %v2991_v1 = vmul.f32 1.442695, %v2888_v25 }
 0x8d9   : > { %5008 = vpow2.f32 %v2987_v10  ;;  %3087 = vadd.xlane.f32.xlu0 %v3086_v23  ;;  %v8459_v23 = vld [vmem:[#allocation40_spill] sm:$0xff] }
 0x8da   : > { %v7215_v39 = vpop.eup %4998  ;;  %5010 = vpow2.f32 %v2989_v12 }
 0x8db   : > { %8453 = vst [vmem:[#allocation5_spill] sm:$0xff] %v7215_v39  ;;  %v7217_v62 = vpop.eup %5000  ;;  %5012 = vpow2.f32 %v2991_v1  ;;  %v2815_v8 = vpop.xlane.xlu1 %2814 }
 0x8dc   : > { %8454 = vst [vmem:[#allocation11_spill] sm:$0xff] %v7217_v62  ;;  %v7219_v46 = vpop.eup %5002  ;;  %v2889_v57 = vsub.f32 %v8456_v21, %v2815_v8  ;;  %v2890_v0 = vsub.f32 %v8457_v29, %v2815_v8  ;;  %v3089_v9 = vadd.f32 %v7217_v62, %v7215_v39 }
 0x8dd   : > { %8455 = vst [vmem:[#allocation9_spill] sm:$0xff] %v7219_v46  ;;  %v7225_v63 = vpop.eup %5004  ;;  %v2818_v10 = vpop.xlane.xlu0 %2817 }
 0x8de   : > { %8458 = vst [vmem:[#allocation3_spill] sm:$0xff] %v7225_v63  ;;  %v2993_v14 = vmul.f32 1.442695, %v2889_v57  ;;  %v2995_v25 = vmul.f32 1.442695, %v2890_v0  ;;  %3090 = vadd.xlane.f32.xlu1 %v3089_v9  ;;  %v2891_v12 = vsub.f32 %v8459_v23, %v2818_v10  ;;  %v2892_v1 = vsub.f32 %v8460_v3, %v2818_v10  ;;  %v8461_v9 = vld [vmem:[#allocation35_spill] sm:$0xff] }
 0x8df   : > { %v3092_v20 = vadd.f32 %v7225_v63, %v7219_v46  ;;  %v8462_v3 = vld [vmem:[#allocation43_spill] sm:$0xff]  ;;  %v8464_v46 = vld [vmem:[#allocation45_spill] sm:$0xff] }
 0x8e0   : > { %5014 = vpow2.f32 %v2993_v14  ;;  %v2997_v21 = vmul.f32 1.442695, %v2891_v12  ;;  %v2999_v40 = vmul.f32 1.442695, %v2892_v1 }
 0x8e1   : > { %5016 = vpow2.f32 %v2995_v25  ;;  %3093 = vadd.xlane.f32.xlu0 %v3092_v20 }
 0x8e2   : > { %v7231_v8 = vpop.eup %5006  ;;  %5018 = vpow2.f32 %v2997_v21  ;;  %v8463_v21 = vld [vmem:[#allocation44_spill] sm:$0xff] }
 0x8e3   : > { %v7233_v29 = vpop.eup %5008  ;;  %5020 = vpow2.f32 %v2999_v40  ;;  %v2821_v57 = vpop.xlane.xlu1 %2820 }
 0x8e4   : > { %v7235_v0 = vpop.eup %5010  ;;  %v2893_v23 = vsub.f32 %v8461_v9, %v2821_v57  ;;  %v2894_v10 = vsub.f32 %v8462_v3, %v2821_v57  ;;  %v3095_v14 = vadd.f32 %v7233_v29, %v7231_v8 }
 0x8e5   : > { %v7241_v12 = vpop.eup %5012  ;;  %v2824_v25 = vpop.xlane.xlu0 %2823 }
 0x8e6   : > { %v3001_v20 = vmul.f32 1.442695, %v2893_v23  ;;  %v3003_v1 = vmul.f32 1.442695, %v2894_v10  ;;  %3096 = vadd.xlane.f32.xlu1 %v3095_v14  ;;  %v2895_v39 = vsub.f32 %v8463_v21, %v2824_v25  ;;  %v2896_v40 = vsub.f32 %v8464_v46, %v2824_v25 }
 0x8e7   : > { %v3098_v63 = vadd.f32 %v7241_v12, %v7235_v0 }
 0x8e8   : > { %5022 = vpow2.f32 %v3001_v20  ;;  %v3005_v9 = vmul.f32 1.442695, %v2895_v39  ;;  %v3007_v62 = vmul.f32 1.442695, %v2896_v40 }
 0x8e9   : > { %5024 = vpow2.f32 %v3003_v1  ;;  %3099 = vadd.xlane.f32.xlu0 %v3098_v63 }
 0x8ea   : > { %v7247_v57 = vpop.eup %5014  ;;  %5026 = vpow2.f32 %v3005_v9 }
 0x8eb   : > { %8465 = vst [vmem:[#allocation4_spill] sm:$0xff] %v7247_v57  ;;  %v7249_v3 = vpop.eup %5016  ;;  %5028 = vpow2.f32 %v3007_v62 }
 0x8ec   : > { %v7251_v23 = vpop.eup %5018  ;;  %v3101_v10 = vadd.f32 %v7249_v3, %v7247_v57 }
 0x8ed   : > { %8466 = vst [vmem:[#allocation36_spill] sm:$0xff] %v7251_v23  ;;  %v7255_v46 = vpop.eup %5020 }
 0x8ee   : > { %8467 = vst [vmem:[#allocation37_spill] sm:$0xff] %v7255_v46  ;;  %3102 = vadd.xlane.f32.xlu1 %v3101_v10  ;;  %v3104_v39 = vadd.f32 %v7255_v46, %v7251_v23 }
 0x8f0   : > { %3105 = vadd.xlane.f32.xlu0 %v3104_v39 }
 0x8f2   : > { %v7259_v14 = vpop.eup %5022 }
 0x8f3   : > { %8468 = vst [vmem:[#allocation38_spill] sm:$0xff] %v7259_v14  ;;  %v7261_v63 = vpop.eup %5024 }
 0x8f4   : > { %8469 = vst [vmem:[#allocation33_spill] sm:$0xff] %v7261_v63  ;;  %v7263_v25 = vpop.eup %5026  ;;  %v3107_v62 = vadd.f32 %v7261_v63, %v7259_v14 }
 0x8f5   : > { %8470 = vst [vmem:[#allocation40_spill] sm:$0xff] %v7263_v25  ;;  %v7267_v20 = vpop.eup %5028 }
 0x8f6   : > { %8471 = vst [vmem:[#allocation41_spill] sm:$0xff] %v7267_v20  ;;  %3108 = vadd.xlane.f32.xlu1 %v3107_v62  ;;  %v3110_v1 = vadd.f32 %v7267_v20, %v7263_v25 }
 0x8f8   : > { %3111 = vadd.xlane.f32.xlu0 %v3110_v1 }
 0x92b   : > { %v3043_v21 = vpop.xlane.xlu1 %3042 }
 0x92c   : > { %5030 = vrcp.f32 %v3043_v21 }
 0x92e   : > { %v3046_v40 = vpop.xlane.xlu0 %3045 }
 0x92f   : > { %5032 = vrcp.f32 %v3046_v40  ;;  %v2827_v9 = vpop.xlane.xlu1 %2826 }
 0x930   : > { %v2897_v10 = vsub.f32 %v7007_v55, %v2827_v9  ;;  %v2898_v39 = vsub.f32 %v7009_v15, %v2827_v9 }
 0x932   : > { %v3009_v57 = vmul.f32 1.442695, %v2897_v10  ;;  %v3011_v23 = vmul.f32 1.442695, %v2898_v39  ;;  %v2830_v46 = vpop.xlane.xlu0 %2829 }
 0x933   : > { %v2899_v14 = vsub.f32 %v7013_v42, %v2830_v46  ;;  %v2900_v62 = vsub.f32 %v7015_v34, %v2830_v46  ;;  %v3049_v63 = vpop.xlane.xlu1 %3048 }
 0x934   : > { %5034 = vpow2.f32 %v3009_v57 }
 0x935   : > { %5036 = vpow2.f32 %v3011_v23  ;;  %v3013_v1 = vmul.f32 1.442695, %v2899_v14  ;;  %v3015_v25 = vmul.f32 1.442695, %v2900_v62 }
 0x936   : > { %v5031_v21 = vpop.eup %5030  ;;  %5038 = vrcp.f32 %v3049_v63 }
 0x937   : > { %5040 = vpow2.f32 %v3013_v1  ;;  %v2833_v40 = vpop.xlane.xlu1 %2832  ;;  %v3052_v20 = vpop.xlane.xlu0 %3051  ;;  %v3170_v42 = vmul.f32 %v5031_v21, %v7065_v47  ;;  %v3169_v10 = vmul.f32 %v5031_v21, %v7063_v50 }
 0x938   : > { %5042 = vpow2.f32 %v3015_v25  ;;  %v2901_v55 = vsub.f32 %v7019_v13, %v2833_v40  ;;  %v2902_v15 = vsub.f32 %v7021_v35, %v2833_v40 }
 0x939   : > { %v5033_v9 = vpop.eup %5032  ;;  %5044 = vrcp.f32 %v3052_v20 }
 0x93a   : > { %v3017_v34 = vmul.f32 1.442695, %v2901_v55  ;;  %v3019_v46 = vmul.f32 1.442695, %v2902_v15  ;;  %v3172_v57 = vmul.f32 %v5033_v9, %v7073_v59  ;;  %v3171_v23 = vmul.f32 %v5033_v9, %v7067_v52 }
 0x93b   : > { %v3055_v14 = vpop.xlane.xlu1 %3054  ;;  %v2836_v63 = vpop.xlane.xlu0 %2835 }
 0x93c   : > { %5046 = vpow2.f32 %v3017_v34  ;;  %v2903_v25 = vsub.f32 %v7025_v37, %v2836_v63  ;;  %v2904_v13 = vsub.f32 %v7027_v19, %v2836_v63  ;;  %v3234_v35 = vpack.c.bf16 %v3172_v57, %v3170_v42 }
 0x93d   : > { %5048 = vpow2.f32 %v3019_v46  ;;  %v3233_v20 = vpack.c.bf16 %v3171_v23, %v3169_v10 }
 0x93e   : > { %v7283_v39 = vpop.eup %5034  ;;  %5050 = vrcp.f32 %v3055_v14  ;;  %v3021_v47 = vmul.f32 1.442695, %v2903_v25  ;;  %v3023_v62 = vmul.f32 1.442695, %v2904_v13  ;;  %3265 = vmatprep.subr.bf16.mxu1 %v3234_v35 }
 0x93f   : > { %v7285_v59 = vpop.eup %5036  ;;  %3266 = vmatpush1.bf16.xpose.msra.mxu1 %v3233_v20  ;;  %v2839_v52 = vpop.xlane.xlu1 %2838 }
 0x940   : > { %v3058_v1 = vpop.xlane.xlu0 %3057  ;;  %v5039_v50 = vpop.eup %5038  ;;  %5052 = vpow2.f32 %v3021_v47  ;;  %v2905_v37 = vsub.f32 %v7031_v56, %v2839_v52  ;;  %v2906_v19 = vsub.f32 %v7033_v41, %v2839_v52  ;;  %v3113_v21 = vadd.f32 %v7285_v59, %v7283_v39 }
 0x941   : > { %v7291_v40 = vpop.eup %5040  ;;  %5054 = vpow2.f32 %v3023_v62  ;;  %v3174_v41 = vmul.f32 %v5039_v50, %v7084_v5  ;;  %v3173_v63 = vmul.f32 %v5039_v50, %v7079_v51 }
 0x942   : > { %v7293_v55 = vpop.eup %5042  ;;  %v3025_v15 = vmul.f32 1.442695, %v2905_v37  ;;  %v3027_v9 = vmul.f32 1.442695, %v2906_v19  ;;  %5056 = vrcp.f32 %v3058_v1  ;;  %3114 = vadd.xlane.f32.xlu1 %v3113_v21 }
 0x943   : > { %v5045_v42 = vpop.eup %5044  ;;  %v3061_v34 = vpop.xlane.xlu1 %3060  ;;  %v3116_v46 = vadd.f32 %v7293_v55, %v7291_v40 }
 0x944   : > { %v2842_v56 = vpop.xlane.xlu0 %2841  ;;  %5058 = vpow2.f32 %v3025_v15  ;;  %v3176_v14 = vmul.f32 %v5045_v42, %v7097_v61  ;;  %v3175_v10 = vmul.f32 %v5045_v42, %v7093_v32 }
 0x945   : > { %v2907_v57 = vsub.f32 %v7037_v33, %v2842_v56  ;;  %v2908_v23 = vsub.f32 %v7039_v6, %v2842_v56  ;;  %5060 = vpow2.f32 %v3027_v9  ;;  %3117 = vadd.xlane.f32.xlu0 %v3116_v46 }
 0x946   : > { %v7303_v25 = vpop.eup %5046  ;;  %v3236_v20 = vpack.c.bf16 %v3176_v14, %v3174_v41  ;;  %5062 = vrcp.f32 %v3061_v34  ;;  %v3235_v62 = vpack.c.bf16 %v3175_v10, %v3173_v63 }
 0x947   : > { %v3029_v13 = vmul.f32 1.442695, %v2907_v57  ;;  %v3031_v35 = vmul.f32 1.442695, %v2908_v23  ;;  %v7305_v47 = vpop.eup %5048  ;;  %v2845_v5 = vpop.xlane.xlu1 %2844 }
 0x948   : > { %v3064_v33 = vpop.xlane.xlu0 %3063  ;;  %v5051_v6 = vpop.eup %5050  ;;  %v2909_v61 = vsub.f32 %v7043_v43, %v2845_v5  ;;  %v2910_v52 = vsub.f32 %v7045_v48, %v2845_v5  ;;  %3267 = vmatprep.subr.bf16.mxu1 %v3236_v20  ;;  %v3119_v51 = vadd.f32 %v7305_v47, %v7303_v25 }
 0x949   : > { %5064 = vpow2.f32 %v3029_v13  ;;  %3268 = vmatpush1.bf16.xpose.msra.mxu1 %v3235_v62  ;;  %v3178_v21 = vmul.f32 %v5051_v6, %v7106_v4  ;;  %v3177_v46 = vmul.f32 %v5051_v6, %v7101_v28 }
 0x94a   : > { %5066 = vpow2.f32 %v3031_v35  ;;  %v7311_v32 = vpop.eup %5052  ;;  %v3033_v1 = vmul.f32 1.442695, %v2909_v61  ;;  %v3035_v50 = vmul.f32 1.442695, %v2910_v52  ;;  %3120 = vadd.xlane.f32.xlu1 %v3119_v51 }
 0x94b   : > { %5068 = vrcp.f32 %v3064_v33  ;;  %v7313_v37 = vpop.eup %5054  ;;  %v3067_v48 = vpop.xlane.xlu1 %3066 }
 0x94c   : > { %v2848_v19 = vpop.xlane.xlu0 %2847  ;;  %v5057_v43 = vpop.eup %5056  ;;  %5070 = vpow2.f32 %v3033_v1  ;;  %v3122_v42 = vadd.f32 %v7313_v37, %v7311_v32 }
 0x94d   : > { %v2911_v15 = vsub.f32 %v7049_v58, %v2848_v19  ;;  %v2912_v9 = vsub.f32 %v7051_v16, %v2848_v19  ;;  %5072 = vpow2.f32 %v3035_v50  ;;  %v3180_v34 = vmul.f32 %v5057_v43, %v7114_v60 }
 0x94e   : > { %v3179_v56 = vmul.f32 %v5057_v43, %v7108_v11  ;;  %v7323_v41 = vpop.eup %5058  ;;  %3123 = vadd.xlane.f32.xlu0 %v3122_v42  ;;  %5074 = vrcp.f32 %v3067_v48 }
 0x94f   : > { %v3037_v4 = vmul.f32 1.442695, %v2911_v15  ;;  %v3039_v57 = vmul.f32 1.442695, %v2912_v9  ;;  %v7325_v23 = vpop.eup %5060  ;;  %v3238_v58 = vpack.c.bf16 %v3180_v34, %v3178_v21 }
 0x950   : > { %v3070_v16 = vpop.xlane.xlu0 %3069  ;;  %v3237_v14 = vpack.c.bf16 %v3179_v56, %v3177_v46  ;;  %v3125_v63 = vadd.f32 %v7325_v23, %v7323_v41  ;;  %v5063_v60 = vpop.eup %5062 }
 0x951   : > { %5076 = vpow2.f32 %v3037_v4  ;;  %3269 = vmatprep.subr.bf16.mxu1 %v3238_v58  ;;  %v3182_v20 = vmul.f32 %v5063_v60, %v7128_v22  ;;  %v3181_v33 = vmul.f32 %v5063_v60, %v7123_v17  ;;  %v376_v60 = vld [vmem:[%s8069_s5 + $0x30] sm:$0xff] }
 0x952   : > { %5078 = vpow2.f32 %v3039_v57  ;;  %3270 = vmatpush1.bf16.xpose.msra.mxu1 %v3237_v14  ;;  %3126 = vadd.xlane.f32.xlu1 %v3125_v63 }
 0x953   : > { %v7329_v28 = vpop.eup %5064  ;;  %5080 = vrcp.f32 %v3070_v16  ;;  %v3073_v10 = vpop.xlane.xlu1 %3072 }
 0x954   : > { %v7331_v11 = vpop.eup %5066  ;;  %5082 = vrcp.f32 %v3073_v10 }
 0x955   : > { %v5069_v13 = vpop.eup %5068  ;;  %v3128_v35 = vadd.f32 %v7331_v11, %v7329_v28 }
 0x956   : > { %v3184_v5 = vmul.f32 %v5069_v13, %v7136_v44  ;;  %v3183_v62 = vmul.f32 %v5069_v13, %v7130_v38  ;;  %v7339_v6 = vpop.eup %5070  ;;  %v3076_v61 = vpop.xlane.xlu0 %3075 }
 0x957   : > { %3129 = vadd.xlane.f32.xlu0 %v3128_v35  ;;  %v7341_v52 = vpop.eup %5072  ;;  %5084 = vrcp.f32 %v3076_v61  ;;  %v8473_v61 = vld [vmem:[#allocation6_spill] sm:$0xff] }
 0x958   : > { %v3240_v51 = vpack.c.bf16 %v3184_v5, %v3182_v20  ;;  %v3239_v1 = vpack.c.bf16 %v3183_v62, %v3181_v33  ;;  %v3131_v50 = vadd.f32 %v7341_v52, %v7339_v6  ;;  %v5075_v22 = vpop.eup %5074  ;;  %v8472_v33 = vld [vmem:[#allocation18_spill] sm:$0xff] }
 0x959   : > { %v3186_v43 = vmul.f32 %v5075_v22, %v7150_v53  ;;  %v3185_v15 = vmul.f32 %v5075_v22, %v7145_v7  ;;  %v8475_v22 = vld [vmem:[#allocation12_spill] sm:$0xff] }
 0x95a   : > { %3271 = vmatprep.subr.bf16.mxu1 %v3240_v51  ;;  %3132 = vadd.xlane.f32.xlu1 %v3131_v50 }
 0x95b   : > { %v7345_v19 = vpop.eup %5076  ;;  %3272 = vmatpush1.bf16.xpose.msra.mxu1 %v3239_v1  ;;  %v3079_v38 = vpop.xlane.xlu1 %3078  ;;  %v8474_v1 = vld [vmem:[#allocation17_spill] sm:$0xff] }
 0x95c   : > { %v7347_v17 = vpop.eup %5078  ;;  %5086 = vrcp.f32 %v3079_v38 }
 0x95d   : > { %v5081_v44 = vpop.eup %5080  ;;  %v3134_v21 = vadd.f32 %v7347_v17, %v7345_v19 }
 0x95e   : > { %v3188_v48 = vmul.f32 %v5081_v44, %v7158_v54  ;;  %v3187_v9 = vmul.f32 %v5081_v44, %v7152_v27  ;;  %v3082_v42 = vpop.xlane.xlu0 %3081  ;;  %v5083_v34 = vpop.eup %5082 }
 0x95f   : > { %3135 = vadd.xlane.f32.xlu0 %v3134_v21  ;;  %5088 = vrcp.f32 %v3082_v42  ;;  %v3190_v57 = vmul.f32 %v5083_v34, %v7169_v31  ;;  %v3189_v27 = vmul.f32 %v5083_v34, %v7167_v24  ;;  %v8476_v21 = vld [vmem:[#allocation39_spill] sm:$0xff] }
 0x960   : > { %v3242_v46 = vpack.c.bf16 %v3188_v48, %v3186_v43  ;;  %v3241_v56 = vpack.c.bf16 %v3187_v9, %v3185_v15  ;;  %v8477_v15 = vld [vmem:[#allocation19_spill] sm:$0xff] }
 0x961   : > { %v5085_v4 = vpop.eup %5084  ;;  %v8479_v34 = vld [vmem:[#allocation11_spill] sm:$0xff] }
 0x962   : > { %3273 = vmatprep.subr.bf16.mxu1 %v3242_v46  ;;  %v3192_v53 = vmul.f32 %v5085_v4, %v7177_v18  ;;  %v3191_v54 = vmul.f32 %v5085_v4, %v7171_v36 }
 0x963   : > { %3274 = vmatpush1.bf16.xpose.msra.mxu1 %v3241_v56  ;;  %v3085_v58 = vpop.xlane.xlu1 %3084  ;;  %v8480_v56 = vld [vmem:[#allocation3_spill] sm:$0xff] }
 0x964   : > { %v3244_v16 = vpack.c.bf16 %v3192_v53, %v3190_v57  ;;  %5090 = vrcp.f32 %v3085_v58  ;;  %v3243_v63 = vpack.c.bf16 %v3191_v54, %v3189_v27  ;;  %v8481_v57 = vld [vmem:[#allocation21_spill] sm:$0xff]  ;;  %v8482_v58 = vld [vmem:[#allocation22_spill] sm:$0xff] }
 0x965   : > { %v8483_v54 = vld [vmem:[#allocation9_spill] sm:$0xff] }
 0x966   : > { %3275 = vmatprep.subr.bf16.mxu1 %v3244_v16  ;;  %v3088_v7 = vpop.xlane.xlu0 %3087  ;;  %v5087_v14 = vpop.eup %5086 }
 0x967   : > { %5092 = vrcp.f32 %v3088_v7  ;;  %v3194_v31 = vmul.f32 %v5087_v14, %v7185_v45  ;;  %v3193_v20 = vmul.f32 %v5087_v14, %v7183_v49  ;;  %v8484_v14 = vld [vmem:[#allocation5_spill] sm:$0xff] }
 0x969   : > { %v5089_v10 = vpop.eup %5088 }
 0x96a   : > { %v3196_v18 = vmul.f32 %v5089_v10, %v7193_v30  ;;  %v3195_v35 = vmul.f32 %v5089_v10, %v7187_v26  ;;  %v373_v30 = vld [vmem:[%s8069_s5 + $0x18] sm:$0xff]  ;;  %v8485_v10 = vld [vmem:[#allocation23_spill] sm:$0xff] }
 0x96b   : > { %3276 = vmatpush1.bf16.xpose.msra.mxu1 %v3243_v63  ;;  %410 = vperm.xlu1 %4541, %v376_v60   ;;  %v3091_v36 = vpop.xlane.xlu1 %3090 }
 0x96c   : > { %v3246_v13 = vpack.c.bf16 %v3196_v18, %v3194_v31  ;;  %5094 = vrcp.f32 %v3091_v36  ;;  %v3245_v62 = vpack.c.bf16 %v3195_v35, %v3193_v20  ;;  %v8486_v31 = vld [vmem:[#allocation24_spill] sm:$0xff] }
 0x96e   : > { %3277 = vmatprep.subr.bf16.mxu1 %v3246_v13  ;;  %v3094_v24 = vpop.xlane.xlu0 %3093  ;;  %v5091_v5 = vpop.eup %5090 }
 0x96f   : > { %5096 = vrcp.f32 %v3094_v24  ;;  %3312 = vrot.lane.b32.xlu1 %v8472_v33, %s5345_s14  ;;  %v3198_v26 = vmul.f32 %v5091_v5, %v7201_v2  ;;  %v3197_v43 = vmul.f32 %v5091_v5, %v8476_v21  ;;  %v8478_v2 = vld [vmem:[#allocation20_spill] sm:$0xff]  ;;  %v8487_v24 = vld [vmem:[#allocation25_spill] sm:$0xff]  ;;  %v8488_v5 = vld [vmem:[#allocation26_spill] sm:$0xff] }
 0x971   : > { %v5093_v45 = vpop.eup %5092 }
 0x972   : > { %v3200_v51 = vmul.f32 %v5093_v45, %v8473_v61  ;;  %v3199_v38 = vmul.f32 %v5093_v45, %v8475_v22  ;;  %v8490_v61 = vld [vmem:[#allocation28_spill] sm:$0xff] }
 0x973   : > { %3278 = vmatpush1.bf16.xpose.msra.mxu1 %v3245_v62  ;;  %3314 = vrot.lane.b32.xlu1 %v8474_v1, %s5345_s14  ;;  %v3097_v49 = vpop.xlane.xlu1 %3096 }
 0x974   : > { %v3248_v50 = vpack.c.bf16 %v3200_v51, %v3198_v26  ;;  %5098 = vrcp.f32 %v3097_v49  ;;  %v3247_v9 = vpack.c.bf16 %v3199_v38, %v3197_v43  ;;  %v8491_v49 = vld [vmem:[#allocation37_spill] sm:$0xff]  ;;  %v8493_v38 = vld [vmem:[#allocation30_spill] sm:$0xff]  ;;  %v8495_v43 = vld [vmem:[#allocation4_spill] sm:$0xff] }
 0x975   : > { %395 = vperm.xlu0 %4540, %v373_v30  }
 0x976   : > { %3279 = vmatprep.subr.bf16.mxu1 %v3248_v50  ;;  %v3100_v44 = vpop.xlane.xlu0 %3099  ;;  %v5095_v48 = vpop.eup %5094 }
 0x977   : > { %5100 = vrcp.f32 %v3100_v44  ;;  %3318 = vrot.lane.b32.xlu1 %v8477_v15, %s5345_s14  ;;  %v3202_v46 = vmul.f32 %v5095_v48, %v8479_v34  ;;  %v3201_v63 = vmul.f32 %v5095_v48, %v8484_v14  ;;  %v8496_v15 = vld [vmem:[#allocation31_spill] sm:$0xff] }
 0x979   : > { %3316 = vrot.lane.b32.xlu0 %v8478_v2, %s5345_s14  ;;  %v5097_v42 = vpop.eup %5096  ;;  %v8497_v2 = vld [vmem:[#allocation32_spill] sm:$0xff] }
 0x97a   : > { %v3204_v4 = vmul.f32 %v5097_v42, %v8480_v56  ;;  %v3203_v7 = vmul.f32 %v5097_v42, %v8483_v54  ;;  %v8498_v42 = vld [vmem:[#allocation33_spill] sm:$0xff] }
 0x97b   : > { %3280 = vmatpush1.bf16.xpose.msra.mxu1 %v3247_v9  ;;  %3322 = vrot.lane.b32.xlu1 %v8481_v57, %s5345_s14  ;;  %v3103_v53 = vpop.xlane.xlu1 %3102  ;;  %v8500_v57 = vld [vmem:[#allocation40_spill] sm:$0xff] }
 0x97c   : > { %5102 = vrcp.f32 %v3103_v53  ;;  %v3250_v16 = vpack.c.bf16 %v3204_v4, %v3202_v46  ;;  %v3249_v18 = vpack.c.bf16 %v3203_v7, %v3201_v63  ;;  %v8499_v46 = vld [vmem:[#allocation41_spill] sm:$0xff] }
 0x97d   : > { %3320 = vrot.lane.b32.xlu0 %v8482_v58, %s5345_s14  ;;  %v3106_v27 = vpop.xlane.xlu0 %3105  ;;  %v8501_v58 = vld [vmem:[#allocation38_spill] sm:$0xff] }
 0x97e   : > { %3281 = vmatprep.subr.bf16.mxu1 %v3250_v16  ;;  %5104 = vrcp.f32 %v3106_v27  ;;  %v5099_v60 = vpop.eup %5098 }
 0x97f   : > { %3326 = vrot.lane.b32.xlu1 %v8485_v10, %s5345_s14  ;;  %v3206_v13 = vmul.f32 %v5099_v60, %v7233_v29  ;;  %v3205_v26 = vmul.f32 %v5099_v60, %v7231_v8  ;;  %v8489_v29 = vld [vmem:[#allocation27_spill] sm:$0xff]  ;;  %v8494_v8 = vld [vmem:[#allocation36_spill] sm:$0xff] }
 0x981   : > { %3324 = vrot.lane.b32.xlu0 %v8486_v31, %s5345_s14  ;;  %v5101_v36 = vpop.eup %5100 }
 0x982   : > { %v3208_v35 = vmul.f32 %v5101_v36, %v7241_v12  ;;  %v3207_v62 = vmul.f32 %v5101_v36, %v7235_v0  ;;  %v8492_v0 = vld [vmem:[#allocation29_spill] sm:$0xff] }
 0x983   : > { %3282 = vmatpush1.bf16.xpose.msra.mxu1 %v3249_v18  ;;  %3330 = vrot.lane.b32.xlu1 %v8487_v24, %s5345_s14  ;;  %v3109_v20 = vpop.xlane.xlu1 %3108 }
 0x984   : > { %5106 = vrcp.f32 %v3109_v20  ;;  %v3252_v33 = vpack.c.bf16 %v3208_v35, %v3206_v13  ;;  %v3251_v51 = vpack.c.bf16 %v3207_v62, %v3205_v26 }
 0x985   : > { %3328 = vrot.lane.b32.xlu0 %v8488_v5, %s5345_s14  ;;  %v3112_v45 = vpop.xlane.xlu0 %3111 }
 0x986   : > { %v5103_v30 = vpop.eup %5102  ;;  %3283 = vmatprep.subr.bf16.mxu1 %v3252_v33  ;;  %5108 = vrcp.f32 %v3112_v45 }
 0x987   : > { %3334 = vrot.lane.b32.xlu1 %v8489_v29, %s5345_s14  ;;  %v3210_v1 = vmul.f32 %v5103_v30, %v7249_v3  ;;  %v3209_v48 = vmul.f32 %v5103_v30, %v8495_v43  ;;  %v8503_v43 = vld [vmem:[#allocation8_spill] sm:$0xff] }
 0x988   : > { %v5105_v12 = vpop.eup %5104 }
 0x989   : > { %3332 = vrot.lane.b32.xlu0 %v8490_v61, %s5345_s14  ;;  %v3212_v50 = vmul.f32 %v5105_v12, %v8491_v49  ;;  %v3211_v44 = vmul.f32 %v5105_v12, %v8494_v8 }
 0x98b   : > { %3284 = vmatpush1.bf16.xpose.msra.mxu1 %v3251_v51  ;;  %3338 = vrot.lane.b32.xlu1 %v8492_v0, %s5345_s14  ;;  %v3254_v22 = vpack.c.bf16 %v3212_v50, %v3210_v1  ;;  %v3253_v9 = vpack.c.bf16 %v3211_v44, %v3209_v48  ;;  %v8502_v51 = vld [vmem:[#allocation14_spill] sm:$0xff] }
 0x98d   : > { %3336 = vrot.lane.b32.xlu0 %v8493_v38, %s5345_s14  ;;  %3285 = vmatprep.subr.bf16.mxu1 %v3254_v22 }
 0x98e   : > { %v5107_v21 = vpop.eup %5106 }
 0x98f   : > { %3342 = vrot.lane.b32.xlu1 %v8496_v15, %s5345_s14  ;;  %v3214_v34 = vmul.f32 %v5107_v21, %v8498_v42  ;;  %v3213_v16 = vmul.f32 %v5107_v21, %v8501_v58  ;;  %v8505_v42 = vld [vmem:[#allocation13_spill] sm:$0xff] }
 0x990   : > { %v5109_v3 = vpop.eup %5108 }
 0x991   : > { %3340 = vrot.lane.b32.xlu0 %v8497_v2, %s5345_s14  ;;  %v3216_v56 = vmul.f32 %v5109_v3, %v8499_v46  ;;  %v3215_v53 = vmul.f32 %v5109_v3, %v8500_v57  ;;  %v8504_v3 = vld [vmem:[#allocation7_spill] sm:$0xff] }
 0x993   : > { %3286 = vmatpush1.bf16.xpose.msra.mxu1 %v3253_v9  ;;  %v3256_v4 = vpack.c.bf16 %v3216_v56, %v3214_v34  ;;  %v3255_v54 = vpack.c.bf16 %v3215_v53, %v3213_v16 }
 0x995   : > { %3287 = vmatprep.subr.bf16.mxu1 %v3256_v4 }
 0x99b   : > { %3288 = vmatpush1.bf16.xpose.msra.mxu1 %v3255_v54 }
 0x9cf   : > { %v3115_v7 = vpop.xlane.xlu1 %3114 }
 0x9d0   : > { %5110 = vrcp.f32 %v3115_v7 }
 0x9d2   : > { %v3118_v27 = vpop.xlane.xlu0 %3117 }
 0x9d3   : > { %5112 = vrcp.f32 %v3118_v27 }
 0x9d7   : > { %v3121_v14 = vpop.xlane.xlu1 %3120 }
 0x9d8   : > { %5114 = vrcp.f32 %v3121_v14 }
 0x9da   : > { %v5111_v63 = vpop.eup %5110 }
 0x9db   : > { %v3124_v60 = vpop.xlane.xlu0 %3123  ;;  %v3218_v31 = vmul.f32 %v5111_v63, %v7285_v59  ;;  %v3217_v36 = vmul.f32 %v5111_v63, %v7283_v39 }
 0x9dc   : > { %5116 = vrcp.f32 %v3124_v60 }
 0x9dd   : > { %v5113_v10 = vpop.eup %5112 }
 0x9de   : > { %v3220_v18 = vmul.f32 %v5113_v10, %v7293_v55  ;;  %v3219_v13 = vmul.f32 %v5113_v10, %v7291_v40 }
 0x9df   : > { %v3127_v35 = vpop.xlane.xlu1 %3126 }
 0x9e0   : > { %v3258_v24 = vpack.c.bf16 %v3220_v18, %v3218_v31  ;;  %v3257_v20 = vpack.c.bf16 %v3219_v13, %v3217_v36  ;;  %5118 = vrcp.f32 %v3127_v35 }
 0x9e2   : > { %3289 = vmatprep.subr.bf16.mxu1 %v3258_v24  ;;  %v5115_v33 = vpop.eup %5114 }
 0x9e3   : > { %3290 = vmatpush1.bf16.xpose.msra.mxu1 %v3257_v20  ;;  %v3222_v30 = vmul.f32 %v5115_v33, %v7305_v47  ;;  %v3221_v55 = vmul.f32 %v5115_v33, %v7303_v25 }
 0x9e4   : > { %v3130_v5 = vpop.xlane.xlu0 %3129 }
 0x9e5   : > { %5120 = vrcp.f32 %v3130_v5 }
 0x9e6   : > { %v5117_v62 = vpop.eup %5116 }
 0x9e7   : > { %v3133_v45 = vpop.xlane.xlu1 %3132  ;;  %v3224_v59 = vmul.f32 %v5117_v62, %v7313_v37  ;;  %v3223_v39 = vmul.f32 %v5117_v62, %v7311_v32 }
 0x9e8   : > { %5122 = vrcp.f32 %v3133_v45 }
 0x9e9   : > { %v3260_v40 = vpack.c.bf16 %v3224_v59, %v3222_v30  ;;  %v3259_v26 = vpack.c.bf16 %v3223_v39, %v3221_v55 }
 0x9ea   : > { %v5119_v61 = vpop.eup %5118 }
 0x9eb   : > { %v411_v29 = vpop.permute.xlu1 %410  ;;  %3291 = vmatprep.subr.bf16.mxu1 %v3260_v40  ;;  %v3226_v47 = vmul.f32 %v5119_v61, %v7325_v23  ;;  %v3225_v25 = vmul.f32 %v5119_v61, %v7323_v41 }
 0x9ec   : > { %v3136_v12 = vpop.xlane.xlu0 %3135  ;;  %v518_v1 = vadd.f32 %v8502_v51, %v411_v29  ;;  %3292 = vmatpush1.bf16.xpose.msra.mxu1 %v3259_v26  ;;  %v516_v34 = vadd.f32 %v8505_v42, %v411_v29 }
 0x9ed   : > { %5124 = vrcp.f32 %v3136_v12 }
 0x9ee   : > { %v2473_v50 = vpack.c.bf16 %v518_v1, %v518_v1  ;;  %v2472_v46 = vpack.c.bf16 %v516_v34, %v516_v34 }
 0x9ef   : > { %v5121_v49 = vpop.eup %5120 }
 0x9f0   : > { %v3228_v37 = vmul.f32 %v5121_v49, %v7331_v11  ;;  %v3227_v32 = vmul.f32 %v5121_v49, %v7329_v28  ;;  %3297 = vmatprep.mubr.bf16.mxu1 %v2473_v50 }
 0x9f2   : > { %v3262_v0 = vpack.c.bf16 %v3228_v37, %v3226_v47  ;;  %v3261_v22 = vpack.c.bf16 %v3227_v32, %v3225_v25  ;;  %v5123_v38 = vpop.eup %5122 }
 0x9f3   : > { %v3230_v21 = vmul.f32 %v5123_v38, %v7341_v52  ;;  %v3229_v11 = vmul.f32 %v5123_v38, %v7339_v6  ;;  %v8506_v6 = vmov 0  }
 0x9f4   : > { %3293 = vmatprep.subr.bf16.mxu1 %v3262_v0  ;;  %v396_v8 = vpop.permute.xlu0 %395 }
 0x9f5   : > { %3294 = vmatpush1.bf16.xpose.msra.mxu1 %v3261_v22  ;;  %v502_v48 = vadd.f32 %v8503_v43, %v396_v8  ;;  %v500_v2 = vadd.f32 %v8504_v3, %v396_v8 }
 0x9f7   : > { %v5125_v44 = vpop.eup %5124  ;;  %v3309_v9 = vpack.c.bf16 %v502_v48, %v502_v48  ;;  %v3308_v52 = vpack.c.bf16 %v500_v2, %v500_v2 }
 0x9f8   : > { %v3232_v23 = vmul.f32 %v5125_v44, %v7347_v17  ;;  %v3231_v41 = vmul.f32 %v5125_v44, %v7345_v19  ;;  %v3313_v19 = vpop.permute.xlu1 %3312  ;;  %v3317_v4 = vpop.permute.xlu0 %3316 }
 0x9f9   : > { %v3393_v17 = vsel %vm861_vm1, %v3308_v52, 0 }
 0x9fa   : > { %v3264_v15 = vpack.c.bf16 %v3232_v23, %v3230_v21  ;;  %v3263_v28 = vpack.c.bf16 %v3231_v41, %v3229_v11 }
 0x9fc   : > { %3295 = vmatprep.subr.bf16.mxu1 %v3264_v15  ;;  %v3315_v56 = vpop.permute.xlu1 %3314  ;;  %v3321_v53 = vpop.permute.xlu0 %3320 }
 0x9fd   : > { %3296 = vmatpush1.bf16.xpose.msra.mxu1 %v3263_v28 }
 0x9fe   : > { %4431 = vmatprep.subr.msk.bf16.mxu1 %vm861_vm1, %v3309_v9 }
 0xa00   : > { %v3319_v57 = vpop.permute.xlu1 %3318  ;;  %v3325_v16 = vpop.permute.xlu0 %3324 }
 0xa04   : > { %3298 = vmatmul.mubr.bf16.vlgmr.msra.gmra.mrb[68].mxu1 %v2472_v46  ;;  %v3323_v58 = vpop.permute.xlu1 %3322  ;;  %v3329_v7 = vpop.permute.xlu0 %3328 }
 0xa05   : > { %3399 = vmatpush1.bf16.msra.mxu1 %v3393_v17  ;;  %3430 = vmatprep.mubr.bf16.mxu1 %v8506_v6 }
 0xa08   : > { %v3327_v54 = vpop.permute.xlu1 %3326  ;;  %v3333_v14 = vpop.permute.xlu0 %3332 }
 0xa0c   : > { %4432 = vmatmul.mubr.msk.bf16.vlgmr.msra.gmra.mrb[72].mxu1 %vm812_vm2, %v3313_v19  ;;  %v3331_v27 = vpop.permute.xlu1 %3330  ;;  %v3337_v60 = vpop.permute.xlu0 %3336 }
 0xa0d   : > { %3440 = vmatprep.mubr.bf16.mxu1 %v8506_v6 }
 0xa10   : > { %v3335_v63 = vpop.permute.xlu1 %3334  ;;  %v3341_v31 = vpop.permute.xlu0 %3340 }
 0xa14   : > { %4433 = vmatmul.mubr.msk.bf16.gmra.mrb[76].mxu1 %vm812_vm2, %v3315_v56  ;;  %v3339_v10 = vpop.permute.xlu1 %3338 }
 0xa15   : > { %3450 = vmatprep.mubr.bf16.mxu1 %v8506_v6 }
 0xa18   : > { %v3343_v18 = vpop.permute.xlu1 %3342 }
 0xa1c   : > { %4434 = vmatmul.mubr.msk.bf16.gmra.mrb[80].mxu1 %vm812_vm2, %v3317_v4 }
 0xa1d   : > { %3460 = vmatprep.mubr.bf16.mxu1 %v8506_v6 }
 0xa24   : > { %4435 = vmatmul.mubr.msk.bf16.gmra.mrb[84].mxu1 %vm812_vm2, %v3319_v57 }
 0xa25   : > { %3470 = vmatprep.mubr.bf16.mxu1 %v8506_v6 }
 0xa2c   : > { %4436 = vmatmul.mubr.msk.bf16.gmra.mrb[88].mxu1 %vm812_vm2, %v3321_v53 }
 0xa2d   : > { %3480 = vmatprep.mubr.bf16.mxu1 %v8506_v6 }
 0xa34   : > { %4437 = vmatmul.mubr.msk.bf16.gmra.mrb[92].mxu1 %vm812_vm2, %v3323_v58 }
 0xa35   : > { %3490 = vmatprep.mubr.bf16.mxu1 %v8506_v6 }
 0xa3c   : > { %4438 = vmatmul.mubr.msk.bf16.gmra.mrb[96].mxu1 %vm812_vm2, %v3325_v16 }
 0xa3d   : > { %3500 = vmatprep.mubr.bf16.mxu1 %v8506_v6 }
 0xa44   : > { %4439 = vmatmul.mubr.msk.bf16.gmra.mrb[100].mxu1 %vm812_vm2, %v3327_v54 }
 0xa45   : > { %3510 = vmatprep.mubr.bf16.mxu1 %v8506_v6 }
 0xa4c   : > { %4440 = vmatmul.mubr.msk.bf16.gmra.mrb[104].mxu1 %vm812_vm2, %v3329_v7 }
 0xa4d   : > { %3520 = vmatprep.mubr.bf16.mxu1 %v8506_v6 }
 0xa54   : > { %4441 = vmatmul.mubr.msk.bf16.gmra.mrb[108].mxu1 %vm812_vm2, %v3331_v27 }
 0xa55   : > { %3530 = vmatprep.mubr.bf16.mxu1 %v8506_v6 }
 0xa5c   : > { %4442 = vmatmul.mubr.msk.bf16.gmra.mrb[112].mxu1 %vm812_vm2, %v3333_v14 }
 0xa5d   : > { %3540 = vmatprep.mubr.bf16.mxu1 %v8506_v6 }
 0xa64   : > { %4443 = vmatmul.mubr.msk.bf16.gmra.mrb[116].mxu1 %vm812_vm2, %v3335_v63 }
 0xa65   : > { %3550 = vmatprep.mubr.bf16.mxu1 %v8506_v6 }
 0xa6c   : > { %4444 = vmatmul.mubr.msk.bf16.gmra.mrb[120].mxu1 %vm812_vm2, %v3337_v60 }
 0xa6d   : > { %3560 = vmatprep.mubr.bf16.mxu1 %v8506_v6 }
 0xa74   : > { %4445 = vmatmul.mubr.msk.bf16.gmra.mrb[124].mxu1 %vm812_vm2, %v3339_v10 }
 0xa75   : > { %3570 = vmatprep.mubr.bf16.mxu1 %v8506_v6 }
 0xa7c   : > { %4446 = vmatmul.mubr.msk.bf16.gmra.mrb[128].mxu1 %vm812_vm2, %v3341_v31 }
 0xa7d   : > { %3580 = vmatprep.mubr.bf16.mxu1 %v8506_v6 }
 0xa84   : > { %4447 = vmatmul.mubr.msk.bf16.gmra.mrb[132].mxu1 %vm812_vm2, %v3343_v18 }
 0xad7   : > { %v7475_v36 = vpop.f32.mrb[68].mxu1 }
 0xad8   : > { %8507 = vst [vmem:[#allocation35_spill] sm:$0xff] %v7475_v36  ;;  %v7477_v13 = vpop.f32.mrb[69].mxu1 }
 0xad9   : > { %8508 = vst [vmem:[#allocation43_spill] sm:$0xff] %v7477_v13  ;;  %v3303_v35 = vpop.f32.mrb[70].mxu1 }
 0xada   : > { %v3304_v24 = vpop.f32.mrb[71].mxu1 }
 0xadf   : > { %v7479_v20 = vpop.f32.mrb[72].mxu1 }
 0xae0   : > { %v7481_v5 = vpop.f32.mrb[73].mxu1 }
 0xae1   : > { %v3591_v33 = vmax.f32 %v7479_v20, %v7481_v5  ;;  %v7485_v62 = vpop.f32.mrb[74].mxu1 }
 0xae2   : > { %v7487_v45 = vpop.f32.mrb[75].mxu1 }
 0xae3   : > { %v3594_v30 = vmax.f32 %v7485_v62, %v7487_v45  ;;  %3592 = vmax.xlane.f32.xlu0 %v3591_v33 }
 0xae5   : > { %3595 = vmax.xlane.f32.xlu1 %v3594_v30 }
 0xae7   : > { %v7491_v59 = vpop.f32.mrb[76].mxu1 }
 0xae8   : > { %v7493_v55 = vpop.f32.mrb[77].mxu1 }
 0xae9   : > { %v3597_v39 = vmax.f32 %v7491_v59, %v7493_v55  ;;  %v7497_v40 = vpop.f32.mrb[78].mxu1 }
 0xaea   : > { %v7499_v26 = vpop.f32.mrb[79].mxu1 }
 0xaeb   : > { %v3600_v29 = vmax.f32 %v7497_v40, %v7499_v26  ;;  %3598 = vmax.xlane.f32.xlu0 %v3597_v39 }
 0xaef   : > { %3601 = vmax.xlane.f32.xlu0 %v3600_v29  ;;  %v7503_v12 = vpop.f32.mrb[80].mxu1 }
 0xaf0   : > { %v7505_v61 = vpop.f32.mrb[81].mxu1 }
 0xaf1   : > { %v3603_v51 = vmax.f32 %v7503_v12, %v7505_v61  ;;  %v7509_v1 = vpop.f32.mrb[82].mxu1 }
 0xaf2   : > { %v7511_v49 = vpop.f32.mrb[83].mxu1 }
 0xaf3   : > { %v3606_v50 = vmax.f32 %v7509_v1, %v7511_v49  ;;  %3604 = vmax.xlane.f32.xlu1 %v3603_v51 }
 0xaf5   : > { %3607 = vmax.xlane.f32.xlu0 %v3606_v50 }
 0xaf7   : > { %v7515_v47 = vpop.f32.mrb[84].mxu1 }
 0xaf8   : > { %v7517_v37 = vpop.f32.mrb[85].mxu1 }
 0xaf9   : > { %v3609_v25 = vmax.f32 %v7515_v47, %v7517_v37  ;;  %v7521_v32 = vpop.f32.mrb[86].mxu1 }
 0xafa   : > { %v7523_v0 = vpop.f32.mrb[87].mxu1 }
 0xafb   : > { %v3612_v22 = vmax.f32 %v7521_v32, %v7523_v0  ;;  %3610 = vmax.xlane.f32.xlu1 %v3609_v25 }
 0xafd   : > { %3613 = vmax.xlane.f32.xlu0 %v3612_v22 }
 0xaff   : > { %v7527_v38 = vpop.f32.mrb[88].mxu1 }
 0xb00   : > { %v7529_v8 = vpop.f32.mrb[89].mxu1 }
 0xb01   : > { %v3615_v44 = vmax.f32 %v7527_v38, %v7529_v8  ;;  %v7533_v21 = vpop.f32.mrb[90].mxu1 }
 0xb02   : > { %v7535_v43 = vpop.f32.mrb[91].mxu1 }
 0xb03   : > { %v3618_v48 = vmax.f32 %v7533_v21, %v7535_v43  ;;  %3616 = vmax.xlane.f32.xlu1 %v3615_v44 }
 0xb05   : > { %3619 = vmax.xlane.f32.xlu0 %v3618_v48 }
 0xb07   : > { %v7539_v23 = vpop.f32.mrb[92].mxu1 }
 0xb08   : > { %v7541_v11 = vpop.f32.mrb[93].mxu1 }
 0xb09   : > { %v3621_v41 = vmax.f32 %v7539_v23, %v7541_v11  ;;  %v7545_v15 = vpop.f32.mrb[94].mxu1 }
 0xb0a   : > { %v7547_v28 = vpop.f32.mrb[95].mxu1 }
 0xb0b   : > { %v3624_v3 = vmax.f32 %v7545_v15, %v7547_v28  ;;  %3622 = vmax.xlane.f32.xlu1 %v3621_v41 }
 0xb0d   : > { %3625 = vmax.xlane.f32.xlu0 %v3624_v3 }
 0xb0f   : > { %v7551_v2 = vpop.f32.mrb[96].mxu1 }
 0xb10   : > { %v7553_v9 = vpop.f32.mrb[97].mxu1 }
 0xb11   : > { %v3627_v42 = vmax.f32 %v7551_v2, %v7553_v9  ;;  %v7557_v34 = vpop.f32.mrb[98].mxu1 }
 0xb12   : > { %v7559_v52 = vpop.f32.mrb[99].mxu1 }
 0xb13   : > { %v3630_v46 = vmax.f32 %v7557_v34, %v7559_v52  ;;  %3628 = vmax.xlane.f32.xlu1 %v3627_v42 }
 0xb15   : > { %3631 = vmax.xlane.f32.xlu0 %v3630_v46 }
 0xb17   : > { %v7563_v17 = vpop.f32.mrb[100].mxu1 }
 0xb18   : > { %v7565_v19 = vpop.f32.mrb[101].mxu1 }
 0xb19   : > { %v3633_v56 = vmax.f32 %v7563_v17, %v7565_v19  ;;  %v7569_v4 = vpop.f32.mrb[102].mxu1 }
 0xb1a   : > { %v7571_v57 = vpop.f32.mrb[103].mxu1 }
 0xb1b   : > { %v3636_v53 = vmax.f32 %v7569_v4, %v7571_v57  ;;  %3634 = vmax.xlane.f32.xlu1 %v3633_v56 }
 0xb1d   : > { %3637 = vmax.xlane.f32.xlu0 %v3636_v53 }
 0xb1f   : > { %v7575_v58 = vpop.f32.mrb[104].mxu1 }
 0xb20   : > { %v7577_v16 = vpop.f32.mrb[105].mxu1 }
 0xb21   : > { %v3639_v54 = vmax.f32 %v7575_v58, %v7577_v16  ;;  %v7581_v7 = vpop.f32.mrb[106].mxu1 }
 0xb22   : > { %v7583_v27 = vpop.f32.mrb[107].mxu1 }
 0xb23   : > { %8509 = vst [vmem:[#allocation44_spill] sm:$0xff] %v7583_v27  ;;  %v3642_v14 = vmax.f32 %v7581_v7, %v7583_v27  ;;  %3640 = vmax.xlane.f32.xlu1 %v3639_v54 }
 0xb25   : > { %3643 = vmax.xlane.f32.xlu0 %v3642_v14 }
 0xb27   : > { %v7587_v63 = vpop.f32.mrb[108].mxu1 }
 0xb28   : > { %8510 = vst [vmem:[#allocation45_spill] sm:$0xff] %v7587_v63  ;;  %v7589_v60 = vpop.f32.mrb[109].mxu1 }
 0xb29   : > { %8511 = vst [vmem:[#allocation18_spill] sm:$0xff] %v7589_v60  ;;  %v3645_v10 = vmax.f32 %v7587_v63, %v7589_v60  ;;  %v7593_v31 = vpop.f32.mrb[110].mxu1 }
 0xb2a   : > { %8512 = vst [vmem:[#allocation6_spill] sm:$0xff] %v7593_v31  ;;  %v7595_v18 = vpop.f32.mrb[111].mxu1 }
 0xb2b   : > { %8513 = vst [vmem:[#allocation17_spill] sm:$0xff] %v7595_v18  ;;  %v3648_v35 = vmax.f32 %v7593_v31, %v7595_v18  ;;  %3646 = vmax.xlane.f32.xlu1 %v3645_v10 }
 0xb2d   : > { %3649 = vmax.xlane.f32.xlu0 %v3648_v35 }
 0xb2f   : > { %v7599_v24 = vpop.f32.mrb[112].mxu1 }
 0xb30   : > { %8514 = vst [vmem:[#allocation12_spill] sm:$0xff] %v7599_v24  ;;  %v7601_v33 = vpop.f32.mrb[113].mxu1 }
 0xb31   : > { %8515 = vst [vmem:[#allocation39_spill] sm:$0xff] %v7601_v33  ;;  %v3651_v30 = vmax.f32 %v7599_v24, %v7601_v33  ;;  %v7605_v39 = vpop.f32.mrb[114].mxu1 }
 0xb32   : > { %8516 = vst [vmem:[#allocation19_spill] sm:$0xff] %v7605_v39  ;;  %v7607_v29 = vpop.f32.mrb[115].mxu1 }
 0xb33   : > { %8517 = vst [vmem:[#allocation20_spill] sm:$0xff] %v7607_v29  ;;  %v3654_v51 = vmax.f32 %v7605_v39, %v7607_v29  ;;  %3652 = vmax.xlane.f32.xlu1 %v3651_v30 }
 0xb35   : > { %3655 = vmax.xlane.f32.xlu0 %v3654_v51 }
 0xb37   : > { %v7611_v50 = vpop.f32.mrb[116].mxu1 }
 0xb38   : > { %8518 = vst [vmem:[#allocation11_spill] sm:$0xff] %v7611_v50  ;;  %v7613_v25 = vpop.f32.mrb[117].mxu1 }
 0xb39   : > { %8519 = vst [vmem:[#allocation3_spill] sm:$0xff] %v7613_v25  ;;  %v3657_v22 = vmax.f32 %v7611_v50, %v7613_v25  ;;  %v7617_v44 = vpop.f32.mrb[118].mxu1 }
 0xb3a   : > { %8520 = vst [vmem:[#allocation21_spill] sm:$0xff] %v7617_v44  ;;  %v7619_v48 = vpop.f32.mrb[119].mxu1 }
 0xb3b   : > { %8521 = vst [vmem:[#allocation22_spill] sm:$0xff] %v7619_v48  ;;  %v3660_v41 = vmax.f32 %v7617_v44, %v7619_v48  ;;  %3658 = vmax.xlane.f32.xlu1 %v3657_v22 }
 0xb3d   : > { %3661 = vmax.xlane.f32.xlu0 %v3660_v41 }
 0xb3f   : > { %v7623_v3 = vpop.f32.mrb[120].mxu1 }
 0xb40   : > { %v7625_v42 = vpop.f32.mrb[121].mxu1 }
 0xb41   : > { %v7629_v56 = vpop.f32.mrb[122].mxu1 }
 0xb42   : > { %v7631_v53 = vpop.f32.mrb[123].mxu1 }
 0xb47   : > { %v7635_v14 = vpop.f32.mrb[124].mxu1 }
 0xb48   : > { %v7637_v10 = vpop.f32.mrb[125].mxu1 }
 0xb49   : > { %v7641_v30 = vpop.f32.mrb[126].mxu1 }
 0xb4a   : > { %v7643_v51 = vpop.f32.mrb[127].mxu1 }
 0xb4f   : > { %v7647_v41 = vpop.f32.mrb[128].mxu1 }
 0xb50   : > { %v7649_v46 = vpop.f32.mrb[129].mxu1 }
 0xb51   : > { %v7653_v13 = vpop.f32.mrb[130].mxu1 }
 0xb52   : > { %v7655_v36 = vpop.f32.mrb[131].mxu1 }
 0xb57   : > { %v7659_v6 = vpop.f32.mrb[132].mxu1 }
 0xb58   : > { %v7661_v48 = vpop.f32.mrb[133].mxu1 }
 0xb59   : > { %v7665_v44 = vpop.f32.mrb[134].mxu1 }
 0xb5a   : > { %v7667_v25 = vpop.f32.mrb[135].mxu1 }
 0xb70   : > { %v3593_v50 = vpop.xlane.xlu0 %3592 }
 0xb71   : > { %v3687_v29 = vsub.f32 %v7479_v20, %v3593_v50  ;;  %v3688_v39 = vsub.f32 %v7481_v5, %v3593_v50 }
 0xb72   : > { %v3596_v35 = vpop.xlane.xlu1 %3595 }
 0xb73   : > { %v3751_v33 = vmul.f32 1.442695, %v3687_v29  ;;  %v3753_v24 = vmul.f32 1.442695, %v3688_v39  ;;  %v3689_v18 = vsub.f32 %v7485_v62, %v3596_v35  ;;  %v3690_v31 = vsub.f32 %v7487_v45, %v3596_v35 }
 0xb75   : > { %5126 = vpow2.f32 %v3751_v33  ;;  %v3755_v22 = vmul.f32 1.442695, %v3689_v18  ;;  %v3757_v60 = vmul.f32 1.442695, %v3690_v31 }
 0xb76   : > { %5128 = vpow2.f32 %v3753_v24 }
 0xb77   : > { %5130 = vpow2.f32 %v3755_v22 }
 0xb78   : > { %5132 = vpow2.f32 %v3757_v60  ;;  %v3599_v63 = vpop.xlane.xlu0 %3598 }
 0xb79   : > { %v3691_v54 = vsub.f32 %v7491_v59, %v3599_v63  ;;  %v3692_v20 = vsub.f32 %v7493_v55, %v3599_v63 }
 0xb7b   : > { %v3759_v27 = vmul.f32 1.442695, %v3691_v54  ;;  %v3761_v5 = vmul.f32 1.442695, %v3692_v20 }
 0xb7c   : > { %v3602_v50 = vpop.xlane.xlu0 %3601 }
 0xb7d   : > { %5134 = vpow2.f32 %v3759_v27  ;;  %v3693_v39 = vsub.f32 %v7497_v40, %v3602_v50  ;;  %v3694_v62 = vsub.f32 %v7499_v26, %v3602_v50 }
 0xb7e   : > { %5136 = vpow2.f32 %v3761_v5  ;;  %v8522_v5 = vmax.f32 %v7623_v3, %v7625_v42 }
 0xb7f   : > { %v7679_v45 = vpop.eup %5126  ;;  %v3763_v31 = vmul.f32 1.442695, %v3693_v39  ;;  %v3765_v18 = vmul.f32 1.442695, %v3694_v62 }
 0xb80   : > { %v7681_v24 = vpop.eup %5128  ;;  %v3605_v60 = vpop.xlane.xlu1 %3604 }
 0xb81   : > { %v7683_v33 = vpop.eup %5130  ;;  %5138 = vpow2.f32 %v3763_v31  ;;  %v3695_v59 = vsub.f32 %v7503_v12, %v3605_v60  ;;  %v3696_v55 = vsub.f32 %v7505_v61, %v3605_v60  ;;  %v3879_v40 = vadd.f32 %v7681_v24, %v7679_v45 }
 0xb82   : > { %v7689_v27 = vpop.eup %5132  ;;  %5140 = vpow2.f32 %v3765_v18  ;;  %v3608_v26 = vpop.xlane.xlu0 %3607  ;;  %v8523_v31 = vmax.f32 %v7629_v56, %v7631_v53 }
 0xb83   : > { %v3767_v63 = vmul.f32 1.442695, %v3695_v59  ;;  %v3769_v29 = vmul.f32 1.442695, %v3696_v55  ;;  %3880 = vadd.xlane.f32.xlu1 %v3879_v40  ;;  %v3697_v54 = vsub.f32 %v7509_v1, %v3608_v26  ;;  %v3698_v35 = vsub.f32 %v7511_v49, %v3608_v26 }
 0xb84   : > { %v3882_v22 = vadd.f32 %v7689_v27, %v7683_v33 }
 0xb85   : > { %5142 = vpow2.f32 %v3767_v63  ;;  %v3771_v12 = vmul.f32 1.442695, %v3697_v54  ;;  %v3773_v61 = vmul.f32 1.442695, %v3698_v35  ;;  %v8524_v35 = vmax.f32 %v7635_v14, %v7637_v10 }
 0xb86   : > { %5144 = vpow2.f32 %v3769_v29  ;;  %3883 = vadd.xlane.f32.xlu0 %v3882_v22 }
 0xb87   : > { %v7695_v20 = vpop.eup %5134  ;;  %5146 = vpow2.f32 %v3771_v12  ;;  %3664 = vmax.xlane.f32.xlu1 %v8522_v5 }
 0xb88   : > { %v7700_v50 = vpop.eup %5136  ;;  %5148 = vpow2.f32 %v3773_v61  ;;  %v3611_v1 = vpop.xlane.xlu1 %3610 }
 0xb89   : > { %v3699_v49 = vsub.f32 %v7515_v47, %v3611_v1  ;;  %v3700_v39 = vsub.f32 %v7517_v37, %v3611_v1  ;;  %v3885_v62 = vadd.f32 %v7700_v50, %v7695_v20 }
 0xb8a   : > { %3667 = vmax.xlane.f32.xlu0 %v8523_v31  ;;  %v3614_v18 = vpop.xlane.xlu0 %3613  ;;  %v8525_v31 = vmax.f32 %v7641_v30, %v7643_v51 }
 0xb8b   : > { %v7709_v60 = vpop.eup %5138  ;;  %v3775_v59 = vmul.f32 1.442695, %v3699_v49  ;;  %v3777_v55 = vmul.f32 1.442695, %v3700_v39  ;;  %3886 = vadd.xlane.f32.xlu1 %v3885_v62  ;;  %v3701_v40 = vsub.f32 %v7521_v32, %v3614_v18  ;;  %v3702_v26 = vsub.f32 %v7523_v0, %v3614_v18 }
 0xb8c   : > { %v7713_v47 = vpop.eup %5140 }
 0xb8d   : > { %5150 = vpow2.f32 %v3775_v59  ;;  %v3779_v37 = vmul.f32 1.442695, %v3701_v40  ;;  %v3781_v63 = vmul.f32 1.442695, %v3702_v26  ;;  %v3888_v29 = vadd.f32 %v7713_v47, %v7709_v60 }
 0xb8e   : > { %5152 = vpow2.f32 %v3777_v55  ;;  %v8526_v26 = vmax.f32 %v7647_v41, %v7649_v46 }
 0xb8f   : > { %v7717_v54 = vpop.eup %5142  ;;  %5154 = vpow2.f32 %v3779_v37  ;;  %3670 = vmax.xlane.f32.xlu1 %v8524_v35  ;;  %3889 = vadd.xlane.f32.xlu0 %v3888_v29 }
 0xb90   : > { %v7722_v32 = vpop.eup %5144  ;;  %5156 = vpow2.f32 %v3781_v63  ;;  %v3617_v0 = vpop.xlane.xlu1 %3616 }
 0xb91   : > { %v7724_v22 = vpop.eup %5146  ;;  %v3703_v12 = vsub.f32 %v7527_v38, %v3617_v0  ;;  %v3704_v61 = vsub.f32 %v7529_v8, %v3617_v0  ;;  %v3891_v5 = vadd.f32 %v7722_v32, %v7717_v54 }
 0xb92   : > { %v7730_v1 = vpop.eup %5148  ;;  %v3620_v49 = vpop.xlane.xlu0 %3619 }
 0xb93   : > { %v3783_v39 = vmul.f32 1.442695, %v3703_v12  ;;  %v3785_v62 = vmul.f32 1.442695, %v3704_v61  ;;  %3892 = vadd.xlane.f32.xlu1 %v3891_v5  ;;  %3673 = vmax.xlane.f32.xlu0 %v8525_v31  ;;  %v3705_v18 = vsub.f32 %v7533_v21, %v3620_v49  ;;  %v3706_v59 = vsub.f32 %v7535_v43, %v3620_v49 }
 0xb94   : > { %v3894_v55 = vadd.f32 %v7730_v1, %v7724_v22  ;;  %v8527_v49 = vmax.f32 %v7653_v13, %v7655_v36 }
 0xb95   : > { %5158 = vpow2.f32 %v3783_v39  ;;  %v3787_v38 = vmul.f32 1.442695, %v3705_v18  ;;  %v3789_v8 = vmul.f32 1.442695, %v3706_v59  ;;  %v8528_v59 = vmax.f32 %v7659_v6, %v7661_v48 }
 0xb96   : > { %5160 = vpow2.f32 %v3785_v62 }
 0xb97   : > { %v7739_v40 = vpop.eup %5150  ;;  %5162 = vpow2.f32 %v3787_v38  ;;  %3676 = vmax.xlane.f32.xlu1 %v8526_v26  ;;  %3895 = vadd.xlane.f32.xlu0 %v3894_v55 }
 0xb98   : > { %v7744_v37 = vpop.eup %5152  ;;  %5164 = vpow2.f32 %v3789_v8  ;;  %v3623_v21 = vpop.xlane.xlu1 %3622 }
 0xb99   : > { %v7746_v43 = vpop.eup %5154  ;;  %v3707_v63 = vsub.f32 %v7539_v23, %v3623_v21  ;;  %v3708_v29 = vsub.f32 %v7541_v11, %v3623_v21  ;;  %v3897_v35 = vadd.f32 %v7744_v37, %v7739_v40 }
 0xb9a   : > { %v7752_v0 = vpop.eup %5156  ;;  %v3626_v12 = vpop.xlane.xlu0 %3625 }
 0xb9b   : > { %v3791_v61 = vmul.f32 1.442695, %v3707_v63  ;;  %v3793_v5 = vmul.f32 1.442695, %v3708_v29  ;;  %3898 = vadd.xlane.f32.xlu1 %v3897_v35  ;;  %3679 = vmax.xlane.f32.xlu0 %v8527_v49  ;;  %v3709_v39 = vsub.f32 %v7545_v15, %v3626_v12  ;;  %v3710_v62 = vsub.f32 %v7547_v28, %v3626_v12 }
 0xb9c   : > { %v3900_v31 = vadd.f32 %v7752_v0, %v7746_v43  ;;  %v8529_v12 = vmax.f32 %v7665_v44, %v7667_v25 }
 0xb9d   : > { %5166 = vpow2.f32 %v3791_v61  ;;  %v3795_v23 = vmul.f32 1.442695, %v3709_v39  ;;  %v3797_v11 = vmul.f32 1.442695, %v3710_v62 }
 0xb9e   : > { %5168 = vpow2.f32 %v3793_v5 }
 0xb9f   : > { %v7761_v18 = vpop.eup %5158  ;;  %5170 = vpow2.f32 %v3795_v23  ;;  %3682 = vmax.xlane.f32.xlu1 %v8528_v59  ;;  %3901 = vadd.xlane.f32.xlu0 %v3900_v31 }
 0xba0   : > { %v7766_v38 = vpop.eup %5160  ;;  %5172 = vpow2.f32 %v3797_v11  ;;  %v3629_v15 = vpop.xlane.xlu1 %3628 }
 0xba1   : > { %v7768_v28 = vpop.eup %5162  ;;  %v3711_v8 = vsub.f32 %v7551_v2, %v3629_v15  ;;  %v3712_v55 = vsub.f32 %v7553_v9, %v3629_v15  ;;  %v3903_v26 = vadd.f32 %v7766_v38, %v7761_v18 }
 0xba2   : > { %v7774_v21 = vpop.eup %5164  ;;  %v3632_v63 = vpop.xlane.xlu0 %3631 }
 0xba3   : > { %v3799_v29 = vmul.f32 1.442695, %v3711_v8  ;;  %v3801_v35 = vmul.f32 1.442695, %v3712_v55  ;;  %3904 = vadd.xlane.f32.xlu1 %v3903_v26  ;;  %3685 = vmax.xlane.f32.xlu0 %v8529_v12  ;;  %v3713_v61 = vsub.f32 %v7557_v34, %v3632_v63  ;;  %v3714_v5 = vsub.f32 %v7559_v52, %v3632_v63 }
 0xba4   : > { %v3906_v49 = vadd.f32 %v7774_v21, %v7768_v28 }
 0xba5   : > { %5174 = vpow2.f32 %v3799_v29  ;;  %v3803_v2 = vmul.f32 1.442695, %v3713_v61  ;;  %v3805_v9 = vmul.f32 1.442695, %v3714_v5 }
 0xba6   : > { %5176 = vpow2.f32 %v3801_v35 }
 0xba7   : > { %v7783_v39 = vpop.eup %5166  ;;  %5178 = vpow2.f32 %v3803_v2  ;;  %3907 = vadd.xlane.f32.xlu0 %v3906_v49 }
 0xba8   : > { %v7785_v62 = vpop.eup %5168  ;;  %5180 = vpow2.f32 %v3805_v9  ;;  %v3635_v23 = vpop.xlane.xlu1 %3634 }
 0xba9   : > { %v7787_v11 = vpop.eup %5170  ;;  %v3715_v34 = vsub.f32 %v7563_v17, %v3635_v23  ;;  %v3716_v52 = vsub.f32 %v7565_v19, %v3635_v23  ;;  %v3909_v31 = vadd.f32 %v7785_v62, %v7783_v39 }
 0xbaa   : > { %v7793_v59 = vpop.eup %5172  ;;  %v3638_v15 = vpop.xlane.xlu0 %3637 }
 0xbab   : > { %v3807_v8 = vmul.f32 1.442695, %v3715_v34  ;;  %v3809_v55 = vmul.f32 1.442695, %v3716_v52  ;;  %3910 = vadd.xlane.f32.xlu1 %v3909_v31  ;;  %v3717_v26 = vsub.f32 %v7569_v4, %v3638_v15  ;;  %v3718_v63 = vsub.f32 %v7571_v57, %v3638_v15  ;;  %v8530_v31 = vld [vmem:[#allocation44_spill] sm:$0xff] }
 0xbac   : > { %v3912_v29 = vadd.f32 %v7793_v59, %v7787_v11 }
 0xbad   : > { %5182 = vpow2.f32 %v3807_v8  ;;  %v3811_v17 = vmul.f32 1.442695, %v3717_v26  ;;  %v3813_v35 = vmul.f32 1.442695, %v3718_v63 }
 0xbae   : > { %5184 = vpow2.f32 %v3809_v55  ;;  %3913 = vadd.xlane.f32.xlu0 %v3912_v29 }
 0xbaf   : > { %v7799_v19 = vpop.eup %5174  ;;  %5186 = vpow2.f32 %v3811_v17 }
 0xbb0   : > { %v7801_v12 = vpop.eup %5176  ;;  %5188 = vpow2.f32 %v3813_v35  ;;  %v3641_v61 = vpop.xlane.xlu1 %3640  ;;  %v8534_v35 = vld [vmem:[#allocation18_spill] sm:$0xff] }
 0xbb1   : > { %v7803_v5 = vpop.eup %5178  ;;  %v3719_v4 = vsub.f32 %v7575_v58, %v3641_v61  ;;  %v3720_v57 = vsub.f32 %v7577_v16, %v3641_v61  ;;  %v3915_v2 = vadd.f32 %v7801_v12, %v7799_v19 }
 0xbb2   : > { %v7809_v9 = vpop.eup %5180  ;;  %v3644_v49 = vpop.xlane.xlu0 %3643 }
 0xbb3   : > { %v3815_v23 = vmul.f32 1.442695, %v3719_v4  ;;  %v3817_v34 = vmul.f32 1.442695, %v3720_v57  ;;  %3916 = vadd.xlane.f32.xlu1 %v3915_v2  ;;  %v3721_v52 = vsub.f32 %v7581_v7, %v3644_v49  ;;  %v3722_v15 = vsub.f32 %v8530_v31, %v3644_v49  ;;  %v8533_v7 = vld [vmem:[#allocation45_spill] sm:$0xff] }
 0xbb4   : > { %v3918_v8 = vadd.f32 %v7809_v9, %v7803_v5  ;;  %v8537_v31 = vld [vmem:[#allocation17_spill] sm:$0xff] }
 0xbb5   : > { %5190 = vpow2.f32 %v3815_v23  ;;  %v3819_v58 = vmul.f32 1.442695, %v3721_v52  ;;  %v3821_v55 = vmul.f32 1.442695, %v3722_v15 }
 0xbb6   : > { %5192 = vpow2.f32 %v3817_v34  ;;  %3919 = vadd.xlane.f32.xlu0 %v3918_v8  ;;  %v8536_v34 = vld [vmem:[#allocation6_spill] sm:$0xff] }
 0xbb7   : > { %v7815_v16 = vpop.eup %5182  ;;  %5194 = vpow2.f32 %v3819_v58 }
 0xbb8   : > { %8531 = vst [vmem:[#allocation9_spill] sm:$0xff] %v7815_v16  ;;  %v7817_v26 = vpop.eup %5184  ;;  %5196 = vpow2.f32 %v3821_v55  ;;  %v3647_v63 = vpop.xlane.xlu1 %3646 }
 0xbb9   : > { %v7819_v29 = vpop.eup %5186  ;;  %v3723_v17 = vsub.f32 %v8533_v7, %v3647_v63  ;;  %v3724_v61 = vsub.f32 %v8534_v35, %v3647_v63  ;;  %v3921_v4 = vadd.f32 %v7817_v26, %v7815_v16  ;;  %v8545_v16 = vld [vmem:[#allocation20_spill] sm:$0xff] }
 0xbba   : > { %8532 = vst [vmem:[#allocation5_spill] sm:$0xff] %v7819_v29  ;;  %v7825_v57 = vpop.eup %5188  ;;  %v3650_v2 = vpop.xlane.xlu0 %3649 }
 0xbbb   : > { %8535 = vst [vmem:[#allocation23_spill] sm:$0xff] %v7825_v57  ;;  %v3823_v49 = vmul.f32 1.442695, %v3723_v17  ;;  %v3825_v23 = vmul.f32 1.442695, %v3724_v61  ;;  %3922 = vadd.xlane.f32.xlu1 %v3921_v4  ;;  %v3725_v52 = vsub.f32 %v8536_v34, %v3650_v2  ;;  %v3726_v15 = vsub.f32 %v8537_v31, %v3650_v2  ;;  %v8541_v61 = vld [vmem:[#allocation12_spill] sm:$0xff] }
 0xbbc   : > { %v3924_v8 = vadd.f32 %v7825_v57, %v7819_v29  ;;  %v8542_v2 = vld [vmem:[#allocation39_spill] sm:$0xff] }
 0xbbd   : > { %5198 = vpow2.f32 %v3823_v49  ;;  %v3827_v58 = vmul.f32 1.442695, %v3725_v52  ;;  %v3829_v55 = vmul.f32 1.442695, %v3726_v15 }
 0xbbe   : > { %5200 = vpow2.f32 %v3825_v23  ;;  %3925 = vadd.xlane.f32.xlu0 %v3924_v8  ;;  %v8544_v8 = vld [vmem:[#allocation19_spill] sm:$0xff] }
 0xbbf   : > { %v7831_v63 = vpop.eup %5190  ;;  %5202 = vpow2.f32 %v3827_v58 }
 0xbc0   : > { %8538 = vst [vmem:[#allocation24_spill] sm:$0xff] %v7831_v63  ;;  %v7833_v7 = vpop.eup %5192  ;;  %5204 = vpow2.f32 %v3829_v55  ;;  %v3653_v17 = vpop.xlane.xlu1 %3652 }
 0xbc1   : > { %8539 = vst [vmem:[#allocation25_spill] sm:$0xff] %v7833_v7  ;;  %v7835_v35 = vpop.eup %5194  ;;  %v3727_v4 = vsub.f32 %v8541_v61, %v3653_v17  ;;  %v3728_v34 = vsub.f32 %v8542_v2, %v3653_v17  ;;  %v3927_v49 = vadd.f32 %v7833_v7, %v7831_v63 }
 0xbc2   : > { %8540 = vst [vmem:[#allocation26_spill] sm:$0xff] %v7835_v35  ;;  %v7841_v52 = vpop.eup %5196  ;;  %v3656_v23 = vpop.xlane.xlu0 %3655 }
 0xbc3   : > { %8543 = vst [vmem:[#allocation27_spill] sm:$0xff] %v7841_v52  ;;  %v3831_v31 = vmul.f32 1.442695, %v3727_v4  ;;  %v3833_v15 = vmul.f32 1.442695, %v3728_v34  ;;  %3928 = vadd.xlane.f32.xlu1 %v3927_v49  ;;  %v3729_v58 = vsub.f32 %v8544_v8, %v3656_v23  ;;  %v3730_v55 = vsub.f32 %v8545_v16, %v3656_v23  ;;  %v8546_v49 = vld [vmem:[#allocation11_spill] sm:$0xff] }
 0xbc4   : > { %v3930_v29 = vadd.f32 %v7841_v52, %v7835_v35  ;;  %v8547_v16 = vld [vmem:[#allocation3_spill] sm:$0xff]  ;;  %v8549_v35 = vld [vmem:[#allocation22_spill] sm:$0xff] }
 0xbc5   : > { %5206 = vpow2.f32 %v3831_v31  ;;  %v3835_v61 = vmul.f32 1.442695, %v3729_v58  ;;  %v3837_v57 = vmul.f32 1.442695, %v3730_v55 }
 0xbc6   : > { %5208 = vpow2.f32 %v3833_v15  ;;  %3931 = vadd.xlane.f32.xlu0 %v3930_v29 }
 0xbc7   : > { %v7847_v17 = vpop.eup %5198  ;;  %5210 = vpow2.f32 %v3835_v61  ;;  %v8548_v61 = vld [vmem:[#allocation21_spill] sm:$0xff] }
 0xbc8   : > { %v7849_v2 = vpop.eup %5200  ;;  %5212 = vpow2.f32 %v3837_v57  ;;  %v3659_v4 = vpop.xlane.xlu1 %3658 }
 0xbc9   : > { %v7851_v34 = vpop.eup %5202  ;;  %v3731_v8 = vsub.f32 %v8546_v49, %v3659_v4  ;;  %v3732_v23 = vsub.f32 %v8547_v16, %v3659_v4  ;;  %v3933_v31 = vadd.f32 %v7849_v2, %v7847_v17 }
 0xbca   : > { %v7857_v58 = vpop.eup %5204  ;;  %v3662_v15 = vpop.xlane.xlu0 %3661 }
 0xbcb   : > { %v3839_v29 = vmul.f32 1.442695, %v3731_v8  ;;  %v3841_v55 = vmul.f32 1.442695, %v3732_v23  ;;  %3934 = vadd.xlane.f32.xlu1 %v3933_v31  ;;  %v3733_v63 = vsub.f32 %v8548_v61, %v3662_v15  ;;  %v3734_v57 = vsub.f32 %v8549_v35, %v3662_v15 }
 0xbcc   : > { %v3936_v52 = vadd.f32 %v7857_v58, %v7851_v34 }
 0xbcd   : > { %5214 = vpow2.f32 %v3839_v29  ;;  %v3843_v49 = vmul.f32 1.442695, %v3733_v63  ;;  %v3845_v7 = vmul.f32 1.442695, %v3734_v57 }
 0xbce   : > { %5216 = vpow2.f32 %v3841_v55  ;;  %3937 = vadd.xlane.f32.xlu0 %v3936_v52 }
 0xbcf   : > { %v7863_v4 = vpop.eup %5206  ;;  %5218 = vpow2.f32 %v3843_v49 }
 0xbd0   : > { %8550 = vst [vmem:[#allocation28_spill] sm:$0xff] %v7863_v4  ;;  %v7865_v16 = vpop.eup %5208  ;;  %5220 = vpow2.f32 %v3845_v7 }
 0xbd1   : > { %v7867_v8 = vpop.eup %5210  ;;  %v3939_v23 = vadd.f32 %v7865_v16, %v7863_v4 }
 0xbd2   : > { %8551 = vst [vmem:[#allocation37_spill] sm:$0xff] %v7867_v8  ;;  %v7871_v35 = vpop.eup %5212 }
 0xbd3   : > { %8552 = vst [vmem:[#allocation29_spill] sm:$0xff] %v7871_v35  ;;  %3940 = vadd.xlane.f32.xlu1 %v3939_v23  ;;  %v3942_v63 = vadd.f32 %v7871_v35, %v7867_v8 }
 0xbd5   : > { %3943 = vadd.xlane.f32.xlu0 %v3942_v63 }
 0xbd7   : > { %v7875_v31 = vpop.eup %5214 }
 0xbd8   : > { %8553 = vst [vmem:[#allocation30_spill] sm:$0xff] %v7875_v31  ;;  %v7877_v52 = vpop.eup %5216 }
 0xbd9   : > { %8554 = vst [vmem:[#allocation36_spill] sm:$0xff] %v7877_v52  ;;  %v7879_v15 = vpop.eup %5218  ;;  %v3945_v7 = vadd.f32 %v7877_v52, %v7875_v31 }
 0xbda   : > { %8555 = vst [vmem:[#allocation4_spill] sm:$0xff] %v7879_v15  ;;  %v7883_v29 = vpop.eup %5220 }
 0xbdb   : > { %8556 = vst [vmem:[#allocation31_spill] sm:$0xff] %v7883_v29  ;;  %3946 = vadd.xlane.f32.xlu1 %v3945_v7  ;;  %v3948_v55 = vadd.f32 %v7883_v29, %v7879_v15 }
 0xbdd   : > { %3949 = vadd.xlane.f32.xlu0 %v3948_v55 }
 0xc10   : > { %v3881_v61 = vpop.xlane.xlu1 %3880 }
 0xc11   : > { %5222 = vrcp.f32 %v3881_v61 }
 0xc13   : > { %v3884_v57 = vpop.xlane.xlu0 %3883 }
 0xc14   : > { %5224 = vrcp.f32 %v3884_v57  ;;  %v3665_v49 = vpop.xlane.xlu1 %3664 }
 0xc15   : > { %v3735_v23 = vsub.f32 %v7623_v3, %v3665_v49  ;;  %v3736_v63 = vsub.f32 %v7625_v42, %v3665_v49 }
 0xc17   : > { %v3847_v4 = vmul.f32 1.442695, %v3735_v23  ;;  %v3849_v8 = vmul.f32 1.442695, %v3736_v63  ;;  %v3668_v35 = vpop.xlane.xlu0 %3667 }
 0xc18   : > { %v3737_v31 = vsub.f32 %v7629_v56, %v3668_v35  ;;  %v3738_v7 = vsub.f32 %v7631_v53, %v3668_v35  ;;  %v3887_v52 = vpop.xlane.xlu1 %3886 }
 0xc19   : > { %5226 = vpow2.f32 %v3847_v4 }
 0xc1a   : > { %5228 = vpow2.f32 %v3849_v8  ;;  %v3851_v55 = vmul.f32 1.442695, %v3737_v31  ;;  %v3853_v15 = vmul.f32 1.442695, %v3738_v7 }
 0xc1b   : > { %v5223_v61 = vpop.eup %5222  ;;  %5230 = vrcp.f32 %v3887_v52 }
 0xc1c   : > { %5232 = vpow2.f32 %v3851_v55  ;;  %v3671_v57 = vpop.xlane.xlu1 %3670  ;;  %v3890_v29 = vpop.xlane.xlu0 %3889  ;;  %v4008_v56 = vmul.f32 %v5223_v61, %v7681_v24  ;;  %v4007_v23 = vmul.f32 %v5223_v61, %v7679_v45 }
 0xc1d   : > { %5234 = vpow2.f32 %v3853_v15  ;;  %v3739_v3 = vsub.f32 %v7635_v14, %v3671_v57  ;;  %v3740_v42 = vsub.f32 %v7637_v10, %v3671_v57 }
 0xc1e   : > { %v5225_v49 = vpop.eup %5224  ;;  %5236 = vrcp.f32 %v3890_v29 }
 0xc1f   : > { %v3855_v53 = vmul.f32 1.442695, %v3739_v3  ;;  %v3857_v35 = vmul.f32 1.442695, %v3740_v42  ;;  %v4010_v4 = vmul.f32 %v5225_v49, %v7689_v27  ;;  %v4009_v8 = vmul.f32 %v5225_v49, %v7683_v33 }
 0xc20   : > { %v3893_v31 = vpop.xlane.xlu1 %3892  ;;  %v3674_v52 = vpop.xlane.xlu0 %3673 }
 0xc21   : > { %5238 = vpow2.f32 %v3855_v53  ;;  %v3741_v15 = vsub.f32 %v7641_v30, %v3674_v52  ;;  %v3742_v14 = vsub.f32 %v7643_v51, %v3674_v52  ;;  %v4072_v10 = vpack.c.bf16 %v4010_v4, %v4008_v56 }
 0xc22   : > { %5240 = vpow2.f32 %v3857_v35  ;;  %v4071_v29 = vpack.c.bf16 %v4009_v8, %v4007_v23 }
 0xc23   : > { %v7899_v63 = vpop.eup %5226  ;;  %5242 = vrcp.f32 %v3893_v31  ;;  %v3859_v24 = vmul.f32 1.442695, %v3741_v15  ;;  %v3861_v7 = vmul.f32 1.442695, %v3742_v14  ;;  %4103 = vmatprep.subr.bf16.mxu0 %v4072_v10 }
 0xc24   : > { %v7901_v27 = vpop.eup %5228  ;;  %4104 = vmatpush1.bf16.xpose.msra.mxu0 %v4071_v29  ;;  %v3677_v33 = vpop.xlane.xlu1 %3676 }
 0xc25   : > { %v3896_v55 = vpop.xlane.xlu0 %3895  ;;  %v5231_v45 = vpop.eup %5230  ;;  %5244 = vpow2.f32 %v3859_v24  ;;  %v3743_v30 = vsub.f32 %v7647_v41, %v3677_v33  ;;  %v3744_v51 = vsub.f32 %v7649_v46, %v3677_v33  ;;  %v3951_v61 = vadd.f32 %v7901_v27, %v7899_v63 }
 0xc26   : > { %v7907_v57 = vpop.eup %5232  ;;  %5246 = vpow2.f32 %v3861_v7  ;;  %v4012_v46 = vmul.f32 %v5231_v45, %v7700_v50  ;;  %v4011_v52 = vmul.f32 %v5231_v45, %v7695_v20 }
 0xc27   : > { %v7909_v3 = vpop.eup %5234  ;;  %v3863_v42 = vmul.f32 1.442695, %v3743_v30  ;;  %v3865_v49 = vmul.f32 1.442695, %v3744_v51  ;;  %5248 = vrcp.f32 %v3896_v55  ;;  %3952 = vadd.xlane.f32.xlu1 %v3951_v61 }
 0xc28   : > { %v5237_v56 = vpop.eup %5236  ;;  %v3899_v53 = vpop.xlane.xlu1 %3898  ;;  %v3954_v35 = vadd.f32 %v7909_v3, %v7907_v57 }
 0xc29   : > { %v3680_v41 = vpop.xlane.xlu0 %3679  ;;  %5250 = vpow2.f32 %v3863_v42  ;;  %v4014_v31 = vmul.f32 %v5237_v56, %v7713_v47  ;;  %v4013_v23 = vmul.f32 %v5237_v56, %v7709_v60 }
 0xc2a   : > { %v3745_v4 = vsub.f32 %v7653_v13, %v3680_v41  ;;  %v3746_v8 = vsub.f32 %v7655_v36, %v3680_v41  ;;  %5252 = vpow2.f32 %v3865_v49  ;;  %3955 = vadd.xlane.f32.xlu0 %v3954_v35 }
 0xc2b   : > { %v7919_v15 = vpop.eup %5238  ;;  %v4074_v29 = vpack.c.bf16 %v4014_v31, %v4012_v46  ;;  %5254 = vrcp.f32 %v3899_v53  ;;  %v4073_v7 = vpack.c.bf16 %v4013_v23, %v4011_v52 }
 0xc2c   : > { %v3867_v14 = vmul.f32 1.442695, %v3745_v4  ;;  %v3869_v10 = vmul.f32 1.442695, %v3746_v8  ;;  %v7921_v24 = vpop.eup %5240  ;;  %v3683_v50 = vpop.xlane.xlu1 %3682 }
 0xc2d   : > { %v3902_v13 = vpop.xlane.xlu0 %3901  ;;  %v5243_v36 = vpop.eup %5242  ;;  %v3747_v47 = vsub.f32 %v7659_v6, %v3683_v50  ;;  %v3748_v33 = vsub.f32 %v7661_v48, %v3683_v50  ;;  %4105 = vmatprep.subr.bf16.mxu0 %v4074_v29  ;;  %v3957_v20 = vadd.f32 %v7921_v24, %v7919_v15 }
 0xc2e   : > { %5256 = vpow2.f32 %v3867_v14  ;;  %4106 = vmatpush1.bf16.xpose.msra.mxu0 %v4073_v7  ;;  %v4016_v61 = vmul.f32 %v5243_v36, %v7722_v32  ;;  %v4015_v35 = vmul.f32 %v5243_v36, %v7717_v54 }
 0xc2f   : > { %5258 = vpow2.f32 %v3869_v10  ;;  %v7927_v60 = vpop.eup %5244  ;;  %v3871_v55 = vmul.f32 1.442695, %v3747_v47  ;;  %v3873_v45 = vmul.f32 1.442695, %v3748_v33  ;;  %3958 = vadd.xlane.f32.xlu1 %v3957_v20 }
 0xc30   : > { %5260 = vrcp.f32 %v3902_v13  ;;  %v7929_v30 = vpop.eup %5246  ;;  %v3905_v48 = vpop.xlane.xlu1 %3904 }
 0xc31   : > { %v3686_v51 = vpop.xlane.xlu0 %3685  ;;  %v5249_v6 = vpop.eup %5248  ;;  %5262 = vpow2.f32 %v3871_v55  ;;  %v3960_v56 = vadd.f32 %v7929_v30, %v7927_v60 }
 0xc32   : > { %v3749_v42 = vsub.f32 %v7665_v44, %v3686_v51  ;;  %v3750_v49 = vsub.f32 %v7667_v25, %v3686_v51  ;;  %5264 = vpow2.f32 %v3873_v45  ;;  %v4018_v53 = vmul.f32 %v5249_v6, %v7730_v1 }
 0xc33   : > { %v4017_v41 = vmul.f32 %v5249_v6, %v7724_v22  ;;  %v7939_v46 = vpop.eup %5250  ;;  %3961 = vadd.xlane.f32.xlu0 %v3960_v56  ;;  %5266 = vrcp.f32 %v3905_v48 }
 0xc34   : > { %v3875_v32 = vmul.f32 1.442695, %v3749_v42  ;;  %v3877_v4 = vmul.f32 1.442695, %v3750_v49  ;;  %v7941_v8 = vpop.eup %5252  ;;  %v4076_v44 = vpack.c.bf16 %v4018_v53, %v4016_v61 }
 0xc35   : > { %v3908_v25 = vpop.xlane.xlu0 %3907  ;;  %v4075_v31 = vpack.c.bf16 %v4017_v41, %v4015_v35  ;;  %v3963_v52 = vadd.f32 %v7941_v8, %v7939_v46  ;;  %v5255_v1 = vpop.eup %5254 }
 0xc36   : > { %5268 = vpow2.f32 %v3875_v32  ;;  %4107 = vmatprep.subr.bf16.mxu0 %v4076_v44  ;;  %v4020_v29 = vmul.f32 %v5255_v1, %v7744_v37  ;;  %v4019_v13 = vmul.f32 %v5255_v1, %v7739_v40  ;;  %v377_v1 = vld [vmem:[%s8069_s5 + $0x38] sm:$0xff] }
 0xc37   : > { %5270 = vpow2.f32 %v3877_v4  ;;  %4108 = vmatpush1.bf16.xpose.msra.mxu0 %v4075_v31  ;;  %3964 = vadd.xlane.f32.xlu1 %v3963_v52 }
 0xc38   : > { %v7945_v54 = vpop.eup %5256  ;;  %5272 = vrcp.f32 %v3908_v25  ;;  %v3911_v23 = vpop.xlane.xlu1 %3910 }
 0xc39   : > { %v7947_v22 = vpop.eup %5258  ;;  %5274 = vrcp.f32 %v3911_v23 }
 0xc3a   : > { %v5261_v14 = vpop.eup %5260  ;;  %v3966_v10 = vadd.f32 %v7947_v22, %v7945_v54 }
 0xc3b   : > { %v4022_v50 = vmul.f32 %v5261_v14, %v7752_v0  ;;  %v4021_v7 = vmul.f32 %v5261_v14, %v7746_v43  ;;  %v7955_v36 = vpop.eup %5262  ;;  %v3914_v47 = vpop.xlane.xlu0 %3913 }
 0xc3c   : > { %3967 = vadd.xlane.f32.xlu0 %v3966_v10  ;;  %v7957_v33 = vpop.eup %5264  ;;  %5276 = vrcp.f32 %v3914_v47  ;;  %v4162_v47 = vld [vmem:[%s8071_s7] sm:$0xff] }
 0xc3d   : > { %v4078_v20 = vpack.c.bf16 %v4022_v50, %v4020_v29  ;;  %v4077_v55 = vpack.c.bf16 %v4021_v7, %v4019_v13  ;;  %v3969_v45 = vadd.f32 %v7957_v33, %v7955_v36  ;;  %v5267_v37 = vpop.eup %5266 }
 0xc3e   : > { %v4024_v6 = vmul.f32 %v5267_v37, %v7766_v38  ;;  %v4023_v42 = vmul.f32 %v5267_v37, %v7761_v18  ;;  %v8558_v37 = vld [vmem:[#allocation5_spill] sm:$0xff] }
 0xc3f   : > { %4109 = vmatprep.subr.bf16.mxu0 %v4078_v20  ;;  %3970 = vadd.xlane.f32.xlu1 %v3969_v45  ;;  %v8557_v20 = vld [vmem:[#allocation23_spill] sm:$0xff] }
 0xc40   : > { %v7961_v51 = vpop.eup %5268  ;;  %4110 = vmatpush1.bf16.xpose.msra.mxu0 %v4077_v55  ;;  %v3917_v43 = vpop.xlane.xlu1 %3916 }
 0xc41   : > { %v7963_v40 = vpop.eup %5270  ;;  %5278 = vrcp.f32 %v3917_v43 }
 0xc42   : > { %v5273_v0 = vpop.eup %5272  ;;  %v3972_v61 = vadd.f32 %v7963_v40, %v7961_v51 }
 0xc43   : > { %v4026_v48 = vmul.f32 %v5273_v0, %v7774_v21  ;;  %v4025_v49 = vmul.f32 %v5273_v0, %v7768_v28  ;;  %v3920_v56 = vpop.xlane.xlu0 %3919  ;;  %v5275_v53 = vpop.eup %5274  ;;  %v4165_v0 = vld [vmem:[%s8071_s7 + $0x18] sm:$0xff] }
 0xc44   : > { %3973 = vadd.xlane.f32.xlu0 %v3972_v61  ;;  %5280 = vrcp.f32 %v3920_v56  ;;  %v4028_v4 = vmul.f32 %v5275_v53, %v7785_v62  ;;  %v4027_v28 = vmul.f32 %v5275_v53, %v7783_v39  ;;  %v4163_v39 = vld [vmem:[%s8071_s7 + $0x8] sm:$0xff]  ;;  %v8560_v56 = vld [vmem:[#allocation25_spill] sm:$0xff] }
 0xc45   : > { %v4080_v35 = vpack.c.bf16 %v4026_v48, %v4024_v6  ;;  %v4079_v41 = vpack.c.bf16 %v4025_v49, %v4023_v42  ;;  %v8559_v6 = vld [vmem:[#allocation9_spill] sm:$0xff] }
 0xc46   : > { %v5277_v32 = vpop.eup %5276 }
 0xc47   : > { %4111 = vmatprep.subr.bf16.mxu0 %v4080_v35  ;;  %v4030_v38 = vmul.f32 %v5277_v32, %v7793_v59  ;;  %v4029_v21 = vmul.f32 %v5277_v32, %v7787_v11  ;;  %v8561_v35 = vld [vmem:[#allocation27_spill] sm:$0xff] }
 0xc48   : > { %4112 = vmatpush1.bf16.xpose.msra.mxu0 %v4079_v41  ;;  %v3923_v44 = vpop.xlane.xlu1 %3922 }
 0xc49   : > { %v4082_v25 = vpack.c.bf16 %v4030_v38, %v4028_v4  ;;  %5282 = vrcp.f32 %v3923_v44  ;;  %v4081_v52 = vpack.c.bf16 %v4029_v21, %v4027_v28  ;;  %v8562_v38 = vld [vmem:[#allocation26_spill] sm:$0xff]  ;;  %v8563_v21 = vld [vmem:[#allocation24_spill] sm:$0xff] }
 0xc4b   : > { %4113 = vmatprep.subr.bf16.mxu0 %v4082_v25  ;;  %v3926_v18 = vpop.xlane.xlu0 %3925  ;;  %v5279_v31 = vpop.eup %5278 }
 0xc4c   : > { %5284 = vrcp.f32 %v3926_v18  ;;  %v4032_v62 = vmul.f32 %v5279_v31, %v7801_v12  ;;  %v4031_v50 = vmul.f32 %v5279_v31, %v7799_v19 }
 0xc4e   : > { %v5281_v23 = vpop.eup %5280 }
 0xc4f   : > { %v4034_v59 = vmul.f32 %v5281_v23, %v7809_v9  ;;  %v4033_v10 = vmul.f32 %v5281_v23, %v7803_v5  ;;  %v4164_v9 = vld [vmem:[%s8071_s7 + $0x10] sm:$0xff] }
 0xc50   : > { %4114 = vmatpush1.bf16.xpose.msra.mxu0 %v4081_v52  ;;  %415 = vperm.xlu1 %4541, %v377_v1   ;;  %v3929_v11 = vpop.xlane.xlu1 %3928 }
 0xc51   : > { %v4084_v14 = vpack.c.bf16 %v4034_v59, %v4032_v62  ;;  %5286 = vrcp.f32 %v3929_v11  ;;  %v4083_v12 = vpack.c.bf16 %v4033_v10, %v4031_v50 }
 0xc53   : > { %4115 = vmatprep.subr.bf16.mxu0 %v4084_v14  ;;  %v3932_v29 = vpop.xlane.xlu0 %3931  ;;  %v5283_v13 = vpop.eup %5282 }
 0xc54   : > { %5288 = vrcp.f32 %v3932_v29  ;;  %4173 = vperm.xlu1 %4541, %v4163_v39   ;;  %v4036_v5 = vmul.f32 %v5283_v13, %v7817_v26  ;;  %v4035_v48 = vmul.f32 %v5283_v13, %v8559_v6 }
 0xc56   : > { %v5285_v7 = vpop.eup %5284 }
 0xc57   : > { %v4038_v55 = vmul.f32 %v5285_v7, %v8557_v20  ;;  %v4037_v43 = vmul.f32 %v5285_v7, %v8558_v37  ;;  %v8568_v37 = vld [vmem:[#allocation31_spill] sm:$0xff] }
 0xc58   : > { %4116 = vmatpush1.bf16.xpose.msra.mxu0 %v4083_v12  ;;  %4178 = vperm.xlu1 %4541, %v4164_v9   ;;  %v3935_v19 = vpop.xlane.xlu1 %3934  ;;  %v8564_v12 = vld [vmem:[#allocation29_spill] sm:$0xff] }
 0xc59   : > { %v4086_v45 = vpack.c.bf16 %v4038_v55, %v4036_v5  ;;  %5290 = vrcp.f32 %v3935_v19  ;;  %v4085_v26 = vpack.c.bf16 %v4037_v43, %v4035_v48  ;;  %v8566_v5 = vld [vmem:[#allocation28_spill] sm:$0xff] }
 0xc5a   : > { %4168 = vperm.xlu0 %4540, %v4162_v47   ;;  %v8567_v19 = vld [vmem:[#allocation36_spill] sm:$0xff] }
 0xc5b   : > { %4117 = vmatprep.subr.bf16.mxu0 %v4086_v45  ;;  %v3938_v61 = vpop.xlane.xlu0 %3937  ;;  %v5287_v42 = vpop.eup %5286 }
 0xc5c   : > { %5292 = vrcp.f32 %v3938_v61  ;;  %v4040_v53 = vmul.f32 %v5287_v42, %v8560_v56  ;;  %v4039_v18 = vmul.f32 %v5287_v42, %v8563_v21  ;;  %v8570_v61 = vld [vmem:[#allocation30_spill] sm:$0xff] }
 0xc5e   : > { %4183 = vperm.xlu0 %4540, %v4165_v0   ;;  %v5289_v49 = vpop.eup %5288  ;;  %v8569_v0 = vld [vmem:[#allocation4_spill] sm:$0xff] }
 0xc5f   : > { %v4042_v41 = vmul.f32 %v5289_v49, %v8561_v35  ;;  %v4041_v44 = vmul.f32 %v5289_v49, %v8562_v38 }
 0xc60   : > { %4118 = vmatpush1.bf16.xpose.msra.mxu0 %v4085_v26  ;;  %v3941_v32 = vpop.xlane.xlu1 %3940 }
 0xc61   : > { %5294 = vrcp.f32 %v3941_v32  ;;  %v4088_v4 = vpack.c.bf16 %v4042_v41, %v4040_v53  ;;  %v4087_v31 = vpack.c.bf16 %v4041_v44, %v4039_v18 }
 0xc62   : > { %v3944_v25 = vpop.xlane.xlu0 %3943 }
 0xc63   : > { %4119 = vmatprep.subr.bf16.mxu0 %v4088_v4  ;;  %5296 = vrcp.f32 %v3944_v25  ;;  %v5291_v28 = vpop.eup %5290 }
 0xc64   : > { %v4044_v1 = vmul.f32 %v5291_v28, %v7849_v2  ;;  %v4043_v10 = vmul.f32 %v5291_v28, %v7847_v17 }
 0xc66   : > { %v5293_v52 = vpop.eup %5292 }
 0xc67   : > { %v4046_v23 = vmul.f32 %v5293_v52, %v7857_v58  ;;  %v4045_v11 = vmul.f32 %v5293_v52, %v7851_v34  ;;  %v8565_v58 = vld [vmem:[#allocation37_spill] sm:$0xff] }
 0xc68   : > { %4120 = vmatpush1.bf16.xpose.msra.mxu0 %v4087_v31  ;;  %v3947_v62 = vpop.xlane.xlu1 %3946 }
 0xc69   : > { %5298 = vrcp.f32 %v3947_v62  ;;  %v4090_v59 = vpack.c.bf16 %v4046_v23, %v4044_v1  ;;  %v4089_v50 = vpack.c.bf16 %v4045_v11, %v4043_v10 }
 0xc6a   : > { %v3950_v14 = vpop.xlane.xlu0 %3949 }
 0xc6b   : > { %v5295_v39 = vpop.eup %5294  ;;  %4121 = vmatprep.subr.bf16.mxu0 %v4090_v59  ;;  %5300 = vrcp.f32 %v3950_v14  ;;  %v8571_v14 = vld [vmem:[#allocation16_spill] sm:$0xff] }
 0xc6c   : > { %v4048_v13 = vmul.f32 %v5295_v39, %v7865_v16  ;;  %v4047_v34 = vmul.f32 %v5295_v39, %v8566_v5  ;;  %v8573_v5 = vld [vmem:[#allocation10_spill] sm:$0xff] }
 0xc6d   : > { %v5297_v29 = vpop.eup %5296 }
 0xc6e   : > { %v4050_v9 = vmul.f32 %v5297_v29, %v8564_v12  ;;  %v4049_v7 = vmul.f32 %v5297_v29, %v8565_v58 }
 0xc70   : > { %4122 = vmatpush1.bf16.xpose.msra.mxu0 %v4089_v50  ;;  %v4092_v2 = vpack.c.bf16 %v4050_v9, %v4048_v13  ;;  %v4091_v55 = vpack.c.bf16 %v4049_v7, %v4047_v34  ;;  %v8574_v34 = vld [vmem:[#allocation46_spill] sm:$0xff] }
 0xc72   : > { %4123 = vmatprep.subr.bf16.mxu0 %v4092_v2 }
 0xc73   : > { %v5299_v47 = vpop.eup %5298 }
 0xc74   : > { %v4052_v45 = vmul.f32 %v5299_v47, %v8567_v19  ;;  %v4051_v6 = vmul.f32 %v5299_v47, %v8570_v61  ;;  %v8576_v19 = vld [vmem:[#allocation42_spill] sm:$0xff] }
 0xc75   : > { %v5301_v20 = vpop.eup %5300 }
 0xc76   : > { %v4054_v17 = vmul.f32 %v5301_v20, %v8568_v37  ;;  %v4053_v16 = vmul.f32 %v5301_v20, %v8569_v0  ;;  %v8575_v20 = vpack.c.bf16 %v8573_v5, %v8574_v34 }
 0xc78   : > { %4124 = vmatpush1.bf16.xpose.msra.mxu0 %v4091_v55  ;;  %v4094_v43 = vpack.c.bf16 %v4054_v17, %v4052_v45  ;;  %v4093_v48 = vpack.c.bf16 %v4053_v16, %v4051_v6  ;;  %v4548_v6 = vld [vmem:[%s8070_s6] sm:$0xff]  }
 0xc7a   : > { %4125 = vmatprep.subr.bf16.mxu0 %v4094_v43  ;;  %v8581_v43 = vld [vmem:[#allocation43_spill] sm:$0xff] }
 0xc80   : > { %4126 = vmatpush1.bf16.xpose.msra.mxu0 %v4093_v48  ;;  %v4549_v48 = vld [vmem:[%s8070_s6 + $0x8] sm:$0xff]  }
 0xcb4   : > { %v3953_v42 = vpop.xlane.xlu1 %3952 }
 0xcb5   : > { %5302 = vrcp.f32 %v3953_v42 }
 0xcb7   : > { %v3956_v26 = vpop.xlane.xlu0 %3955 }
 0xcb8   : > { %5304 = vrcp.f32 %v3956_v26 }
 0xcbc   : > { %v3959_v49 = vpop.xlane.xlu1 %3958 }
 0xcbd   : > { %5306 = vrcp.f32 %v3959_v49 }
 0xcbf   : > { %v5303_v56 = vpop.eup %5302 }
 0xcc0   : > { %v3962_v53 = vpop.xlane.xlu0 %3961  ;;  %v4056_v41 = vmul.f32 %v5303_v56, %v7901_v27  ;;  %v4055_v4 = vmul.f32 %v5303_v56, %v7899_v63 }
 0xcc1   : > { %5308 = vrcp.f32 %v3962_v53 }
 0xcc2   : > { %v5305_v35 = vpop.eup %5304 }
 0xcc3   : > { %v4058_v32 = vmul.f32 %v5305_v35, %v7909_v3  ;;  %v4057_v38 = vmul.f32 %v5305_v35, %v7907_v57 }
 0xcc4   : > { %v3965_v44 = vpop.xlane.xlu1 %3964 }
 0xcc5   : > { %v4096_v25 = vpack.c.bf16 %v4058_v32, %v4056_v41  ;;  %v4095_v21 = vpack.c.bf16 %v4057_v38, %v4055_v4  ;;  %5310 = vrcp.f32 %v3965_v44 }
 0xcc7   : > { %4127 = vmatprep.subr.bf16.mxu0 %v4096_v25  ;;  %v5307_v28 = vpop.eup %5306 }
 0xcc8   : > { %4128 = vmatpush1.bf16.xpose.msra.mxu0 %v4095_v21  ;;  %v4060_v1 = vmul.f32 %v5307_v28, %v7921_v24  ;;  %v4059_v3 = vmul.f32 %v5307_v28, %v7919_v15 }
 0xcc9   : > { %v3968_v18 = vpop.xlane.xlu0 %3967 }
 0xcca   : > { %5312 = vrcp.f32 %v3968_v18 }
 0xccb   : > { %v5309_v31 = vpop.eup %5308 }
 0xccc   : > { %v3971_v52 = vpop.xlane.xlu1 %3970  ;;  %v4062_v27 = vmul.f32 %v5309_v31, %v7929_v30  ;;  %v4061_v63 = vmul.f32 %v5309_v31, %v7927_v60 }
 0xccd   : > { %5314 = vrcp.f32 %v3971_v52 }
 0xcce   : > { %v4098_v57 = vpack.c.bf16 %v4062_v27, %v4060_v1  ;;  %v4097_v23 = vpack.c.bf16 %v4061_v63, %v4059_v3 }
 0xccf   : > { %v5311_v11 = vpop.eup %5310 }
 0xcd0   : > { %v416_v62 = vpop.permute.xlu1 %415  ;;  %4129 = vmatprep.subr.bf16.mxu0 %v4098_v57  ;;  %v4064_v24 = vmul.f32 %v5311_v11, %v7941_v8  ;;  %v4063_v15 = vmul.f32 %v5311_v11, %v7939_v46  ;;  %v8572_v46 = vld [vmem:[#allocation15_spill] sm:$0xff] }
 0xcd1   : > { %v3974_v59 = vpop.xlane.xlu0 %3973  ;;  %v522_v39 = vadd.f32 %v8571_v14, %v416_v62  ;;  %4130 = vmatpush1.bf16.xpose.msra.mxu0 %v4097_v23 }
 0xcd2   : > { %5316 = vrcp.f32 %v3974_v59 }
 0xcd3   : > { %v3311_v29 = vpack.c.bf16 %v522_v39, %v522_v39 }
 0xcd4   : > { %v5313_v10 = vpop.eup %5312  ;;  %v4174_v53 = vpop.permute.xlu1 %4173 }
 0xcd5   : > { %v4066_v30 = vmul.f32 %v5313_v10, %v7947_v22  ;;  %v4065_v60 = vmul.f32 %v5313_v10, %v7945_v54  ;;  %4135 = vmatprep.mubr.bf16.mxu0 %v3311_v29  ;;  %v520_v54 = vadd.f32 %v8572_v46, %v416_v62 }
 0xcd7   : > { %v4100_v50 = vpack.c.bf16 %v4066_v30, %v4064_v24  ;;  %v4099_v13 = vpack.c.bf16 %v4065_v60, %v4063_v15  ;;  %v5315_v12 = vpop.eup %5314  ;;  %v3310_v55 = vpack.c.bf16 %v520_v54, %v520_v54 }
 0xcd8   : > { %v4068_v2 = vmul.f32 %v5315_v12, %v7957_v33  ;;  %v4067_v7 = vmul.f32 %v5315_v12, %v7955_v36  ;;  %v8577_v33 = vld [vmem:[#allocation34_spill] sm:$0xff]  ;;  %v4179_v44 = vpop.permute.xlu1 %4178 }
 0xcd9   : > { %4131 = vmatprep.subr.bf16.mxu0 %v4100_v50  ;;  %v8578_v45 = vpack.c.bf16 %v8576_v19, %v8577_v33  ;;  %v4169_v42 = vpop.permute.xlu0 %4168 }
 0xcda   : > { %4132 = vmatpush1.bf16.xpose.msra.mxu0 %v4099_v13 }
 0xcdc   : > { %v5317_v9 = vpop.eup %5316 }
 0xcdd   : > { %v4070_v58 = vmul.f32 %v5317_v9, %v7963_v40  ;;  %v4069_v8 = vmul.f32 %v5317_v9, %v7961_v51  ;;  %v8579_v40 = vmov 0   ;;  %v8580_v51 = vld [vmem:[#allocation35_spill] sm:$0xff]  ;;  %v4184_v28 = vpop.permute.xlu0 %4183 }
 0xcdf   : > { %v4102_v22 = vpack.c.bf16 %v4070_v58, %v4068_v2  ;;  %v4101_v47 = vpack.c.bf16 %v4069_v8, %v4067_v7 }
 0xce1   : > { %4133 = vmatprep.subr.bf16.mxu0 %v4102_v22 }
 0xce2   : > { %4134 = vmatpush1.bf16.xpose.msra.mxu0 %v4101_v47 }
 0xce3   : > { %4202 = vmatprep.subr.bf16.mxu0 %v8575_v20 }
 0xce9   : > { %4136 = vmatmul.mubr.bf16.vlgmr.msra.gmra.mrb[180].mxu0 %v3310_v55 }
 0xcea   : > { %4203 = vmatpush1.bf16.msra.mxu0 %v8578_v45  ;;  %4234 = vmatprep.mubr.bf16.mxu0 %v8579_v40 }
 0xdbc   : > { %v4137_v36 = vpop.f32.mrb[180].mxu0 }
 0xdbd   : > { %v4160_v37 = vpack.c.bf16 %v4137_v36, %v8580_v51  ;;  %v4139_v17 = vpop.f32.mrb[181].mxu0 }
 0xdbe   : > { %v4161_v0 = vpack.c.bf16 %v4139_v17, %v8581_v43  ;;  %v4141_v16 = vpop.f32.mrb[182].mxu0 }
 0xdbf   : > { %v4142_v61 = vpop.f32.mrb[183].mxu0 }
 0xdc0   : > { %4204 = vmatprep.subr.bf16.mxu0 %v4161_v0 }
 0xdc1   : > { %4205 = vmatpush1.bf16.msra.mxu0 %v4160_v37 }
 0xdc4   : > { %4450 = vmatmul.mubr.msk.bf16.vlgmr.msra.gmra.mrb[184].mxu0 %vm438_vm0, %v4548_v6 }
 0xdc5   : > { %4244 = vmatprep.mubr.bf16.mxu0 %v8579_v40 }
 0xdcc   : > { %4451 = vmatmul.mubr.msk.bf16.gmra.mrb[188].mxu0 %vm438_vm0, %v4549_v48 }
 0xe97   : > { %v4236_v26 = vpop.f32.mrb[184].mxu0 }
 0xe98   : > { %v4237_v49 = vadd.f32 %v4236_v26, %v4169_v42  ;;  %v4238_v56 = vpop.f32.mrb[185].mxu0 }
 0xe99   : > { %v4239_v35 = vadd.f32 %v4238_v56, %v4169_v42  ;;  %v4240_v41 = vpop.f32.mrb[186].mxu0 }
 0xe9a   : > { %4255 = vst [vmem:[%s327_s16] sm:$0xff] %v4237_v49  ;;  %v4241_v32 = vadd.f32 %v4240_v41, %v4174_v53  ;;  %v4242_v4 = vpop.f32.mrb[187].mxu0 }
 0xe9b   : > { %4256 = vst [vmem:[%s327_s16 + $0x8] sm:$0xff] %v4239_v35  ;;  %v4243_v38 = vadd.f32 %v4242_v4, %v4174_v53 }
 0xe9c   : > { %4257 = vst [vmem:[%s327_s16 + $0x10] sm:$0xff] %v4241_v32 }
 0xe9d   : > { %4258 = vst [vmem:[%s327_s16 + $0x18] sm:$0xff] %v4243_v38 }
 0xe9f   : > { %v4246_v25 = vpop.f32.mrb[188].mxu0 }
 0xea0   : > { %v4247_v21 = vadd.f32 %v4246_v25, %v4179_v44  ;;  %v4248_v18 = vpop.f32.mrb[189].mxu0 }
 0xea1   : > { %v4249_v31 = vadd.f32 %v4248_v18, %v4179_v44  ;;  %v4250_v52 = vpop.f32.mrb[190].mxu0 }
 0xea2   : > { %4259 = vst [vmem:[%s327_s16 + $0x20] sm:$0xff] %v4247_v21  ;;  %v4251_v1 = vadd.f32 %v4250_v52, %v4184_v28  ;;  %v4252_v27 = vpop.f32.mrb[191].mxu0 }
 0xea3   : > { %4260 = vst [vmem:[%s327_s16 + $0x28] sm:$0xff] %v4249_v31  ;;  %v4253_v3 = vadd.f32 %v4252_v27, %v4184_v28 }
 0xea4   : > { %4261 = vst [vmem:[%s327_s16 + $0x30] sm:$0xff] %v4251_v1 }
 0xea5   : > { %4262 = vst [vmem:[%s327_s16 + $0x38] sm:$0xff] %v4253_v3 }
 0xea6 PF: > { %s18_s29 = sadd.s32 1, %s5340_s29   ;;  %s8582_s27 = smov %s5336_s28 }
 0xea7   : > { %p15_p5 = scmp.ge.s32.totalorder %s18_s29, 4   ;;  %s8583_s28 = smov %s8585_s30 }
 0xea9   :  { %17 = sbr.rel (!%p15_p5) target bundleno = 2 (0x2), region = 82 }

</bundles_post_ra>
